<compile_context>
chip_gen: v6e
topology: v6e:2x2x1
jax: 0.10.0
libtpu: 0.0.40
codegen_flags: <defaults>
</compile_context>

<pallas_src>
import functools

import jax
import jax.numpy as jnp
from jax.experimental import pallas as pl
from jax.experimental.pallas import tpu as pltpu

_INV_SQRT2 = 0.7071067811865476


def _gelu_bf16(x):
    # exact GELU (matches nn.GELU() default, approximate='none'), computed in
    # f32 with the bf16 output cast fused into the same expression.
    return (0.5 * x * (1.0 + jax.lax.erf(x * _INV_SQRT2))).astype(jnp.bfloat16)


def pointnet_kernel(x_ref, w1, b1, w2, b2, w3, b3, w4, o_ref):
    BT, TN, C = x_ref.shape
    M = BT * TN
    # merge (batch-tile, point-tile) -> rows; last (lane) dim unchanged -> free
    x = x_ref[...].reshape(M, C).astype(jnp.bfloat16)                    # [M, 3]

    # All four layers on the MXU: bf16 inputs, f32 accumulation, bias add in
    # f32, GELU in f32 with a fused bf16 cast feeding the next matmul.
    h = _gelu_bf16(jnp.dot(x, w1[...], preferred_element_type=jnp.float32)
                   + b1[...])                                            # [M, 64]
    h = _gelu_bf16(jnp.dot(h, w2[...], preferred_element_type=jnp.float32)
                   + b2[...])                                            # [M, 64]
    h = _gelu_bf16(jnp.dot(h, w3[...], preferred_element_type=jnp.float32)
                   + b3[...])                                            # [M, 128]
    # layer 4: bias hoisted past the max (added once in the wrapper)
    h = jnp.dot(h, w4[...], preferred_element_type=jnp.float32)          # [M, 256]

    # partial max over this (batch-tile, N-tile) block
    o_ref[0] = jnp.max(h.reshape(BT, TN, h.shape[-1]), axis=1)           # [BT, 256]


def _full_spec(shape):
    nd = len(shape)
    return pl.BlockSpec(shape, lambda b, n, _nd=nd: (0,) * _nd)


def _round_up(a, m):
    return ((a + m - 1) // m) * m


def _cdiv(a, b):
    return -(-a // b)


def _vmem_limit_bytes(BT, TN, out_dim):
    m = BT * TN
    x_bufs = 2 * BT * TN * 128 * 4            # (BT,TN,3) lane-pads 3->128, double-buffered
    acts = m * (64 + 64 + 128 + out_dim) * 8  # generous: f32 acc + bf16 copy per layer
    fixed = 8 << 20                           # weights/biases/out blocks/compiler scratch
    est = x_bufs + acts + fixed
    return int(min(96 << 20, max(32 << 20, est)))


@functools.partial(jax.jit, static_argnames=("tn", "bt"))
def pointnet_medium(x, params, *, tn=1024, bt=8):
    B, N, C = x.shape
    w1, b1, w2, b2, w3, b3, w4, b4 = params
    out_dim = w4.shape[1]

    BT = min(bt, B)
    B_pad = _round_up(B, BT)

    # balanced N tiles (multiple of 8 sublanes) instead of clamping to tn
    n_tiles = _cdiv(N, tn)
    # ensure >= 2 grid steps so v7x's second TensorCore has work even at B=1..2
    if (B_pad // BT) * n_tiles < 2 and N >= 16:
        n_tiles = 2
    TN = _round_up(_cdiv(N, n_tiles), 8)
    N_pad = n_tiles * TN

    if (B_pad, N_pad) != (B, N):
        # edge-pad: duplicated points / batch rows never change the max; padded
        # batch rows are sliced off below.
        x = jnp.pad(x, ((0, B_pad - B), (0, N_pad - N), (0, 0)), mode="edge")

    # bf16 weights for the MXU; biases stay f32 (added to the f32 accumulators)
    w1b, w2b, w3b, w4b = (w.astype(jnp.bfloat16) for w in (w1, w2, w3, w4))
    b1f, b2f, b3f = (b.astype(jnp.float32) for b in (b1, b2, b3))

    grid = (B_pad // BT, n_tiles)

    partial = pl.pallas_call(
        pointnet_kernel,
        out_shape=jax.ShapeDtypeStruct((n_tiles, B_pad, out_dim), jnp.float32),
        grid_spec=pltpu.PrefetchScalarGridSpec(
            num_scalar_prefetch=0,
            grid=grid,
            in_specs=[
                pl.BlockSpec((BT, TN, C), lambda b, n: (b, n, 0)),
                _full_spec(w1b.shape), _full_spec(b1f.shape),
                _full_spec(w2b.shape), _full_spec(b2f.shape),
                _full_spec(w3b.shape), _full_spec(b3f.shape),
                _full_spec(w4b.shape),
            ],
            out_specs=pl.BlockSpec((1, BT, out_dim), lambda b, n: (n, b, 0)),
        ),
        compiler_params=pltpu.CompilerParams(
            dimension_semantics=("parallel", "parallel"),
            vmem_limit_bytes=_vmem_limit_bytes(BT, TN, out_dim),
        ),
    )(x, w1b, b1f, w2b, b2f, w3b, b3f, w4b)

    # finish the max over N-tiles and add the hoisted layer-4 bias
    out = jnp.max(partial, axis=0) + b4.astype(jnp.float32)
    return out[:B].astype(x.dtype)


def init_params(key, point_channel=3, dtype=jnp.float32):
    # nn.init.trunc_normal_(std=0.02) on weights, zeros on biases
    dims = [(point_channel, 64), (64, 64), (64, 128), (128, 256)]
    params = []
    for din, dout in dims:
        key, wk = jax.random.split(key)
        w = jax.random.truncated_normal(wk, -2.0, 2.0, (din, dout), dtype) * 0.02
        b = jnp.zeros((1, dout), dtype)
        params += [w, b]
    return params


def pointnet_medium_ref(x, params):
    # pure-JAX f32 reference for correctness checking
    w1, b1, w2, b2, w3, b3, w4, b4 = params
    h = x.astype(jnp.float32)
    h = jax.nn.gelu(h @ w1 + b1, approximate=False)
    h = jax.nn.gelu(h @ w2 + b2, approximate=False)
    h = jax.nn.gelu(h @ w3 + b3, approximate=False)
    h = h @ w4 + b4
    return jnp.max(h, axis=1).astype(x.dtype)


if __name__ == "__main__":
    key = jax.random.PRNGKey(0)
    pkey, xkey, bkey = jax.random.split(key, 3)

    # x: [B, N, 3] like the PyTorch module.  N=640 exercises the balanced
    # N-tiling path (forced >=2 grid steps -> 2 tiles of 320, zero padding).
    B, N, C = 2, 640, 3
    params = init_params(pkey, point_channel=C)
    # use non-zero biases so the bias paths (incl. the hoisted b4) are exercised
    for i, bk in zip((1, 3, 5, 7), jax.random.split(bkey, 4)):
        params[i] = 0.02 * jax.random.normal(bk, params[i].shape, jnp.float32)

    x = jax.random.normal(xkey, (B, N, C), dtype=jnp.float32)

    out = jax.block_until_ready(pointnet_medium(x, params))
    ref = pointnet_medium_ref(x, params)

    assert out.shape == (B, 256), out.shape
    max_err = float(jnp.max(jnp.abs(out - ref)))
    # bf16 MXU inputs (f32 accumulation) -> loosened tolerance vs the f32 ref
    assert jnp.allclose(out, ref, atol=1e-3, rtol=5e-2), max_err

    print("KERNEL_OK")
</pallas_src>

<mosaic_0001>
module attributes {stable_mosaic.version = 11 : i64} {
  func.func @pointnet_kernel(%arg0: i32, %arg1: i32, %arg2: memref<2x320x3xf32, #tpu.memory_space<vmem>>, %arg3: memref<3x64xbf16, #tpu.memory_space<vmem>>, %arg4: memref<1x64xf32, #tpu.memory_space<vmem>>, %arg5: memref<64x64xbf16, #tpu.memory_space<vmem>>, %arg6: memref<1x64xf32, #tpu.memory_space<vmem>>, %arg7: memref<64x128xbf16, #tpu.memory_space<vmem>>, %arg8: memref<1x128xf32, #tpu.memory_space<vmem>>, %arg9: memref<128x256xbf16, #tpu.memory_space<vmem>>, %arg10: memref<1x2x256xf32, #tpu.memory_space<vmem>>) attributes {dimension_semantics = [#tpu.dimension_semantics<parallel>, #tpu.dimension_semantics<parallel>], iteration_bounds = array<i64: 1, 2>, scalar_prefetch = 0 : i64, scratch_operands = 0 : i64, tpu.core_type = #tpu.core_type<tc>, window_params = [{transform_indices = @transform_0, window_bounds = array<i64: 2, 320, 3>}, {pipeline_mode = #tpu.pipeline_mode<synchronous>, transform_indices = @transform_1, window_bounds = array<i64: 3, 64>}, {pipeline_mode = #tpu.pipeline_mode<synchronous>, transform_indices = @transform_2, window_bounds = array<i64: 1, 64>}, {pipeline_mode = #tpu.pipeline_mode<synchronous>, transform_indices = @transform_3, window_bounds = array<i64: 64, 64>}, {pipeline_mode = #tpu.pipeline_mode<synchronous>, transform_indices = @transform_4, window_bounds = array<i64: 1, 64>}, {pipeline_mode = #tpu.pipeline_mode<synchronous>, transform_indices = @transform_5, window_bounds = array<i64: 64, 128>}, {pipeline_mode = #tpu.pipeline_mode<synchronous>, transform_indices = @transform_6, window_bounds = array<i64: 1, 128>}, {pipeline_mode = #tpu.pipeline_mode<synchronous>, transform_indices = @transform_7, window_bounds = array<i64: 128, 256>}, {transform_indices = @transform_8, window_bounds = array<i64: 1, 2, 256>}]} {
    %c0 = arith.constant 0 : index
    %c0_0 = arith.constant 0 : index
    %c0_1 = arith.constant 0 : index
    %0 = vector.load %arg2[%c0, %c0_0, %c0_1] : memref<2x320x3xf32, #tpu.memory_space<vmem>>, vector<2x320x3xf32>
    %1 = vector.shape_cast %0 : vector<2x320x3xf32> to vector<640x3xf32>
    %2 = arith.truncf %1 : vector<640x3xf32> to vector<640x3xbf16>
    %c0_2 = arith.constant 0 : index
    %c0_3 = arith.constant 0 : index
    %3 = vector.load %arg3[%c0_2, %c0_3] : memref<3x64xbf16, #tpu.memory_space<vmem>>, vector<3x64xbf16>
    %cst = arith.constant dense<0.000000e+00> : vector<640x64xf32>
    %4 = tpu.matmul %2, %3, %cst {dimension_numbers = #tpu.dot_dimension_numbers<[1], [0], [0], [1], [0, 0, 1, 1], [], []>} : vector<640x3xbf16>, vector<3x64xbf16>, vector<640x64xf32> -> vector<640x64xf32>
    %c0_4 = arith.constant 0 : index
    %c0_5 = arith.constant 0 : index
    %5 = vector.load %arg4[%c0_4, %c0_5] : memref<1x64xf32, #tpu.memory_space<vmem>>, vector<1x64xf32>
    %6 = vector.broadcast %5 : vector<1x64xf32> to vector<640x64xf32>
    %7 = arith.addf %4, %6 : vector<640x64xf32>
    %cst_6 = arith.constant 5.000000e-01 : f32
    %8 = vector.broadcast %cst_6 : f32 to vector<640x64xf32>
    %9 = arith.mulf %8, %7 : vector<640x64xf32>
    %cst_7 = arith.constant 0.707106769 : f32
    %10 = vector.broadcast %cst_7 : f32 to vector<640x64xf32>
    %11 = arith.mulf %7, %10 : vector<640x64xf32>
    %12 = math.erf %11 : vector<640x64xf32>
    %cst_8 = arith.constant 1.000000e+00 : f32
    %13 = vector.broadcast %cst_8 : f32 to vector<640x64xf32>
    %14 = arith.addf %13, %12 : vector<640x64xf32>
    %15 = arith.mulf %9, %14 : vector<640x64xf32>
    %16 = arith.truncf %15 : vector<640x64xf32> to vector<640x64xbf16>
    %c0_9 = arith.constant 0 : index
    %c0_10 = arith.constant 0 : index
    %17 = vector.load %arg5[%c0_9, %c0_10] : memref<64x64xbf16, #tpu.memory_space<vmem>>, vector<64x64xbf16>
    %cst_11 = arith.constant dense<0.000000e+00> : vector<640x64xf32>
    %18 = tpu.matmul %16, %17, %cst_11 {dimension_numbers = #tpu.dot_dimension_numbers<[1], [0], [0], [1], [0, 0, 1, 1], [], []>} : vector<640x64xbf16>, vector<64x64xbf16>, vector<640x64xf32> -> vector<640x64xf32>
    %c0_12 = arith.constant 0 : index
    %c0_13 = arith.constant 0 : index
    %19 = vector.load %arg6[%c0_12, %c0_13] : memref<1x64xf32, #tpu.memory_space<vmem>>, vector<1x64xf32>
    %20 = vector.broadcast %19 : vector<1x64xf32> to vector<640x64xf32>
    %21 = arith.addf %18, %20 : vector<640x64xf32>
    %cst_14 = arith.constant 5.000000e-01 : f32
    %22 = vector.broadcast %cst_14 : f32 to vector<640x64xf32>
    %23 = arith.mulf %22, %21 : vector<640x64xf32>
    %cst_15 = arith.constant 0.707106769 : f32
    %24 = vector.broadcast %cst_15 : f32 to vector<640x64xf32>
    %25 = arith.mulf %21, %24 : vector<640x64xf32>
    %26 = math.erf %25 : vector<640x64xf32>
    %cst_16 = arith.constant 1.000000e+00 : f32
    %27 = vector.broadcast %cst_16 : f32 to vector<640x64xf32>
    %28 = arith.addf %27, %26 : vector<640x64xf32>
    %29 = arith.mulf %23, %28 : vector<640x64xf32>
    %30 = arith.truncf %29 : vector<640x64xf32> to vector<640x64xbf16>
    %c0_17 = arith.constant 0 : index
    %c0_18 = arith.constant 0 : index
    %31 = vector.load %arg7[%c0_17, %c0_18] : memref<64x128xbf16, #tpu.memory_space<vmem>>, vector<64x128xbf16>
    %cst_19 = arith.constant dense<0.000000e+00> : vector<640x128xf32>
    %32 = tpu.matmul %30, %31, %cst_19 {dimension_numbers = #tpu.dot_dimension_numbers<[1], [0], [0], [1], [0, 0, 1, 1], [], []>} : vector<640x64xbf16>, vector<64x128xbf16>, vector<640x128xf32> -> vector<640x128xf32>
    %c0_20 = arith.constant 0 : index
    %c0_21 = arith.constant 0 : index
    %33 = vector.load %arg8[%c0_20, %c0_21] : memref<1x128xf32, #tpu.memory_space<vmem>>, vector<1x128xf32>
    %34 = vector.broadcast %33 : vector<1x128xf32> to vector<640x128xf32>
    %35 = arith.addf %32, %34 : vector<640x128xf32>
    %cst_22 = arith.constant 5.000000e-01 : f32
    %36 = vector.broadcast %cst_22 : f32 to vector<640x128xf32>
    %37 = arith.mulf %36, %35 : vector<640x128xf32>
    %cst_23 = arith.constant 0.707106769 : f32
    %38 = vector.broadcast %cst_23 : f32 to vector<640x128xf32>
    %39 = arith.mulf %35, %38 : vector<640x128xf32>
    %40 = math.erf %39 : vector<640x128xf32>
    %cst_24 = arith.constant 1.000000e+00 : f32
    %41 = vector.broadcast %cst_24 : f32 to vector<640x128xf32>
    %42 = arith.addf %41, %40 : vector<640x128xf32>
    %43 = arith.mulf %37, %42 : vector<640x128xf32>
    %44 = arith.truncf %43 : vector<640x128xf32> to vector<640x128xbf16>
    %c0_25 = arith.constant 0 : index
    %c0_26 = arith.constant 0 : index
    %45 = vector.load %arg9[%c0_25, %c0_26] : memref<128x256xbf16, #tpu.memory_space<vmem>>, vector<128x256xbf16>
    %cst_27 = arith.constant dense<0.000000e+00> : vector<640x256xf32>
    %46 = tpu.matmul %44, %45, %cst_27 {dimension_numbers = #tpu.dot_dimension_numbers<[1], [0], [0], [1], [0, 0, 1, 1], [], []>} : vector<640x128xbf16>, vector<128x256xbf16>, vector<640x256xf32> -> vector<640x256xf32>
    %47 = vector.shape_cast %46 : vector<640x256xf32> to vector<2x320x256xf32>
    %cst_28 = arith.constant dense<0xFF800000> : vector<2x256xf32>
    %48 = vector.multi_reduction <maximumf>, %47, %cst_28 [1] : vector<2x320x256xf32> to vector<2x256xf32>
    %c0_29 = arith.constant 0 : index
    %c0_30 = arith.constant 0 : index
    %c0_31 = arith.constant 0 : index
    %49 = vector.load %arg10[%c0_29, %c0_30, %c0_31] : memref<1x2x256xf32, #tpu.memory_space<vmem>>, vector<1x2x256xf32>
    %50 = vector.shape_cast %49 : vector<1x2x256xf32> to vector<2x256xf32>
    %51 = vector.shape_cast %48 : vector<2x256xf32> to vector<1x2x256xf32>
    tpu.vector_store %arg10[%c0_29, %c0_30, %c0_31], %51 {strides = array<i32>} : memref<1x2x256xf32, #tpu.memory_space<vmem>>, vector<1x2x256xf32>,
    return
  }
  func.func @transform_0(%arg0: i32, %arg1: i32) -> (i32, i32, i32) {
    %c0_i32 = arith.constant 0 : i32
    %c0_i32_0 = arith.constant 0 : i32
    return %arg0, %arg1, %c0_i32 : i32, i32, i32
  }
  func.func @transform_1(%arg0: i32, %arg1: i32) -> (i32, i32) {
    %c0_i32 = arith.constant 0 : i32
    %c0_i32_0 = arith.constant 0 : i32
    %c0_i32_1 = arith.constant 0 : i32
    return %c0_i32, %c0_i32_0 : i32, i32
  }
  func.func @transform_2(%arg0: i32, %arg1: i32) -> (i32, i32) {
    %c0_i32 = arith.constant 0 : i32
    %c0_i32_0 = arith.constant 0 : i32
    %c0_i32_1 = arith.constant 0 : i32
    return %c0_i32, %c0_i32_0 : i32, i32
  }
  func.func @transform_3(%arg0: i32, %arg1: i32) -> (i32, i32) {
    %c0_i32 = arith.constant 0 : i32
    %c0_i32_0 = arith.constant 0 : i32
    %c0_i32_1 = arith.constant 0 : i32
    return %c0_i32, %c0_i32_0 : i32, i32
  }
  func.func @transform_4(%arg0: i32, %arg1: i32) -> (i32, i32) {
    %c0_i32 = arith.constant 0 : i32
    %c0_i32_0 = arith.constant 0 : i32
    %c0_i32_1 = arith.constant 0 : i32
    return %c0_i32, %c0_i32_0 : i32, i32
  }
  func.func @transform_5(%arg0: i32, %arg1: i32) -> (i32, i32) {
    %c0_i32 = arith.constant 0 : i32
    %c0_i32_0 = arith.constant 0 : i32
    %c0_i32_1 = arith.constant 0 : i32
    return %c0_i32, %c0_i32_0 : i32, i32
  }
  func.func @transform_6(%arg0: i32, %arg1: i32) -> (i32, i32) {
    %c0_i32 = arith.constant 0 : i32
    %c0_i32_0 = arith.constant 0 : i32
    %c0_i32_1 = arith.constant 0 : i32
    return %c0_i32, %c0_i32_0 : i32, i32
  }
  func.func @transform_7(%arg0: i32, %arg1: i32) -> (i32, i32) {
    %c0_i32 = arith.constant 0 : i32
    %c0_i32_0 = arith.constant 0 : i32
    %c0_i32_1 = arith.constant 0 : i32
    return %c0_i32, %c0_i32_0 : i32, i32
  }
  func.func @transform_8(%arg0: i32, %arg1: i32) -> (i32, i32, i32) {
    %c0_i32 = arith.constant 0 : i32
    %c0_i32_0 = arith.constant 0 : i32
    return %arg1, %arg0, %c0_i32 : i32, i32, i32
  }
}

</mosaic_0001>

<bundles_post_ra>
// kernel: pointnet_medium.1
= control target key start
LH: loop header
LB: loop body
LE: loop exit
PB: predicated region body
PF: predicated region fallthrough
CT: control target
= control target key end

     0   :  { %s5680_s27 = smov 0   ;;  %s5682_s28 = smov 0   ;;  %s7180_s0 = inlined_call_operand.vmem [shape: f32[2,640,3], index: 0, kind: input, shape index: {}]   ;;  %s7181_s1 = inlined_call_operand.vmem [shape: bf16[3,64], index: 1, kind: input, shape index: {}]   ;;  %s7182_s2 = inlined_call_operand.vmem [shape: f32[1,64], index: 2, kind: input, shape index: {}]   ;;  %s7183_s3 = inlined_call_operand.vmem [shape: bf16[64,64], index: 3, kind: input, shape index: {}]   ;;  %s7184_s4 = inlined_call_operand.vmem [shape: f32[1,64], index: 4, kind: input, shape index: {}]   ;;  %s7185_s5 = inlined_call_operand.vmem [shape: bf16[64,128], index: 5, kind: input, shape index: {}]   ;;  %s7186_s6 = inlined_call_operand.vmem [shape: f32[1,128], index: 6, kind: input, shape index: {}]   ;;  %s7187_s7 = inlined_call_operand.vmem [shape: bf16[128,256], index: 7, kind: input, shape index: {}]   ;;  %s7188_s8 = inlined_call_operand.vmem [shape: f32[2,2,256], index: 8, kind: output, shape index: {}]  }
   0x1   :  { %s5684_s29 = smov 0   ;;  %s5686_s30 = smov 0  }
   0x2   :  { %s5688_s9 = smov 0  }
   0x3 LB: > { %s27_s10 = sadd.s32 1, %s5626_s30  ;;  %p46_p1 = scmp.ne.s32.totalorder %s5618_s28, %s5614_s27  ;;  %s5630_s9 = sphi %s5688_s9, %s18_s9   ;;  %s5626_s30 = sphi %s5686_s30, %s7192_s30   ;;  %s5622_s29 = sphi %s5684_s29, %s7191_s29   ;;  %s5618_s28 = sphi %s5682_s28, %s7190_s28   ;;  %s5614_s27 = sphi %s5680_s27, %s7189_s27  }
   0x4   : > { %p28_p0 = scmp.ge.s32.totalorder %s27_s10, 2  ;;  %p47_p2 = scmp.eq.s32.totalorder %s5630_s9, 0 }
   0x5   : > { %s39_s12 = sadd.s32 1, %s5618_s28  ;;  %p4481_p5 = scmp.ge.s32.totalorder %s5630_s9, 2 }
   0x6   : > { %s7194_s10 = smov (%p28_p0, %s27_s10), 0  ;;  %p48_p3 = por %p47_p2, %p46_p1 }
   0x7   : > { %s35_s11 = ssub.s32 %s5626_s30, %s7194_s10  ;;  %268 = sbr.rel (%p4481_p5) target bundleno = 57 (0x39), region = 44 }
   0x8   : > { %p37_p4 = scmp.eq.s32.totalorder %s35_s11, 0 }
   0xa   : > { %s5715_s13 = scalar_select %p37_p4, %s5618_s28, %s39_s12  }
   0xc   : > { %271 = sbr.rel (!%p48_p3) target bundleno = 57 (0x39), region = 48  ;;  %s273_s14 = sand.u32 (%p48_p3), 1, %s5618_s28  }
   0xd   : > { %s4635_s15 = smul.u32 (%p48_p3), 320, %s5626_s30 }
   0xe   : > { %s5032_s16 = smul.u32 (%p48_p3), 640, %s273_s14 }
   0xf   : > { %s5723_s19 = scalar_lea.vmem (%p48_p3), %s7180_s0, %s4635_s15 }
  0x10   : > { %v468_v0 = vld [vmem:[%s5723_s19] sm:$0xff] (%p48_p3)  ;;  %v470_v1 = vld [vmem:[%s5723_s19 + $0x8] sm:$0xff] (%p48_p3)  ;;  %v472_v2 = vld [vmem:[%s5723_s19 + $0x10] sm:$0xff] (%p48_p3)  ;;  %s5728_s20 = scalar_lea.vmem (%p48_p3), [#allocation2], %s5032_s16 }
  0x11   : > { %469 = vst [vmem:[%s5728_s20] sm:$0xff] %v468_v0  ;;  %471 = vst [vmem:[%s5728_s20 + $0x8] sm:$0xff] %v470_v1  ;;  %v474_v3 = vld [vmem:[%s5723_s19 + $0x18] sm:$0xff]  ;;  %v476_v4 = vld [vmem:[%s5723_s19 + $0x20] sm:$0xff] }
  0x12   : > { %473 = vst [vmem:[%s5728_s20 + $0x10] sm:$0xff] %v472_v2  ;;  %v478_v5 = vld [vmem:[%s5723_s19 + $0x28] sm:$0xff]  ;;  %475 = vst [vmem:[%s5728_s20 + $0x18] sm:$0xff] %v474_v3  ;;  %v480_v6 = vld [vmem:[%s5723_s19 + $0x30] sm:$0xff] }
  0x13   : > { %477 = vst [vmem:[%s5728_s20 + $0x20] sm:$0xff] %v476_v4  ;;  %479 = vst [vmem:[%s5728_s20 + $0x28] sm:$0xff] %v478_v5  ;;  %v482_v7 = vld [vmem:[%s5723_s19 + $0x38] sm:$0xff]  ;;  %v484_v8 = vld [vmem:[%s5723_s19 + $0x40] sm:$0xff] }
  0x14   : > { %481 = vst [vmem:[%s5728_s20 + $0x30] sm:$0xff] %v480_v6  ;;  %483 = vst [vmem:[%s5728_s20 + $0x38] sm:$0xff] %v482_v7  ;;  %v486_v9 = vld [vmem:[%s5723_s19 + $0x48] sm:$0xff]  ;;  %v488_v10 = vld [vmem:[%s5723_s19 + $0x50] sm:$0xff] }
  0x15   : > { %485 = vst [vmem:[%s5728_s20 + $0x40] sm:$0xff] %v484_v8  ;;  %v490_v11 = vld [vmem:[%s5723_s19 + $0x58] sm:$0xff]  ;;  %487 = vst [vmem:[%s5728_s20 + $0x48] sm:$0xff] %v486_v9  ;;  %v492_v12 = vld [vmem:[%s5723_s19 + $0x60] sm:$0xff] }
  0x16   : > { %489 = vst [vmem:[%s5728_s20 + $0x50] sm:$0xff] %v488_v10  ;;  %491 = vst [vmem:[%s5728_s20 + $0x58] sm:$0xff] %v490_v11  ;;  %v494_v13 = vld [vmem:[%s5723_s19 + $0x68] sm:$0xff]  ;;  %v496_v14 = vld [vmem:[%s5723_s19 + $0x70] sm:$0xff] }
  0x17   : > { %493 = vst [vmem:[%s5728_s20 + $0x60] sm:$0xff] %v492_v12  ;;  %495 = vst [vmem:[%s5728_s20 + $0x68] sm:$0xff] %v494_v13  ;;  %v498_v15 = vld [vmem:[%s5723_s19 + $0x78] sm:$0xff]  ;;  %v500_v16 = vld [vmem:[%s5723_s19 + $0x80] sm:$0xff] }
  0x18   : > { %497 = vst [vmem:[%s5728_s20 + $0x70] sm:$0xff] %v496_v14  ;;  %v502_v17 = vld [vmem:[%s5723_s19 + $0x88] sm:$0xff]  ;;  %499 = vst [vmem:[%s5728_s20 + $0x78] sm:$0xff] %v498_v15  ;;  %v504_v18 = vld [vmem:[%s5723_s19 + $0x90] sm:$0xff] }
  0x19   : > { %501 = vst [vmem:[%s5728_s20 + $0x80] sm:$0xff] %v500_v16  ;;  %503 = vst [vmem:[%s5728_s20 + $0x88] sm:$0xff] %v502_v17  ;;  %v506_v19 = vld [vmem:[%s5723_s19 + $0x98] sm:$0xff]  ;;  %v508_v20 = vld [vmem:[%s5723_s19 + $0xa0] sm:$0xff] }
  0x1a   : > { %505 = vst [vmem:[%s5728_s20 + $0x90] sm:$0xff] %v504_v18  ;;  %507 = vst [vmem:[%s5728_s20 + $0x98] sm:$0xff] %v506_v19  ;;  %v510_v21 = vld [vmem:[%s5723_s19 + $0xa8] sm:$0xff]  ;;  %v512_v22 = vld [vmem:[%s5723_s19 + $0xb0] sm:$0xff] }
  0x1b   : > { %509 = vst [vmem:[%s5728_s20 + $0xa0] sm:$0xff] %v508_v20  ;;  %v514_v23 = vld [vmem:[%s5723_s19 + $0xb8] sm:$0xff]  ;;  %511 = vst [vmem:[%s5728_s20 + $0xa8] sm:$0xff] %v510_v21  ;;  %v516_v24 = vld [vmem:[%s5723_s19 + $0xc0] sm:$0xff] }
  0x1c   : > { %513 = vst [vmem:[%s5728_s20 + $0xb0] sm:$0xff] %v512_v22  ;;  %515 = vst [vmem:[%s5728_s20 + $0xb8] sm:$0xff] %v514_v23  ;;  %v518_v25 = vld [vmem:[%s5723_s19 + $0xc8] sm:$0xff]  ;;  %v520_v26 = vld [vmem:[%s5723_s19 + $0xd0] sm:$0xff] }
  0x1d   : > { %517 = vst [vmem:[%s5728_s20 + $0xc0] sm:$0xff] %v516_v24  ;;  %519 = vst [vmem:[%s5728_s20 + $0xc8] sm:$0xff] %v518_v25  ;;  %v522_v27 = vld [vmem:[%s5723_s19 + $0xd8] sm:$0xff]  ;;  %v524_v28 = vld [vmem:[%s5723_s19 + $0xe0] sm:$0xff] }
  0x1e   : > { %521 = vst [vmem:[%s5728_s20 + $0xd0] sm:$0xff] %v520_v26  ;;  %v526_v29 = vld [vmem:[%s5723_s19 + $0xe8] sm:$0xff]  ;;  %523 = vst [vmem:[%s5728_s20 + $0xd8] sm:$0xff] %v522_v27  ;;  %v528_v30 = vld [vmem:[%s5723_s19 + $0xf0] sm:$0xff] }
  0x1f   : > { %525 = vst [vmem:[%s5728_s20 + $0xe0] sm:$0xff] %v524_v28  ;;  %527 = vst [vmem:[%s5728_s20 + $0xe8] sm:$0xff] %v526_v29  ;;  %v530_v31 = vld [vmem:[%s5723_s19 + $0xf8] sm:$0xff]  ;;  %v532_v32 = vld [vmem:[%s5723_s19 + $0x100] sm:$0xff] }
  0x20   : > { %529 = vst [vmem:[%s5728_s20 + $0xf0] sm:$0xff] %v528_v30  ;;  %531 = vst [vmem:[%s5728_s20 + $0xf8] sm:$0xff] %v530_v31  ;;  %v534_v33 = vld [vmem:[%s5723_s19 + $0x108] sm:$0xff]  ;;  %v536_v34 = vld [vmem:[%s5723_s19 + $0x110] sm:$0xff] }
  0x21   : > { %533 = vst [vmem:[%s5728_s20 + $0x100] sm:$0xff] %v532_v32  ;;  %v538_v35 = vld [vmem:[%s5723_s19 + $0x118] sm:$0xff]  ;;  %535 = vst [vmem:[%s5728_s20 + $0x108] sm:$0xff] %v534_v33  ;;  %v540_v36 = vld [vmem:[%s5723_s19 + $0x120] sm:$0xff] }
  0x22   : > { %537 = vst [vmem:[%s5728_s20 + $0x110] sm:$0xff] %v536_v34  ;;  %539 = vst [vmem:[%s5728_s20 + $0x118] sm:$0xff] %v538_v35  ;;  %v542_v37 = vld [vmem:[%s5723_s19 + $0x128] sm:$0xff]  ;;  %v544_v38 = vld [vmem:[%s5723_s19 + $0x130] sm:$0xff] }
  0x23   : > { %541 = vst [vmem:[%s5728_s20 + $0x120] sm:$0xff] %v540_v36  ;;  %543 = vst [vmem:[%s5728_s20 + $0x128] sm:$0xff] %v542_v37  ;;  %v546_v39 = vld [vmem:[%s5723_s19 + $0x138] sm:$0xff]  ;;  %v548_v40 = vld [vmem:[%s5723_s19 + $0x280] sm:$0xff] }
  0x24   : > { %545 = vst [vmem:[%s5728_s20 + $0x130] sm:$0xff] %v544_v38  ;;  %v550_v41 = vld [vmem:[%s5723_s19 + $0x288] sm:$0xff]  ;;  %547 = vst [vmem:[%s5728_s20 + $0x138] sm:$0xff] %v546_v39  ;;  %v552_v42 = vld [vmem:[%s5723_s19 + $0x290] sm:$0xff] }
  0x25   : > { %549 = vst [vmem:[%s5728_s20 + $0x140] sm:$0xff] %v548_v40  ;;  %551 = vst [vmem:[%s5728_s20 + $0x148] sm:$0xff] %v550_v41  ;;  %v554_v43 = vld [vmem:[%s5723_s19 + $0x298] sm:$0xff]  ;;  %v556_v44 = vld [vmem:[%s5723_s19 + $0x2a0] sm:$0xff] }
  0x26   : > { %553 = vst [vmem:[%s5728_s20 + $0x150] sm:$0xff] %v552_v42  ;;  %555 = vst [vmem:[%s5728_s20 + $0x158] sm:$0xff] %v554_v43  ;;  %v558_v45 = vld [vmem:[%s5723_s19 + $0x2a8] sm:$0xff]  ;;  %v560_v46 = vld [vmem:[%s5723_s19 + $0x2b0] sm:$0xff] }
  0x27   : > { %557 = vst [vmem:[%s5728_s20 + $0x160] sm:$0xff] %v556_v44  ;;  %v562_v47 = vld [vmem:[%s5723_s19 + $0x2b8] sm:$0xff]  ;;  %559 = vst [vmem:[%s5728_s20 + $0x168] sm:$0xff] %v558_v45  ;;  %v564_v48 = vld [vmem:[%s5723_s19 + $0x2c0] sm:$0xff] }
  0x28   : > { %561 = vst [vmem:[%s5728_s20 + $0x170] sm:$0xff] %v560_v46  ;;  %563 = vst [vmem:[%s5728_s20 + $0x178] sm:$0xff] %v562_v47  ;;  %v566_v49 = vld [vmem:[%s5723_s19 + $0x2c8] sm:$0xff]  ;;  %v568_v50 = vld [vmem:[%s5723_s19 + $0x2d0] sm:$0xff] }
  0x29   : > { %565 = vst [vmem:[%s5728_s20 + $0x180] sm:$0xff] %v564_v48  ;;  %567 = vst [vmem:[%s5728_s20 + $0x188] sm:$0xff] %v566_v49  ;;  %v570_v51 = vld [vmem:[%s5723_s19 + $0x2d8] sm:$0xff]  ;;  %v572_v52 = vld [vmem:[%s5723_s19 + $0x2e0] sm:$0xff] }
  0x2a   : > { %569 = vst [vmem:[%s5728_s20 + $0x190] sm:$0xff] %v568_v50  ;;  %v574_v53 = vld [vmem:[%s5723_s19 + $0x2e8] sm:$0xff]  ;;  %571 = vst [vmem:[%s5728_s20 + $0x198] sm:$0xff] %v570_v51  ;;  %v576_v54 = vld [vmem:[%s5723_s19 + $0x2f0] sm:$0xff] }
  0x2b   : > { %573 = vst [vmem:[%s5728_s20 + $0x1a0] sm:$0xff] %v572_v52  ;;  %575 = vst [vmem:[%s5728_s20 + $0x1a8] sm:$0xff] %v574_v53  ;;  %v578_v55 = vld [vmem:[%s5723_s19 + $0x2f8] sm:$0xff]  ;;  %v580_v56 = vld [vmem:[%s5723_s19 + $0x300] sm:$0xff] }
  0x2c   : > { %577 = vst [vmem:[%s5728_s20 + $0x1b0] sm:$0xff] %v576_v54  ;;  %579 = vst [vmem:[%s5728_s20 + $0x1b8] sm:$0xff] %v578_v55  ;;  %v582_v57 = vld [vmem:[%s5723_s19 + $0x308] sm:$0xff]  ;;  %v584_v58 = vld [vmem:[%s5723_s19 + $0x310] sm:$0xff] }
  0x2d   : > { %581 = vst [vmem:[%s5728_s20 + $0x1c0] sm:$0xff] %v580_v56  ;;  %v586_v59 = vld [vmem:[%s5723_s19 + $0x318] sm:$0xff]  ;;  %583 = vst [vmem:[%s5728_s20 + $0x1c8] sm:$0xff] %v582_v57  ;;  %v588_v60 = vld [vmem:[%s5723_s19 + $0x320] sm:$0xff] }
  0x2e   : > { %585 = vst [vmem:[%s5728_s20 + $0x1d0] sm:$0xff] %v584_v58  ;;  %587 = vst [vmem:[%s5728_s20 + $0x1d8] sm:$0xff] %v586_v59  ;;  %v590_v61 = vld [vmem:[%s5723_s19 + $0x328] sm:$0xff]  ;;  %v592_v62 = vld [vmem:[%s5723_s19 + $0x330] sm:$0xff] }
  0x2f   : > { %589 = vst [vmem:[%s5728_s20 + $0x1e0] sm:$0xff] %v588_v60  ;;  %591 = vst [vmem:[%s5728_s20 + $0x1e8] sm:$0xff] %v590_v61  ;;  %v594_v63 = vld [vmem:[%s5723_s19 + $0x338] sm:$0xff]  ;;  %v596_v0 = vld [vmem:[%s5723_s19 + $0x340] sm:$0xff] }
  0x30   : > { %593 = vst [vmem:[%s5728_s20 + $0x1f0] sm:$0xff] %v592_v62  ;;  %v598_v1 = vld [vmem:[%s5723_s19 + $0x348] sm:$0xff]  ;;  %595 = vst [vmem:[%s5728_s20 + $0x1f8] sm:$0xff] %v594_v63  ;;  %v600_v2 = vld [vmem:[%s5723_s19 + $0x350] sm:$0xff] }
  0x31   : > { %597 = vst [vmem:[%s5728_s20 + $0x200] sm:$0xff] %v596_v0  ;;  %599 = vst [vmem:[%s5728_s20 + $0x208] sm:$0xff] %v598_v1  ;;  %v602_v3 = vld [vmem:[%s5723_s19 + $0x358] sm:$0xff]  ;;  %v604_v4 = vld [vmem:[%s5723_s19 + $0x360] sm:$0xff] }
  0x32   : > { %601 = vst [vmem:[%s5728_s20 + $0x210] sm:$0xff] %v600_v2  ;;  %603 = vst [vmem:[%s5728_s20 + $0x218] sm:$0xff] %v602_v3  ;;  %v606_v5 = vld [vmem:[%s5723_s19 + $0x368] sm:$0xff]  ;;  %v608_v6 = vld [vmem:[%s5723_s19 + $0x370] sm:$0xff] }
  0x33   : > { %605 = vst [vmem:[%s5728_s20 + $0x220] sm:$0xff] %v604_v4  ;;  %v610_v7 = vld [vmem:[%s5723_s19 + $0x378] sm:$0xff]  ;;  %607 = vst [vmem:[%s5728_s20 + $0x228] sm:$0xff] %v606_v5  ;;  %v612_v8 = vld [vmem:[%s5723_s19 + $0x380] sm:$0xff] }
  0x34   : > { %609 = vst [vmem:[%s5728_s20 + $0x230] sm:$0xff] %v608_v6  ;;  %611 = vst [vmem:[%s5728_s20 + $0x238] sm:$0xff] %v610_v7  ;;  %v614_v9 = vld [vmem:[%s5723_s19 + $0x388] sm:$0xff]  ;;  %v616_v10 = vld [vmem:[%s5723_s19 + $0x390] sm:$0xff] }
  0x35   : > { %613 = vst [vmem:[%s5728_s20 + $0x240] sm:$0xff] %v612_v8  ;;  %615 = vst [vmem:[%s5728_s20 + $0x248] sm:$0xff] %v614_v9  ;;  %v618_v11 = vld [vmem:[%s5723_s19 + $0x398] sm:$0xff]  ;;  %v620_v12 = vld [vmem:[%s5723_s19 + $0x3a0] sm:$0xff] }
  0x36   : > { %617 = vst [vmem:[%s5728_s20 + $0x250] sm:$0xff] %v616_v10  ;;  %v622_v13 = vld [vmem:[%s5723_s19 + $0x3a8] sm:$0xff]  ;;  %619 = vst [vmem:[%s5728_s20 + $0x258] sm:$0xff] %v618_v11  ;;  %v624_v14 = vld [vmem:[%s5723_s19 + $0x3b0] sm:$0xff] }
  0x37   : > { %621 = vst [vmem:[%s5728_s20 + $0x260] sm:$0xff] %v620_v12  ;;  %623 = vst [vmem:[%s5728_s20 + $0x268] sm:$0xff] %v622_v13  ;;  %v626_v15 = vld [vmem:[%s5723_s19 + $0x3b8] sm:$0xff] }
  0x38   : > { %625 = vst [vmem:[%s5728_s20 + $0x270] sm:$0xff] %v624_v14  ;;  %627 = vst [vmem:[%s5728_s20 + $0x278] sm:$0xff] %v626_v15 }
  0x39 PF: > { %p4483_p6 = scmp.ge.s32.totalorder %s5630_s9, 1  ;;  %p632_p7 = scmp.lt.s32.totalorder %s5630_s9, 3 }
  0x3b   : > { %p633_p8 = pnand %p4483_p6, %p632_p7 }
  0x3c   : > { %s639_s23 = sand.u32 (!%p633_p8), 1, %s5614_s27   ;;  %p678_p9 = scmp.lt.s32.totalorder (!%p633_p8), %s5622_s29, 1 }
  0x3d   : > { %636 = sbr.rel (%p633_p8) target bundleno = 1282 (0x502), region = 86 }
  0x3e   : > { %s5033_s24 = smul.u32 (!%p633_p8), 640, %s639_s23 }
  0x40   : > { %s5899_s14 = scalar_lea.vmem (!%p633_p8), [#allocation2], %s5033_s24 }
  0x42   : > { %v808_v16 = vld [vmem:[%s7181_s1] sm:$0x3]  ;;  %vm937_vm0 = vcmask 1040384   ;;  %vm938_vm1 = vcmask 1041408   ;;  %v5632_v17 = vmov 65535   ;;  %v5077_v19 = vld [vmem:[%s7183_s3 + $0x18] sm:$0xff]  }
  0x43   : > { %v939_v18 = vsel %vm937_vm0, 4294967295, %v5632_v17  ;;  %v5078_v21 = vld [vmem:[%s7183_s3 + $0x10] sm:$0xff]   ;;  %5024 = vmatprep.subr.bf16.mxu1 %v5077_v19  ;;  %v688_v23 = vld [vmem:[%s5899_s14] sm:$0xff]  ;;  %v689_v24 = vld [vmem:[%s5899_s14 + $0x8] sm:$0xff]  ;;  %vm816_vm2 = vcmask 23552   ;;  %vm1776_vm3 = vcmask 523264  }
  0x44   : > { %v940_v20 = vsel %vm938_vm1, %v939_v18, 0  ;;  %v690_v25 = vld [vmem:[%s5899_s14 + $0x10] sm:$0xff]  ;;  %5028 = vmatpush3.bf16.msra.mxu1 %v5077_v19  ;;  %v768_v26 = vpack.c.bf16 %v689_v24, %v688_v23  ;;  %v691_v27 = vld [vmem:[%s5899_s14 + $0x18] sm:$0xff]  ;;  %v692_v28 = vld [vmem:[%s5899_s14 + $0x20] sm:$0xff]  ;;  %s7196_s29 = smov (!%p678_p9, %s5622_s29), 1  ;;  %vm4376_vm4 = vcmask 1041409  }
  0x45   : > { %v942_v22 = vand.u32 %v940_v20, %v808_v16  ;;  %v693_v29 = vld [vmem:[%s5899_s14 + $0x28] sm:$0xff]  ;;  %5025 = vmatprep.subr.bf16.mxu1 %v5078_v21  ;;  %v769_v30 = vpack.c.bf16 %v691_v27, %v690_v25  ;;  %v694_v32 = vld [vmem:[%s5899_s14 + $0x30] sm:$0xff]  ;;  %v695_v33 = vld [vmem:[%s5899_s14 + $0x38] sm:$0xff]  ;;  %s4636_s22 = sshll.u32 %s7196_s29, 2  ;;  %vm4378_vm5 = vcmask 1043459   ;;  %vm4380_vm6 = vcmask 1045509  }
  0x46   : > { %v770_v31 = vpack.c.bf16 %v693_v29, %v692_v28  ;;  %4768 = vmatprep.mubr.msk.bf16.mxu0 %vm816_vm2, %v768_v26  ;;  %v696_v34 = vld [vmem:[%s5899_s14 + $0x40] sm:$0xff]  ;;  %v697_v35 = vld [vmem:[%s5899_s14 + $0x48] sm:$0xff]  ;;  %v771_v36 = vpack.c.bf16 %v695_v33, %v694_v32  ;;  %v698_v38 = vld [vmem:[%s5899_s14 + $0x50] sm:$0xff]  ;;  %vm4382_vm7 = vcmask 1047559   ;;  %s686_s25 = scalar_lea.vmem %s7188_s8, %s4636_s22 }
  0x47   : > { %4766 = vmatprep.subr.bf16.mxu0 %v942_v22  ;;  %v772_v37 = vpack.c.bf16 %v697_v35, %v696_v34  ;;  %v699_v39 = vld [vmem:[%s5899_s14 + $0x58] sm:$0xff]  ;;  %v700_v40 = vld [vmem:[%s5899_s14 + $0x60] sm:$0xff]  ;;  %v701_v41 = vld [vmem:[%s5899_s14 + $0x68] sm:$0xff] }
  0x48   : > { %4767 = vmatpush3.bf16.msra.mxu0 %v942_v22  ;;  %5029 = vmatpush3.bf16.msra.mxu1 %v5078_v21  ;;  %v773_v42 = vpack.c.bf16 %v699_v39, %v698_v38  ;;  %v774_v43 = vpack.c.bf16 %v701_v41, %v700_v40  ;;  %v702_v44 = vld [vmem:[%s5899_s14 + $0x70] sm:$0xff]  ;;  %v703_v45 = vld [vmem:[%s5899_s14 + $0x78] sm:$0xff]  ;;  %v704_v46 = vld [vmem:[%s5899_s14 + $0x80] sm:$0xff] }
  0x49   : > { %4848 = vmatprep.subr.bf16.mxu0 %v5077_v19  ;;  %v705_v47 = vld [vmem:[%s5899_s14 + $0x88] sm:$0xff]  ;;  %v775_v48 = vpack.c.bf16 %v703_v45, %v702_v44  ;;  %v706_v51 = vld [vmem:[%s5899_s14 + $0x90] sm:$0xff]  ;;  %v707_v52 = vld [vmem:[%s5899_s14 + $0x98] sm:$0xff] }
  0x4a   : > { %v5079_v49 = vld [vmem:[%s7183_s3 + $0x8] sm:$0xff]   ;;  %v776_v50 = vpack.c.bf16 %v705_v47, %v704_v46  ;;  %v708_v53 = vld [vmem:[%s5899_s14 + $0xa0] sm:$0xff]  ;;  %v777_v56 = vpack.c.bf16 %v707_v52, %v706_v51  ;;  %v710_v58 = vld [vmem:[%s5899_s14 + $0xb0] sm:$0xff] }
  0x4b   : > { %4769 = vmatmul.mubr.msk.bf16.vlgmr.msra.gmra.mxu0 %vm816_vm2, %v769_v30  ;;  %5026 = vmatprep.subr.bf16.mxu1 %v5079_v49  ;;  %v709_v54 = vld [vmem:[%s5899_s14 + $0xa8] sm:$0xff]  ;;  %v5080_v55 = vld [vmem:[%s7183_s3] sm:$0xff]   ;;  %v711_v59 = vld [vmem:[%s5899_s14 + $0xb8] sm:$0xff] }
  0x4c   : > { %4772 = vmatprep.mubr.msk.bf16.mxu0 %vm816_vm2, %v770_v31  ;;  %4849 = vmatpush3.bf16.msra.mxu0 %v5077_v19  ;;  %v778_v57 = vpack.c.bf16 %v709_v54, %v708_v53  ;;  %v712_v60 = vld [vmem:[%s5899_s14 + $0xc0] sm:$0xff]  ;;  %v713_v61 = vld [vmem:[%s5899_s14 + $0xc8] sm:$0xff]  ;;  %v779_v62 = vpack.c.bf16 %v711_v59, %v710_v58  ;;  %v714_v0 = vld [vmem:[%s5899_s14 + $0xd0] sm:$0xff] }
  0x4d   : > { %4850 = vmatprep.subr.bf16.mxu0 %v5078_v21  ;;  %5030 = vmatpush3.bf16.msra.mxu1 %v5079_v49  ;;  %v780_v63 = vpack.c.bf16 %v713_v61, %v712_v60  ;;  %v715_v1 = vld [vmem:[%s5899_s14 + $0xd8] sm:$0xff]  ;;  %v716_v2 = vld [vmem:[%s5899_s14 + $0xe0] sm:$0xff]  ;;  %v717_v3 = vld [vmem:[%s5899_s14 + $0xe8] sm:$0xff] }
  0x4e   : > { %5027 = vmatprep.subr.bf16.mxu1 %v5080_v55  ;;  %v781_v4 = vpack.c.bf16 %v715_v1, %v714_v0  ;;  %v782_v5 = vpack.c.bf16 %v717_v3, %v716_v2  ;;  %v718_v6 = vld [vmem:[%s5899_s14 + $0xf0] sm:$0xff]  ;;  %v719_v7 = vld [vmem:[%s5899_s14 + $0xf8] sm:$0xff]  ;;  %v720_v8 = vld [vmem:[%s5899_s14 + $0x100] sm:$0xff] }
  0x4f   : > { %v721_v9 = vld [vmem:[%s5899_s14 + $0x108] sm:$0xff]  ;;  %v783_v10 = vpack.c.bf16 %v719_v7, %v718_v6  ;;  %v722_v12 = vld [vmem:[%s5899_s14 + $0x110] sm:$0xff]  ;;  %v723_v13 = vld [vmem:[%s5899_s14 + $0x118] sm:$0xff] }
  0x50   : > { %4851 = vmatpush3.bf16.msra.mxu0 %v5078_v21  ;;  %v784_v11 = vpack.c.bf16 %v721_v9, %v720_v8  ;;  %v724_v14 = vld [vmem:[%s5899_s14 + $0x120] sm:$0xff]  ;;  %v725_v15 = vld [vmem:[%s5899_s14 + $0x128] sm:$0xff]  ;;  %v785_v16 = vpack.c.bf16 %v723_v13, %v722_v12  ;;  %v726_v18 = vld [vmem:[%s5899_s14 + $0x130] sm:$0xff] }
  0x51   : > { %4852 = vmatprep.subr.bf16.mxu0 %v5079_v49  ;;  %5031 = vmatpush3.bf16.msra.mxu1 %v5080_v55  ;;  %v786_v17 = vpack.c.bf16 %v725_v15, %v724_v14  ;;  %v727_v19 = vld [vmem:[%s5899_s14 + $0x138] sm:$0xff]  ;;  %v728_v20 = vld [vmem:[%s5899_s14 + $0x140] sm:$0xff]  ;;  %v729_v21 = vld [vmem:[%s5899_s14 + $0x148] sm:$0xff] }
  0x52   : > { %v787_v22 = vpack.c.bf16 %v727_v19, %v726_v18  ;;  %v788_v23 = vpack.c.bf16 %v729_v21, %v728_v20  ;;  %v730_v24 = vld [vmem:[%s5899_s14 + $0x150] sm:$0xff]  ;;  %v731_v25 = vld [vmem:[%s5899_s14 + $0x158] sm:$0xff]  ;;  %v732_v26 = vld [vmem:[%s5899_s14 + $0x160] sm:$0xff] }
  0x53   : > { %4773 = vmatmul.mubr.msk.bf16.gmra.mxu0 %vm816_vm2, %v771_v36  ;;  %v733_v27 = vld [vmem:[%s5899_s14 + $0x168] sm:$0xff]  ;;  %v789_v28 = vpack.c.bf16 %v731_v25, %v730_v24  ;;  %v734_v30 = vld [vmem:[%s5899_s14 + $0x170] sm:$0xff]  ;;  %v735_v31 = vld [vmem:[%s5899_s14 + $0x178] sm:$0xff] }
  0x54   : > { %4776 = vmatprep.mubr.msk.bf16.mxu0 %vm816_vm2, %v772_v37  ;;  %4853 = vmatpush3.bf16.msra.mxu0 %v5079_v49  ;;  %v790_v29 = vpack.c.bf16 %v733_v27, %v732_v26  ;;  %v736_v32 = vld [vmem:[%s5899_s14 + $0x180] sm:$0xff]  ;;  %v737_v33 = vld [vmem:[%s5899_s14 + $0x188] sm:$0xff]  ;;  %v791_v34 = vpack.c.bf16 %v735_v31, %v734_v30  ;;  %v738_v36 = vld [vmem:[%s5899_s14 + $0x190] sm:$0xff] }
  0x55   : > { %4854 = vmatprep.subr.bf16.mxu0 %v5080_v55  ;;  %v792_v35 = vpack.c.bf16 %v737_v33, %v736_v32  ;;  %v739_v37 = vld [vmem:[%s5899_s14 + $0x198] sm:$0xff]  ;;  %v740_v38 = vld [vmem:[%s5899_s14 + $0x1a0] sm:$0xff]  ;;  %v741_v39 = vld [vmem:[%s5899_s14 + $0x1a8] sm:$0xff] }
  0x56   : > { %v793_v40 = vpack.c.bf16 %v739_v37, %v738_v36  ;;  %v794_v41 = vpack.c.bf16 %v741_v39, %v740_v38  ;;  %v744_v44 = vld [vmem:[%s5899_s14 + $0x1c0] sm:$0xff]  ;;  %v745_v45 = vld [vmem:[%s5899_s14 + $0x1c8] sm:$0xff]  ;;  %v747_v49 = vld [vmem:[%s5899_s14 + $0x1d8] sm:$0xff] }
  0x57   : > { %v796_v47 = vpack.c.bf16 %v745_v45, %v744_v44  ;;  %v749_v51 = vld [vmem:[%s5899_s14 + $0x1e8] sm:$0xff]  ;;  %v750_v54 = vld [vmem:[%s5899_s14 + $0x1f0] sm:$0xff]  ;;  %v755_v61 = vld [vmem:[%s5899_s14 + $0x218] sm:$0xff] }
  0x58   : > { %4855 = vmatpush3.bf16.msra.mxu0 %v5080_v55  ;;  %v751_v55 = vld [vmem:[%s5899_s14 + $0x1f8] sm:$0xff]  ;;  %v754_v60 = vld [vmem:[%s5899_s14 + $0x210] sm:$0xff] }
  0x59   : > { %v799_v58 = vpack.c.bf16 %v751_v55, %v750_v54  ;;  %v801_v0 = vpack.c.bf16 %v755_v61, %v754_v60  ;;  %v758_v2 = vld [vmem:[%s5899_s14 + $0x230] sm:$0xff]  ;;  %v759_v3 = vld [vmem:[%s5899_s14 + $0x238] sm:$0xff] }
  0x5a   : > { %v803_v6 = vpack.c.bf16 %v759_v3, %v758_v2  ;;  %v762_v8 = vld [vmem:[%s5899_s14 + $0x250] sm:$0xff]  ;;  %v763_v9 = vld [vmem:[%s5899_s14 + $0x258] sm:$0xff] }
  0x5b   : > { %4777 = vmatmul.mubr.msk.bf16.gmra.mxu0 %vm816_vm2, %v773_v42  ;;  %v742_v42 = vld [vmem:[%s5899_s14 + $0x1b0] sm:$0xff]  ;;  %v805_v12 = vpack.c.bf16 %v763_v9, %v762_v8  ;;  %v767_v15 = vld [vmem:[%s5899_s14 + $0x278] sm:$0xff] }
  0x5c   : > { %4780 = vmatprep.mubr.msk.bf16.mxu0 %vm816_vm2, %v774_v43  ;;  %v743_v43 = vld [vmem:[%s5899_s14 + $0x1b8] sm:$0xff]  ;;  %v766_v14 = vld [vmem:[%s5899_s14 + $0x270] sm:$0xff] }
  0x5d   : > { %v795_v46 = vpack.c.bf16 %v743_v43, %v742_v42 }
  0x63   : > { %4781 = vmatmul.mubr.msk.bf16.gmra.mxu0 %vm816_vm2, %v775_v48  ;;  %v746_v48 = vld [vmem:[%s5899_s14 + $0x1d0] sm:$0xff] }
  0x64   : > { %4784 = vmatprep.mubr.msk.bf16.mxu0 %vm816_vm2, %v776_v50  ;;  %v748_v50 = vld [vmem:[%s5899_s14 + $0x1e0] sm:$0xff]  ;;  %v797_v52 = vpack.c.bf16 %v747_v49, %v746_v48 }
  0x65   : > { %v798_v53 = vpack.c.bf16 %v749_v51, %v748_v50 }
  0x6b   : > { %4785 = vmatmul.mubr.msk.bf16.gmra.mxu0 %vm816_vm2, %v777_v56  ;;  %v752_v56 = vld [vmem:[%s5899_s14 + $0x200] sm:$0xff] }
  0x6c   : > { %4788 = vmatprep.mubr.msk.bf16.mxu0 %vm816_vm2, %v778_v57  ;;  %v753_v57 = vld [vmem:[%s5899_s14 + $0x208] sm:$0xff] }
  0x6d   : > { %v800_v59 = vpack.c.bf16 %v753_v57, %v752_v56 }
  0x73   : > { %4789 = vmatmul.mubr.msk.bf16.gmra.mxu0 %vm816_vm2, %v779_v62  ;;  %v756_v62 = vld [vmem:[%s5899_s14 + $0x220] sm:$0xff] }
  0x74   : > { %4792 = vmatprep.mubr.msk.bf16.mxu0 %vm816_vm2, %v780_v63  ;;  %v757_v63 = vld [vmem:[%s5899_s14 + $0x228] sm:$0xff] }
  0x75   : > { %v802_v1 = vpack.c.bf16 %v757_v63, %v756_v62 }
  0x7b   : > { %4793 = vmatmul.mubr.msk.bf16.gmra.mxu0 %vm816_vm2, %v781_v4  ;;  %v760_v4 = vld [vmem:[%s5899_s14 + $0x240] sm:$0xff] }
  0x7c   : > { %4796 = vmatprep.mubr.msk.bf16.mxu0 %vm816_vm2, %v782_v5  ;;  %v761_v5 = vld [vmem:[%s5899_s14 + $0x248] sm:$0xff] }
  0x7d   : > { %v804_v7 = vpack.c.bf16 %v761_v5, %v760_v4 }
  0x83   : > { %4797 = vmatmul.mubr.msk.bf16.gmra.mxu0 %vm816_vm2, %v783_v10  ;;  %v764_v10 = vld [vmem:[%s5899_s14 + $0x260] sm:$0xff] }
  0x84   : > { %4800 = vmatprep.mubr.msk.bf16.mxu0 %vm816_vm2, %v784_v11  ;;  %v765_v11 = vld [vmem:[%s5899_s14 + $0x268] sm:$0xff] }
  0x85   : > { %v806_v13 = vpack.c.bf16 %v765_v11, %v764_v10 }
  0x8b   : > { %4801 = vmatmul.mubr.msk.bf16.gmra.mxu0 %vm816_vm2, %v785_v16  ;;  %v807_v16 = vpack.c.bf16 %v767_v15, %v766_v14 }
  0x8c   : > { %4804 = vmatprep.mubr.msk.bf16.mxu0 %vm816_vm2, %v786_v17  ;;  %v6030_v17 = vld [vmem:[%s7182_s2] ss:$0 sm:$0xff] }
  0x93   : > { %4805 = vmatmul.mubr.msk.bf16.gmra.mxu0 %vm816_vm2, %v787_v22 }
  0x94   : > { %4808 = vmatprep.mubr.msk.bf16.mxu0 %vm816_vm2, %v788_v23 }
  0x9b   : > { %4809 = vmatmul.mubr.msk.bf16.gmra.mxu0 %vm816_vm2, %v789_v28 }
  0x9c   : > { %4812 = vmatprep.mubr.msk.bf16.mxu0 %vm816_vm2, %v790_v29 }
  0xa3   : > { %4813 = vmatmul.mubr.msk.bf16.gmra.mxu0 %vm816_vm2, %v791_v34 }
  0xa4   : > { %4816 = vmatprep.mubr.msk.bf16.mxu0 %vm816_vm2, %v792_v35 }
  0xab   : > { %4817 = vmatmul.mubr.msk.bf16.gmra.mxu0 %vm816_vm2, %v793_v40 }
  0xac   : > { %4820 = vmatprep.mubr.msk.bf16.mxu0 %vm816_vm2, %v794_v41 }
  0xb3   : > { %4821 = vmatmul.mubr.msk.bf16.gmra.mxu0 %vm816_vm2, %v795_v46 }
  0xb4   : > { %4824 = vmatprep.mubr.msk.bf16.mxu0 %vm816_vm2, %v796_v47 }
  0xbb   : > { %4825 = vmatmul.mubr.msk.bf16.gmra.mxu0 %vm816_vm2, %v797_v52 }
  0xbc   : > { %4828 = vmatprep.mubr.msk.bf16.mxu0 %vm816_vm2, %v798_v53 }
  0xc3   : > { %4829 = vmatmul.mubr.msk.bf16.gmra.mxu0 %vm816_vm2, %v799_v58 }
  0xc4   : > { %4832 = vmatprep.mubr.msk.bf16.mxu0 %vm816_vm2, %v800_v59 }
  0xcb   : > { %4833 = vmatmul.mubr.msk.bf16.gmra.mxu0 %vm816_vm2, %v801_v0 }
  0xcc   : > { %4836 = vmatprep.mubr.msk.bf16.mxu0 %vm816_vm2, %v802_v1 }
  0xd3   : > { %4837 = vmatmul.mubr.msk.bf16.gmra.mxu0 %vm816_vm2, %v803_v6 }
  0xd4   : > { %4840 = vmatprep.mubr.msk.bf16.mxu0 %vm816_vm2, %v804_v7 }
  0xdb   : > { %4841 = vmatmul.mubr.msk.bf16.gmra.mxu0 %vm816_vm2, %v805_v12 }
  0xdc   : > { %4844 = vmatprep.mubr.msk.bf16.mxu0 %vm816_vm2, %v806_v13 }
  0xe3   : > { %4845 = vmatmul.mubr.msk.bf16.gmra.mxu0 %vm816_vm2, %v807_v16 }
 0x10b   : > { %v4770_v18 = vpop.f32.mrf.mxu0 }
 0x10c   : > { %v987_v19 = vadd.f32 %v4770_v18, %v6030_v17 }
 0x10d   : > { %v978_v20 = vpop.f32.mrf.mxu0 }
 0x10e   : > { %v979_v21 = vadd.f32 %v6030_v17, %v978_v20  ;;  %v1379_v22 = vmul.f32 0.70710677, %v987_v19  ;;  %v1299_v2 = vmul.f32 0.5, %v987_v19 }
 0x10f   : > { %v4771_v23 = vpop.f32.mrf.mxu0 }
 0x110   : > { %v1377_v24 = vmul.f32 0.70710677, %v979_v21  ;;  %v990_v25 = vadd.f32 %v4771_v23, %v6030_v17  ;;  %v1297_v52 = vmul.f32 0.5, %v979_v21 }
 0x111   : > { %v981_v26 = vpop.f32.mrf.mxu0 }
 0x112   : > { %5109 = verf.f32 %v1377_v24  ;;  %v1380_v27 = vmul.f32 0.70710677, %v990_v25  ;;  %v982_v28 = vadd.f32 %v6030_v17, %v981_v26  ;;  %v1300_v60 = vmul.f32 0.5, %v990_v25 }
 0x113   : > { %5111 = verf.f32 %v1379_v22  ;;  %v4774_v29 = vpop.f32.mrf.mxu0 }
 0x114   : > { %5113 = verf.f32 %v1380_v27  ;;  %v1378_v30 = vmul.f32 0.70710677, %v982_v28  ;;  %v6037_v31 = vadd.f32 %v4774_v29, %v6030_v17  ;;  %v1298_v63 = vmul.f32 0.5, %v982_v28 }
 0x115   : > { %v994_v32 = vpop.f32.mrf.mxu0 }
 0x116   : > { %5115 = verf.f32 %v1378_v30  ;;  %v995_v33 = vadd.f32 %v6030_v17, %v994_v32  ;;  %v1383_v34 = vmul.f32 0.70710677, %v6037_v31 }
 0x117   : > { %v4775_v35 = vpop.f32.mrf.mxu0 }
 0x118   : > { %v1381_v36 = vmul.f32 0.70710677, %v995_v33  ;;  %v6042_v37 = vadd.f32 %v4775_v35, %v6030_v17  ;;  %v1301_v21 = vmul.f32 0.5, %v995_v33 }
 0x119   : > { %v997_v38 = vpop.f32.mrf.mxu0 }
 0x11a   : > { %5117 = verf.f32 %v1381_v36  ;;  %v1384_v39 = vmul.f32 0.70710677, %v6042_v37  ;;  %v6046_v40 = vadd.f32 %v6030_v17, %v997_v38  ;;  %v1304_v27 = vmul.f32 0.5, %v6042_v37 }
 0x11b   : > { %5119 = verf.f32 %v1383_v34  ;;  %v4778_v41 = vpop.f32.mrf.mxu0  ;;  %v1303_v34 = vmul.f32 0.5, %v6037_v31 }
 0x11c   : > { %5121 = verf.f32 %v1384_v39  ;;  %v1382_v42 = vmul.f32 0.70710677, %v6046_v40  ;;  %v6050_v43 = vadd.f32 %v4778_v41, %v6030_v17  ;;  %v1302_v30 = vmul.f32 0.5, %v6046_v40 }
 0x11d   : > { %v1010_v44 = vpop.f32.mrf.mxu0 }
 0x11e   : > { %5123 = verf.f32 %v1382_v42  ;;  %v1387_v45 = vmul.f32 0.70710677, %v6050_v43  ;;  %v6054_v47 = vadd.f32 %v6030_v17, %v1010_v44 }
 0x11f   : > { %v5110_v46 = vpop.eup %5109  ;;  %v4779_v48 = vpop.f32.mrf.mxu0 }
 0x120   : > { %v5112_v49 = vpop.eup %5111  ;;  %v6057_v50 = vadd.f32 %v4779_v48, %v6030_v17  ;;  %v1385_v53 = vmul.f32 0.70710677, %v6054_v47  ;;  %v1537_v55 = vadd.f32 1.0, %v5110_v46  ;;  %5125 = verf.f32 %v1387_v45 }
 0x121   : > { %v5114_v51 = vpop.eup %5113  ;;  %v1013_v54 = vpop.f32.mrf.mxu0  ;;  %v1539_v59 = vadd.f32 1.0, %v5112_v49 }
 0x122   : > { %v1540_v56 = vadd.f32 1.0, %v5114_v51  ;;  %v1388_v57 = vmul.f32 0.70710677, %v6057_v50  ;;  %5127 = verf.f32 %v1385_v53  ;;  %v6062_v61 = vadd.f32 %v6030_v17, %v1013_v54 }
 0x123   : > { %v5116_v58 = vpop.eup %5115  ;;  %v4782_v62 = vpop.f32.mrf.mxu0  ;;  %v1617_v6 = vmul.f32 %v1537_v55, %v1297_v52  ;;  %v1619_v9 = vmul.f32 %v1539_v59, %v1299_v2  ;;  %v1305_v2 = vmul.f32 0.5, %v6054_v47 }
 0x124   : > { %v1538_v0 = vadd.f32 1.0, %v5116_v58  ;;  %5129 = verf.f32 %v1388_v57  ;;  %v6065_v1 = vadd.f32 %v4782_v62, %v6030_v17  ;;  %v1620_v3 = vmul.f32 %v1540_v56, %v1300_v60 }
 0x125   : > { %v1386_v4 = vmul.f32 0.70710677, %v6062_v61  ;;  %v1026_v5 = vpop.f32.mrf.mxu0  ;;  %v1307_v57 = vmul.f32 0.5, %v6050_v43 }
 0x126   : > { %v1618_v7 = vmul.f32 %v1538_v0, %v1298_v63  ;;  %v1391_v10 = vmul.f32 0.70710677, %v6065_v1  ;;  %v6070_v11 = vadd.f32 %v6030_v17, %v1026_v5  ;;  %v1698_v18 = vpack.c.bf16 %v1620_v3, %v1619_v9 }
 0x127   : > { %v5118_v8 = vpop.eup %5117  ;;  %5131 = verf.f32 %v1386_v4  ;;  %v4783_v12 = vpop.f32.mrf.mxu0  ;;  %v1308_v63 = vmul.f32 0.5, %v6057_v50  ;;  %v1306_v3 = vmul.f32 0.5, %v6062_v61 }
 0x128   : > { %v5120_v13 = vpop.eup %5119  ;;  %v6073_v14 = vadd.f32 %v4783_v12, %v6030_v17  ;;  %v1697_v15 = vpack.c.bf16 %v1618_v7, %v1617_v6  ;;  %5133 = verf.f32 %v1391_v10  ;;  %v1389_v19 = vmul.f32 0.70710677, %v6070_v11 }
 0x129   : > { %v5122_v16 = vpop.eup %5121  ;;  %v1029_v20 = vpop.f32.mrf.mxu0  ;;  %v1541_v22 = vadd.f32 1.0, %v5118_v8  ;;  %v1543_v26 = vadd.f32 1.0, %v5120_v13  ;;  %v1311_v8 = vmul.f32 0.5, %v6065_v1 }
 0x12a   : > { %v1544_v23 = vadd.f32 1.0, %v5122_v16  ;;  %v1392_v24 = vmul.f32 0.70710677, %v6073_v14  ;;  %4856 = vmatprep.mubr.msk.bf16.mxu0 %vm1776_vm3, %v1697_v15  ;;  %5135 = verf.f32 %v1389_v19  ;;  %v6080_v28 = vadd.f32 %v6030_v17, %v1029_v20 }
 0x12b   : > { %v5124_v25 = vpop.eup %5123  ;;  %v4786_v29 = vpop.f32.mrf.mxu0  ;;  %4857 = vmatmul.mubr.msk.bf16.vlgmr.msra.gmra.mxu0 %vm1776_vm3, %v1698_v18  ;;  %v1621_v38 = vmul.f32 %v1541_v22, %v1301_v21  ;;  %v1623_v42 = vmul.f32 %v1543_v26, %v1303_v34  ;;  %v1312_v12 = vmul.f32 0.5, %v6073_v14  ;;  %v1309_v20 = vmul.f32 0.5, %v6070_v11 }
 0x12c   : > { %v1542_v32 = vadd.f32 1.0, %v5124_v25  ;;  %5137 = verf.f32 %v1392_v24  ;;  %v6085_v33 = vadd.f32 %v4786_v29, %v6030_v17  ;;  %v1624_v35 = vmul.f32 %v1544_v23, %v1304_v27 }
 0x12d   : > { %v1390_v36 = vmul.f32 0.70710677, %v6080_v28  ;;  %v1042_v37 = vpop.f32.mrf.mxu0  ;;  %v5126_v41 = vpop.eup %5125  ;;  %v1310_v26 = vmul.f32 0.5, %v6080_v28 }
 0x12e   : > { %v1622_v39 = vmul.f32 %v1542_v32, %v1302_v30  ;;  %v1395_v44 = vmul.f32 0.70710677, %v6085_v33  ;;  %v6091_v40 = vadd.f32 %v6030_v17, %v1042_v37  ;;  %v1700_v51 = vpack.c.bf16 %v1624_v35, %v1623_v42 }
 0x12f   : > { %5139 = verf.f32 %v1390_v36  ;;  %v4787_v45 = vpop.f32.mrf.mxu0  ;;  %v5128_v46 = vpop.eup %5127  ;;  %v1547_v62 = vadd.f32 1.0, %v5126_v41 }
 0x130   : > { %v6094_v48 = vadd.f32 %v4787_v45, %v6030_v17  ;;  %v1699_v31 = vpack.c.bf16 %v1622_v39, %v1621_v38  ;;  %5141 = verf.f32 %v1395_v44  ;;  %v1393_v52 = vmul.f32 0.70710677, %v6091_v40  ;;  %v5081_v45 = vld [vmem:[%s7185_s5 + $0x18] sm:$0xff]  }
 0x131   : > { %v5130_v49 = vpop.eup %5129  ;;  %v1045_v53 = vpop.f32.mrf.mxu0  ;;  %v1545_v58 = vadd.f32 1.0, %v5128_v46  ;;  %v1627_v15 = vmul.f32 %v1547_v62, %v1307_v57  ;;  %v1315_v39 = vmul.f32 0.5, %v6085_v33  ;;  %v1313_v41 = vmul.f32 0.5, %v6091_v40  ;;  %4936 = vmatprep.subr.bf16.mxu0 %v5081_v45 }
 0x132   : > { %v1548_v54 = vadd.f32 1.0, %v5130_v49  ;;  %v1396_v55 = vmul.f32 0.70710677, %v6094_v48  ;;  %v6099_v56 = vadd.f32 %v6030_v17, %v1045_v53  ;;  %4860 = vmatprep.mubr.msk.bf16.mxu0 %vm1776_vm3, %v1699_v31  ;;  %5143 = verf.f32 %v1393_v52  ;;  %4937 = vmatpush3.bf16.msra.mxu0 %v5081_v45 }
 0x133   : > { %v4790_v59 = vpop.f32.mrf.mxu0  ;;  %4861 = vmatmul.mubr.msk.bf16.gmra.mxu0 %vm1776_vm3, %v1700_v51  ;;  %v1625_v50 = vmul.f32 %v1545_v58, %v1305_v2  ;;  %v1316_v49 = vmul.f32 0.5, %v6094_v48 }
 0x134   : > { %v5132_v60 = vpop.eup %5131  ;;  %5145 = verf.f32 %v1396_v55  ;;  %v1394_v0 = vmul.f32 0.70710677, %v6099_v56  ;;  %v6109_v5 = vadd.f32 %v4790_v59, %v6030_v17  ;;  %v1628_v7 = vmul.f32 %v1548_v54, %v1308_v63 }
 0x135   : > { %v1546_v4 = vadd.f32 1.0, %v5132_v60  ;;  %v1058_v43 = vpop.f32.mrf.mxu0  ;;  %v5134_v6 = vpop.eup %5133  ;;  %v1314_v60 = vmul.f32 0.5, %v6099_v56  ;;  %v5082_v56 = vld [vmem:[%s7185_s5 + $0x10] sm:$0xff]  }
 0x136   : > { %5147 = verf.f32 %v1394_v0  ;;  %v6113_v9 = vadd.f32 %v6030_v17, %v1058_v43  ;;  %v1399_v47 = vmul.f32 0.70710677, %v6109_v5  ;;  %v1551_v16 = vadd.f32 1.0, %v5134_v6  ;;  %4938 = vmatprep.subr.bf16.mxu0 %v5082_v56 }
 0x137   : > { %v1626_v10 = vmul.f32 %v1546_v4, %v1306_v3  ;;  %v4791_v61 = vpop.f32.mrf.mxu0  ;;  %v5136_v13 = vpop.eup %5135  ;;  %v1702_v24 = vpack.c.bf16 %v1628_v7, %v1627_v15  ;;  %v5083_v7 = vld [vmem:[%s7185_s5 + $0x8] sm:$0xff]   ;;  %4939 = vmatpush3.bf16.msra.mxu0 %v5082_v56 }
 0x138   : > { %v1397_v18 = vmul.f32 0.70710677, %v6113_v9  ;;  %v6119_v19 = vadd.f32 %v4791_v61, %v6030_v17  ;;  %v1549_v21 = vadd.f32 1.0, %v5136_v13  ;;  %5149 = verf.f32 %v1399_v47  ;;  %4940 = vmatprep.subr.bf16.mxu0 %v5083_v7 }
 0x139   : > { %v5138_v1 = vpop.eup %5137  ;;  %v1061_v22 = vpop.f32.mrf.mxu0  ;;  %v1701_v23 = vpack.c.bf16 %v1626_v10, %v1625_v50  ;;  %v1631_v32 = vmul.f32 %v1551_v16, %v1311_v8  ;;  %v1319_v47 = vmul.f32 0.5, %v6109_v5 }
 0x13a   : > { %v1552_v14 = vadd.f32 1.0, %v5138_v1  ;;  %5151 = verf.f32 %v1397_v18  ;;  %v1400_v25 = vmul.f32 0.70710677, %v6119_v19  ;;  %v6125_v27 = vadd.f32 %v6030_v17, %v1061_v22 }
 0x13b   : > { %4864 = vmatprep.mubr.msk.bf16.mxu0 %vm1776_vm3, %v1701_v23  ;;  %v4794_v29 = vpop.f32.mrf.mxu0  ;;  %v1629_v35 = vmul.f32 %v1549_v21, %v1309_v20  ;;  %v1320_v16 = vmul.f32 0.5, %v6119_v19  ;;  %v1317_v23 = vmul.f32 0.5, %v6113_v9  ;;  %4941 = vmatpush3.bf16.msra.mxu0 %v5083_v7 }
 0x13c   : > { %v5140_v30 = vpop.eup %5139  ;;  %v1632_v11 = vmul.f32 %v1552_v14, %v1312_v12  ;;  %5153 = verf.f32 %v1400_v25  ;;  %v6129_v34 = vadd.f32 %v4794_v29, %v6030_v17  ;;  %4865 = vmatmul.mubr.msk.bf16.gmra.mxu0 %vm1776_vm3, %v1702_v24  ;;  %v1398_v37 = vmul.f32 0.70710677, %v6125_v27 }
 0x13d   : > { %v1550_v36 = vadd.f32 1.0, %v5140_v30  ;;  %v1074_v28 = vpop.f32.mrf.mxu0  ;;  %v5142_v38 = vpop.eup %5141  ;;  %v1318_v29 = vmul.f32 0.5, %v6125_v27 }
 0x13e   : > { %v1403_v42 = vmul.f32 0.70710677, %v6129_v34  ;;  %v6137_v44 = vadd.f32 %v6030_v17, %v1074_v28  ;;  %v1555_v31 = vadd.f32 1.0, %v5142_v38  ;;  %5155 = verf.f32 %v1398_v37 }
 0x13f   : > { %v1630_v46 = vmul.f32 %v1550_v36, %v1310_v26  ;;  %v4795_v51 = vpop.f32.mrf.mxu0  ;;  %v5144_v52 = vpop.eup %5143  ;;  %v1704_v53 = vpack.c.bf16 %v1632_v11, %v1631_v32 }
 0x140   : > { %5157 = verf.f32 %v1403_v42  ;;  %v1401_v33 = vmul.f32 0.70710677, %v6137_v44  ;;  %v6145_v40 = vadd.f32 %v4795_v51, %v6030_v17  ;;  %v1553_v55 = vadd.f32 1.0, %v5144_v52 }
 0x141   : > { %v5146_v54 = vpop.eup %5145  ;;  %v1077_v57 = vpop.f32.mrf.mxu0  ;;  %v1703_v58 = vpack.c.bf16 %v1630_v46, %v1629_v35  ;;  %v1635_v63 = vmul.f32 %v1555_v31, %v1315_v39 }
 0x142   : > { %v1556_v59 = vadd.f32 1.0, %v5146_v54  ;;  %5159 = verf.f32 %v1401_v33  ;;  %v1404_v48 = vmul.f32 0.70710677, %v6145_v40  ;;  %v1633_v0 = vmul.f32 %v1553_v55, %v1313_v41 }
 0x143   : > { %v5148_v62 = vpop.eup %5147  ;;  %v6150_v2 = vadd.f32 %v6030_v17, %v1077_v57  ;;  %4868 = vmatprep.mubr.msk.bf16.mxu0 %vm1776_vm3, %v1703_v58  ;;  %v4798_v3 = vpop.f32.mrf.mxu0  ;;  %v1323_v41 = vmul.f32 0.5, %v6129_v34  ;;  %v1324_v31 = vmul.f32 0.5, %v6145_v40  ;;  %v1321_v34 = vmul.f32 0.5, %v6137_v44 }
 0x144   : > { %v1636_v4 = vmul.f32 %v1556_v59, %v1316_v49  ;;  %v1554_v43 = vadd.f32 1.0, %v5148_v62  ;;  %5161 = verf.f32 %v1404_v48  ;;  %v6154_v6 = vadd.f32 %v4798_v3, %v6030_v17  ;;  %4869 = vmatmul.mubr.msk.bf16.gmra.mxu0 %vm1776_vm3, %v1704_v53 }
 0x145   : > { %v1402_v8 = vmul.f32 0.70710677, %v6150_v2  ;;  %v1090_v50 = vpop.f32.mrf.mxu0  ;;  %v5150_v10 = vpop.eup %5149  ;;  %v1322_v48 = vmul.f32 0.5, %v6150_v2 }
 0x146   : > { %v1634_v12 = vmul.f32 %v1554_v43, %v1314_v60  ;;  %v1407_v61 = vmul.f32 0.70710677, %v6154_v6  ;;  %v1706_v15 = vpack.c.bf16 %v1636_v4, %v1635_v63  ;;  %v6168_v18 = vadd.f32 %v6030_v17, %v1090_v50 }
 0x147   : > { %v5152_v13 = vpop.eup %5151  ;;  %5163 = verf.f32 %v1402_v8  ;;  %v4799_v1 = vpop.f32.mrf.mxu0  ;;  %v1559_v20 = vadd.f32 1.0, %v5150_v10  ;;  %v1327_v50 = vmul.f32 0.5, %v6154_v6 }
 0x148   : > { %5165 = verf.f32 %v1407_v61  ;;  %v6171_v21 = vadd.f32 %v4799_v1, %v6030_v17  ;;  %v1705_v22 = vpack.c.bf16 %v1634_v12, %v1633_v0  ;;  %v1557_v24 = vadd.f32 1.0, %v5152_v13 }
 0x149   : > { %v5154_v5 = vpop.eup %5153  ;;  %v1405_v14 = vmul.f32 0.70710677, %v6168_v18  ;;  %v1093_v19 = vpop.f32.mrf.mxu0  ;;  %v1639_v35 = vmul.f32 %v1559_v20, %v1319_v47  ;;  %v1325_v6 = vmul.f32 0.5, %v6168_v18 }
 0x14a   : > { %v1560_v25 = vadd.f32 1.0, %v5154_v5  ;;  %v1408_v26 = vmul.f32 0.70710677, %v6171_v21  ;;  %4872 = vmatprep.mubr.msk.bf16.mxu0 %vm1776_vm3, %v1705_v22  ;;  %v6179_v30 = vadd.f32 %v6030_v17, %v1093_v19  ;;  %v1637_v28 = vmul.f32 %v1557_v24, %v1317_v23 }
 0x14b   : > { %5167 = verf.f32 %v1405_v14  ;;  %v4802_v32 = vpop.f32.mrf.mxu0  ;;  %v5156_v11 = vpop.eup %5155  ;;  %v1328_v47 = vmul.f32 0.5, %v6171_v21 }
 0x14c   : > { %v1640_v9 = vmul.f32 %v1560_v25, %v1320_v16  ;;  %5169 = verf.f32 %v1408_v26  ;;  %v6182_v36 = vadd.f32 %v4802_v32, %v6030_v17  ;;  %4873 = vmatmul.mubr.msk.bf16.gmra.mxu0 %vm1776_vm3, %v1706_v15  ;;  %v1558_v38 = vadd.f32 1.0, %v5156_v11 }
 0x14d   : > { %v5158_v37 = vpop.eup %5157  ;;  %v1406_v27 = vmul.f32 0.70710677, %v6179_v30  ;;  %v1106_v39 = vpop.f32.mrf.mxu0  ;;  %v1326_v26 = vmul.f32 0.5, %v6179_v30 }
 0x14e   : > { %v1411_v42 = vmul.f32 0.70710677, %v6182_v36  ;;  %v1638_v46 = vmul.f32 %v1558_v38, %v1318_v29  ;;  %v6190_v49 = vadd.f32 %v6030_v17, %v1106_v39  ;;  %v1708_v52 = vpack.c.bf16 %v1640_v9, %v1639_v35 }
 0x14f   : > { %v5160_v45 = vpop.eup %5159  ;;  %5171 = verf.f32 %v1406_v27  ;;  %v4803_v51 = vpop.f32.mrf.mxu0  ;;  %v1563_v53 = vadd.f32 1.0, %v5158_v37 }
 0x150   : > { %5173 = verf.f32 %v1411_v42  ;;  %v6193_v33 = vadd.f32 %v4803_v51, %v6030_v17  ;;  %v1561_v55 = vadd.f32 1.0, %v5160_v45  ;;  %v1409_v57 = vmul.f32 0.70710677, %v6190_v49 }
 0x151   : > { %v5162_v54 = vpop.eup %5161  ;;  %v1109_v58 = vpop.f32.mrf.mxu0  ;;  %v1707_v59 = vpack.c.bf16 %v1638_v46, %v1637_v28  ;;  %v1643_v3 = vmul.f32 %v1563_v53, %v1323_v41  ;;  %v1331_v41 = vmul.f32 0.5, %v6182_v36 }
 0x152   : > { %v1564_v40 = vadd.f32 1.0, %v5162_v54  ;;  %v1412_v60 = vmul.f32 0.70710677, %v6193_v33  ;;  %5175 = verf.f32 %v1409_v57  ;;  %v6200_v62 = vadd.f32 %v6030_v17, %v1109_v58 }
 0x153   : > { %4876 = vmatprep.mubr.msk.bf16.mxu0 %vm1776_vm3, %v1707_v59  ;;  %v4806_v63 = vpop.f32.mrf.mxu0  ;;  %v1641_v56 = vmul.f32 %v1561_v55, %v1321_v34  ;;  %v1332_v42 = vmul.f32 0.5, %v6193_v33  ;;  %v1329_v55 = vmul.f32 0.5, %v6190_v49 }
 0x154   : > { %v5164_v0 = vpop.eup %5163  ;;  %v1644_v44 = vmul.f32 %v1564_v40, %v1324_v31  ;;  %5177 = verf.f32 %v1412_v60  ;;  %v6204_v4 = vadd.f32 %v4806_v63, %v6030_v17  ;;  %4877 = vmatmul.mubr.msk.bf16.gmra.mxu0 %vm1776_vm3, %v1708_v52  ;;  %v1410_v2 = vmul.f32 0.70710677, %v6200_v62 }
 0x155   : > { %v5166_v43 = vpop.eup %5165  ;;  %v1562_v7 = vadd.f32 1.0, %v5164_v0  ;;  %v1122_v8 = vpop.f32.mrf.mxu0  ;;  %v1330_v40 = vmul.f32 0.5, %v6200_v62 }
 0x156   : > { %v1415_v10 = vmul.f32 0.70710677, %v6204_v4  ;;  %5179 = verf.f32 %v1410_v2  ;;  %v6212_v61 = vadd.f32 %v6030_v17, %v1122_v8  ;;  %v1710_v16 = vpack.c.bf16 %v1644_v44, %v1643_v3 }
 0x157   : > { %v1642_v12 = vmul.f32 %v1562_v7, %v1322_v48  ;;  %v4807_v13 = vpop.f32.mrf.mxu0  ;;  %v1567_v1 = vadd.f32 1.0, %v5166_v43  ;;  %v1335_v2 = vmul.f32 0.5, %v6204_v4 }
 0x158   : > { %v5168_v15 = vpop.eup %5167  ;;  %5181 = verf.f32 %v1415_v10  ;;  %v6215_v20 = vadd.f32 %v4807_v13, %v6030_v17  ;;  %v1413_v23 = vmul.f32 0.70710677, %v6212_v61  ;;  %v1333_v8 = vmul.f32 0.5, %v6212_v61 }
 0x159   : > { %v5170_v22 = vpop.eup %5169  ;;  %v1565_v5 = vadd.f32 1.0, %v5168_v15  ;;  %v1125_v24 = vpop.f32.mrf.mxu0  ;;  %v1709_v21 = vpack.c.bf16 %v1642_v12, %v1641_v56  ;;  %v1647_v11 = vmul.f32 %v1567_v1, %v1327_v50 }
 0x15a   : > { %v1568_v14 = vadd.f32 1.0, %v5170_v22  ;;  %v1416_v19 = vmul.f32 0.70710677, %v6215_v20  ;;  %v6221_v25 = vadd.f32 %v6030_v17, %v1125_v24  ;;  %5183 = verf.f32 %v1413_v23 }
 0x15b   : > { %4880 = vmatprep.mubr.msk.bf16.mxu0 %vm1776_vm3, %v1709_v21  ;;  %v4810_v29 = vpop.f32.mrf.mxu0  ;;  %v1645_v37 = vmul.f32 %v1565_v5, %v1325_v6  ;;  %v1336_v1 = vmul.f32 0.5, %v6215_v20 }
 0x15c   : > { %v5172_v32 = vpop.eup %5171  ;;  %v1648_v18 = vmul.f32 %v1568_v14, %v1328_v47  ;;  %5185 = verf.f32 %v1416_v19  ;;  %v1414_v35 = vmul.f32 0.70710677, %v6221_v25  ;;  %4881 = vmatmul.mubr.msk.bf16.gmra.mxu0 %vm1776_vm3, %v1710_v16  ;;  %v6228_v38 = vadd.f32 %v4810_v29, %v6030_v17 }
 0x15d   : > { %v5174_v9 = vpop.eup %5173  ;;  %v1566_v28 = vadd.f32 1.0, %v5172_v32  ;;  %v1138_v27 = vpop.f32.mrf.mxu0  ;;  %v1334_v21 = vmul.f32 0.5, %v6221_v25 }
 0x15e   : > { %5187 = verf.f32 %v1414_v35  ;;  %v6231_v30 = vadd.f32 %v6030_v17, %v1138_v27  ;;  %v1419_v45 = vmul.f32 0.70710677, %v6228_v38  ;;  %v1712_v51 = vpack.c.bf16 %v1648_v18, %v1647_v11 }
 0x15f   : > { %v1646_v39 = vmul.f32 %v1566_v28, %v1326_v26  ;;  %v4811_v46 = vpop.f32.mrf.mxu0  ;;  %v5176_v31 = vpop.eup %5175  ;;  %v1571_v52 = vadd.f32 1.0, %v5174_v9  ;;  %v1339_v27 = vmul.f32 0.5, %v6228_v38 }
 0x160   : > { %v1417_v53 = vmul.f32 0.70710677, %v6231_v30  ;;  %v6238_v54 = vadd.f32 %v4811_v46, %v6030_v17  ;;  %v1569_v57 = vadd.f32 1.0, %v5176_v31  ;;  %5189 = verf.f32 %v1419_v45 }
 0x161   : > { %v5178_v34 = vpop.eup %5177  ;;  %v1141_v58 = vpop.f32.mrf.mxu0  ;;  %v1711_v36 = vpack.c.bf16 %v1646_v39, %v1645_v37  ;;  %v1651_v0 = vmul.f32 %v1571_v52, %v1331_v41  ;;  %v1337_v38 = vmul.f32 0.5, %v6231_v30 }
 0x162   : > { %v1572_v59 = vadd.f32 1.0, %v5178_v34  ;;  %5191 = verf.f32 %v1417_v53  ;;  %v1420_v33 = vmul.f32 0.70710677, %v6238_v54  ;;  %v6244_v60 = vadd.f32 %v6030_v17, %v1141_v58 }
 0x163   : > { %4884 = vmatprep.mubr.msk.bf16.mxu0 %vm1776_vm3, %v1711_v36  ;;  %v4814_v48 = vpop.f32.mrf.mxu0  ;;  %v5180_v63 = vpop.eup %5179  ;;  %v1649_v43 = vmul.f32 %v1569_v57, %v1329_v55  ;;  %v1340_v45 = vmul.f32 0.5, %v6238_v54 }
 0x164   : > { %v1652_v3 = vmul.f32 %v1572_v59, %v1332_v42  ;;  %5193 = verf.f32 %v1420_v33  ;;  %v6248_v49 = vadd.f32 %v4814_v48, %v6030_v17  ;;  %4885 = vmatmul.mubr.msk.bf16.gmra.mxu0 %vm1776_vm3, %v1712_v51  ;;  %v1570_v56 = vadd.f32 1.0, %v5180_v63 }
 0x165   : > { %v5182_v44 = vpop.eup %5181  ;;  %v1418_v62 = vmul.f32 0.70710677, %v6244_v60  ;;  %v1154_v7 = vpop.f32.mrf.mxu0  ;;  %v1338_v59 = vmul.f32 0.5, %v6244_v60 }
 0x166   : > { %v1423_v50 = vmul.f32 0.70710677, %v6248_v49  ;;  %v1650_v10 = vmul.f32 %v1570_v56, %v1330_v40  ;;  %v1575_v12 = vadd.f32 1.0, %v5182_v44  ;;  %v6256_v47 = vadd.f32 %v6030_v17, %v1154_v7 }
 0x167   : > { %5195 = verf.f32 %v1418_v62  ;;  %v4815_v13 = vpop.f32.mrf.mxu0  ;;  %v5184_v15 = vpop.eup %5183  ;;  %v1714_v16 = vpack.c.bf16 %v1652_v3, %v1651_v0  ;;  %v1343_v60 = vmul.f32 0.5, %v6248_v49 }
 0x168   : > { %5197 = verf.f32 %v1423_v50  ;;  %v1166_v22 = vadd.f32 %v4815_v13, %v6030_v17  ;;  %v1573_v4 = vadd.f32 1.0, %v5184_v15  ;;  %v1421_v61 = vmul.f32 0.70710677, %v6256_v47 }
 0x169   : > { %v5186_v6 = vpop.eup %5185  ;;  %v1157_v5 = vpop.f32.mrf.mxu0  ;;  %v1713_v23 = vpack.c.bf16 %v1650_v10, %v1649_v43  ;;  %v1655_v29 = vmul.f32 %v1575_v12, %v1335_v2 }
 0x16a   : > { %v1576_v24 = vadd.f32 1.0, %v5186_v6  ;;  %v1424_v14 = vmul.f32 0.70710677, %v1166_v22  ;;  %v6263_v19 = vadd.f32 %v6030_v17, %v1157_v5  ;;  %5199 = verf.f32 %v1421_v61 }
 0x16b   : > { %v5188_v26 = vpop.eup %5187  ;;  %4888 = vmatprep.mubr.msk.bf16.mxu0 %vm1776_vm3, %v1713_v23  ;;  %v4818_v20 = vpop.f32.mrf.mxu0  ;;  %v1653_v32 = vmul.f32 %v1573_v4, %v1333_v8  ;;  %v1344_v2 = vmul.f32 0.5, %v1166_v22  ;;  %v1341_v6 = vmul.f32 0.5, %v6256_v47 }
 0x16c   : > { %v1656_v11 = vmul.f32 %v1576_v24, %v1336_v1  ;;  %v1574_v18 = vadd.f32 1.0, %v5188_v26  ;;  %5201 = verf.f32 %v1424_v14  ;;  %4889 = vmatmul.mubr.msk.bf16.gmra.mxu0 %vm1776_vm3, %v1714_v16  ;;  %v1422_v35 = vmul.f32 0.70710677, %v6263_v19 }
 0x16d   : > { %v6269_v25 = vadd.f32 %v4818_v20, %v6030_v17  ;;  %v1170_v9 = vpop.f32.mrf.mxu0  ;;  %v5190_v37 = vpop.eup %5189 }
 0x16e   : > { %v1654_v28 = vmul.f32 %v1574_v18, %v1334_v21  ;;  %v6273_v39 = vadd.f32 %v6030_v17, %v1170_v9  ;;  %v1716_v42 = vpack.c.bf16 %v1656_v11, %v1655_v29  ;;  %5203 = verf.f32 %v1422_v35 }
 0x16f   : > { %v5192_v41 = vpop.eup %5191  ;;  %v1427_v46 = vmul.f32 0.70710677, %v6269_v25  ;;  %v4819_v31 = vpop.f32.mrf.mxu0  ;;  %v1579_v51 = vadd.f32 1.0, %v5190_v37  ;;  %v1342_v21 = vmul.f32 0.5, %v6263_v19 }
 0x170   : > { %v1425_v52 = vmul.f32 0.70710677, %v6273_v39  ;;  %v6279_v53 = vadd.f32 %v4819_v31, %v6030_v17  ;;  %v1715_v34 = vpack.c.bf16 %v1654_v28, %v1653_v32  ;;  %v1577_v58 = vadd.f32 1.0, %v5192_v41 }
 0x171   : > { %v5194_v55 = vpop.eup %5193  ;;  %5205 = verf.f32 %v1427_v46  ;;  %v1173_v57 = vpop.f32.mrf.mxu0  ;;  %v1659_v63 = vmul.f32 %v1579_v51, %v1339_v27  ;;  %v1347_v27 = vmul.f32 0.5, %v6269_v25 }
 0x172   : > { %v1580_v36 = vadd.f32 1.0, %v5194_v55  ;;  %5207 = verf.f32 %v1425_v52  ;;  %v1428_v54 = vmul.f32 0.70710677, %v6279_v53  ;;  %4892 = vmatprep.mubr.msk.bf16.mxu0 %vm1776_vm3, %v1715_v34  ;;  %v6286_v33 = vadd.f32 %v6030_v17, %v1173_v57 }
 0x173   : > { %v4822_v40 = vpop.f32.mrf.mxu0  ;;  %v1657_v62 = vmul.f32 %v1577_v58, %v1337_v38  ;;  %v1348_v41 = vmul.f32 0.5, %v6279_v53  ;;  %v1345_v55 = vmul.f32 0.5, %v6273_v39 }
 0x174   : > { %v5196_v48 = vpop.eup %5195  ;;  %v1660_v0 = vmul.f32 %v1580_v36, %v1340_v45  ;;  %5209 = verf.f32 %v1428_v54  ;;  %v6289_v30 = vadd.f32 %v4822_v40, %v6030_v17  ;;  %4893 = vmatmul.mubr.msk.bf16.gmra.mxu0 %vm1776_vm3, %v1716_v42  ;;  %v1426_v44 = vmul.f32 0.70710677, %v6286_v33 }
 0x175   : > { %v5198_v3 = vpop.eup %5197  ;;  %v1186_v43 = vpop.f32.mrf.mxu0  ;;  %v1578_v56 = vadd.f32 1.0, %v5196_v48  ;;  %v1346_v53 = vmul.f32 0.5, %v6286_v33 }
 0x176   : > { %v1431_v7 = vmul.f32 0.70710677, %v6289_v30  ;;  %5211 = verf.f32 %v1426_v44  ;;  %v6296_v8 = vadd.f32 %v6030_v17, %v1186_v43  ;;  %v1718_v13 = vpack.c.bf16 %v1660_v0, %v1659_v63 }
 0x177   : > { %v4823_v50 = vpop.f32.mrf.mxu0  ;;  %v1658_v10 = vmul.f32 %v1578_v56, %v1338_v59  ;;  %v5200_v12 = vpop.eup %5199  ;;  %v1583_v15 = vadd.f32 1.0, %v5198_v3  ;;  %v1351_v56 = vmul.f32 0.5, %v6289_v30 }
 0x178   : > { %5213 = verf.f32 %v1431_v7  ;;  %v6299_v16 = vadd.f32 %v4823_v50, %v6030_v17  ;;  %v1581_v49 = vadd.f32 1.0, %v5200_v12  ;;  %v1429_v4 = vmul.f32 0.70710677, %v6296_v8 }
 0x179   : > { %v5202_v1 = vpop.eup %5201  ;;  %v1189_v22 = vpop.f32.mrf.mxu0  ;;  %v1717_v61 = vpack.c.bf16 %v1658_v10, %v1657_v62  ;;  %v1663_v29 = vmul.f32 %v1583_v15, %v1343_v60  ;;  %v5084_v60 = vld [vmem:[%s7185_s5] sm:$0xff]  }
 0x17a   : > { %v1584_v5 = vadd.f32 1.0, %v5202_v1  ;;  %v1432_v23 = vmul.f32 0.70710677, %v6299_v16  ;;  %v6305_v24 = vadd.f32 %v6030_v17, %v1189_v22  ;;  %5215 = verf.f32 %v1429_v4  ;;  %4942 = vmatprep.subr.bf16.mxu0 %v5084_v60 }
 0x17b   : > { %4896 = vmatprep.mubr.msk.bf16.mxu1 %vm1776_vm3, %v1717_v61  ;;  %v4826_v14 = vpop.f32.mrf.mxu0  ;;  %v5204_v26 = vpop.eup %5203  ;;  %v1661_v32 = vmul.f32 %v1581_v49, %v1341_v6  ;;  %4943 = vmatpush3.bf16.msra.mxu0 %v5084_v60 }
 0x17c   : > { %v1664_v47 = vmul.f32 %v1584_v5, %v1344_v2  ;;  %5217 = verf.f32 %v1432_v23  ;;  %v1430_v20 = vmul.f32 0.70710677, %v6305_v24  ;;  %4897 = vmatmul.mubr.msk.bf16.vlgmr.msra.gmra.mxu1 %vm1776_vm3, %v1718_v13  ;;  %v1582_v11 = vadd.f32 1.0, %v5204_v26  ;;  %v6345_v2 = vld [vmem:[%s7182_s2] ss:$0 sm:$0xff] }
 0x17d   : > { %v6312_v18 = vadd.f32 %v4826_v14, %v6030_v17  ;;  %v1202_v35 = vpop.f32.mrf.mxu0  ;;  %v1350_v5 = vmul.f32 0.5, %v6305_v24 }
 0x17e   : > { %v5206_v9 = vpop.eup %5205  ;;  %5219 = verf.f32 %v1430_v20  ;;  %v6315_v19 = vadd.f32 %v6030_v17, %v1202_v35  ;;  %v1662_v28 = vmul.f32 %v1582_v11, %v1342_v21  ;;  %v1720_v46 = vpack.c.bf16 %v1664_v47, %v1663_v29 }
 0x17f   : > { %v5208_v37 = vpop.eup %5207  ;;  %v1435_v42 = vmul.f32 0.70710677, %v6312_v18  ;;  %v4827_v45 = vpop.f32.mrf.mxu0  ;;  %v1587_v31 = vadd.f32 1.0, %v5206_v9 }
 0x180   : > { %v1433_v51 = vmul.f32 0.70710677, %v6315_v19  ;;  %v6322_v52 = vadd.f32 %v4827_v45, %v6030_v17  ;;  %v1585_v38 = vadd.f32 1.0, %v5208_v37  ;;  %v1719_v58 = vpack.c.bf16 %v1662_v28, %v1661_v32 }
 0x181   : > { %v5210_v34 = vpop.eup %5209  ;;  %5221 = verf.f32 %v1435_v42  ;;  %v1205_v57 = vpop.f32.mrf.mxu0  ;;  %v1667_v48 = vmul.f32 %v1587_v31, %v1347_v27  ;;  %v1355_v27 = vmul.f32 0.5, %v6312_v18 }
 0x182   : > { %v1588_v25 = vadd.f32 1.0, %v5210_v34  ;;  %5223 = verf.f32 %v1433_v51  ;;  %v1436_v36 = vmul.f32 0.70710677, %v6322_v52  ;;  %v6328_v54 = vadd.f32 %v6030_v17, %v1205_v57  ;;  %4900 = vmatprep.mubr.msk.bf16.mxu1 %vm1776_vm3, %v1719_v58 }
 0x183   : > { %v4830_v59 = vpop.f32.mrf.mxu0  ;;  %v5212_v40 = vpop.eup %5211  ;;  %v1665_v3 = vmul.f32 %v1585_v38, %v1345_v55  ;;  %v1356_v38 = vmul.f32 0.5, %v6322_v52 }
 0x184   : > { %v1668_v63 = vmul.f32 %v1588_v25, %v1348_v41  ;;  %v6332_v39 = vadd.f32 %v4830_v59, %v6030_v17  ;;  %4901 = vmatmul.mubr.msk.bf16.gmra.mxu1 %vm1776_vm3, %v1720_v46  ;;  %v1586_v44 = vadd.f32 1.0, %v5212_v40  ;;  %5225 = verf.f32 %v1436_v36 }
 0x185   : > { %v5214_v0 = vpop.eup %5213  ;;  %v1434_v33 = vmul.f32 0.70710677, %v6328_v54  ;;  %v1218_v43 = vpop.f32.mrf.mxu0  ;;  %v1352_v17 = vmul.f32 0.5, %v6299_v16  ;;  %v1349_v16 = vmul.f32 0.5, %v6296_v8  ;;  %v1353_v41 = vmul.f32 0.5, %v6315_v19 }
 0x186   : > { %v1439_v62 = vmul.f32 0.70710677, %v6332_v39  ;;  %v1666_v7 = vmul.f32 %v1586_v44, %v1346_v53  ;;  %v6348_v50 = vadd.f32 %v6345_v2, %v1218_v43  ;;  %v1722_v12 = vpack.c.bf16 %v1668_v63, %v1667_v48 }
 0x187   : > { %5227 = verf.f32 %v1434_v33  ;;  %v4831_v10 = vpop.f32.mrf.mxu0  ;;  %v5216_v30 = vpop.eup %5215  ;;  %v1591_v13 = vadd.f32 1.0, %v5214_v0  ;;  %v1354_v53 = vmul.f32 0.5, %v6328_v54  ;;  %v1359_v60 = vmul.f32 0.5, %v6332_v39 }
 0x188   : > { %5229 = verf.f32 %v1439_v62  ;;  %v6351_v15 = vadd.f32 %v6345_v2, %v4831_v10  ;;  %v1589_v6 = vadd.f32 1.0, %v5216_v30  ;;  %v1437_v49 = vmul.f32 0.70710677, %v6348_v50 }
 0x189   : > { %v5218_v1 = vpop.eup %5217  ;;  %v1221_v4 = vpop.f32.mrf.mxu0  ;;  %v1721_v22 = vpack.c.bf16 %v1666_v7, %v1665_v3  ;;  %v1671_v8 = vmul.f32 %v1591_v13, %v1351_v56 }
 0x18a   : > { %v1592_v61 = vadd.f32 1.0, %v5218_v1  ;;  %v1440_v23 = vmul.f32 0.70710677, %v6351_v15  ;;  %v6358_v21 = vadd.f32 %v6345_v2, %v1221_v4  ;;  %5231 = verf.f32 %v1437_v49 }
 0x18b   : > { %v5220_v14 = vpop.eup %5219  ;;  %4904 = vmatprep.mubr.msk.bf16.mxu1 %vm1776_vm3, %v1721_v22  ;;  %v4834_v26 = vpop.f32.mrf.mxu0  ;;  %v1669_v20 = vmul.f32 %v1589_v6, %v1349_v16  ;;  %v1360_v7 = vmul.f32 0.5, %v6351_v15  ;;  %v1357_v16 = vmul.f32 0.5, %v6348_v50 }
 0x18c   : > { %v1672_v29 = vmul.f32 %v1592_v61, %v1352_v17  ;;  %v1590_v47 = vadd.f32 1.0, %v5220_v14  ;;  %5233 = verf.f32 %v1440_v23  ;;  %4905 = vmatmul.mubr.msk.bf16.gmra.mxu1 %vm1776_vm3, %v1722_v12  ;;  %v1438_v32 = vmul.f32 0.70710677, %v6358_v21 }
 0x18d   : > { %v6364_v24 = vadd.f32 %v6345_v2, %v4834_v26  ;;  %v1234_v11 = vpop.f32.mrf.mxu0  ;;  %v1358_v61 = vmul.f32 0.5, %v6358_v21 }
 0x18e   : > { %v5222_v35 = vpop.eup %5221  ;;  %v1670_v9 = vmul.f32 %v1590_v47, %v1350_v5  ;;  %v6367_v37 = vadd.f32 %v6345_v2, %v1234_v11  ;;  %5235 = verf.f32 %v1438_v32  ;;  %v1724_v46 = vpack.c.bf16 %v1672_v29, %v1671_v8 }
 0x18f   : > { %v5224_v28 = vpop.eup %5223  ;;  %v1443_v42 = vmul.f32 0.70710677, %v6364_v24  ;;  %v4835_v45 = vpop.f32.mrf.mxu0  ;;  %v1595_v31 = vadd.f32 1.0, %v5222_v35 }
 0x190   : > { %v1441_v51 = vmul.f32 0.70710677, %v6367_v37  ;;  %v6374_v34 = vadd.f32 %v6345_v2, %v4835_v45  ;;  %v1593_v55 = vadd.f32 1.0, %v5224_v28  ;;  %v1723_v58 = vpack.c.bf16 %v1670_v9, %v1669_v20 }
 0x191   : > { %5237 = verf.f32 %v1443_v42  ;;  %v1237_v57 = vpop.f32.mrf.mxu0  ;;  %v5226_v18 = vpop.eup %5225  ;;  %v1675_v48 = vmul.f32 %v1595_v31, %v1355_v27  ;;  %v1363_v28 = vmul.f32 0.5, %v6364_v24 }
 0x192   : > { %5239 = verf.f32 %v1441_v51  ;;  %v1444_v19 = vmul.f32 0.70710677, %v6374_v34  ;;  %v1596_v25 = vadd.f32 1.0, %v5226_v18  ;;  %v6380_v36 = vadd.f32 %v6345_v2, %v1237_v57  ;;  %4908 = vmatprep.mubr.msk.bf16.mxu1 %vm1776_vm3, %v1723_v58 }
 0x193   : > { %v4838_v59 = vpop.f32.mrf.mxu0  ;;  %v1673_v0 = vmul.f32 %v1593_v55, %v1353_v41  ;;  %v1364_v27 = vmul.f32 0.5, %v6374_v34  ;;  %v1361_v55 = vmul.f32 0.5, %v6367_v37 }
 0x194   : > { %v5228_v40 = vpop.eup %5227  ;;  %5241 = verf.f32 %v1444_v19  ;;  %v6384_v52 = vadd.f32 %v6345_v2, %v4838_v59  ;;  %4909 = vmatmul.mubr.msk.bf16.gmra.mxu1 %vm1776_vm3, %v1724_v46  ;;  %v1676_v3 = vmul.f32 %v1596_v25, %v1356_v38  ;;  %v1442_v54 = vmul.f32 0.70710677, %v6380_v36 }
 0x195   : > { %v5230_v63 = vpop.eup %5229  ;;  %v1594_v44 = vadd.f32 1.0, %v5228_v40  ;;  %v1250_v33 = vpop.f32.mrf.mxu0  ;;  %v1362_v19 = vmul.f32 0.5, %v6380_v36 }
 0x196   : > { %v1447_v43 = vmul.f32 0.70710677, %v6384_v52  ;;  %v6390_v56 = vadd.f32 %v6345_v2, %v1250_v33  ;;  %5243 = verf.f32 %v1442_v54  ;;  %v1726_v30 = vpack.c.bf16 %v1676_v3, %v1675_v48 }
 0x197   : > { %v1674_v62 = vmul.f32 %v1594_v44, %v1354_v53  ;;  %v4839_v17 = vpop.f32.mrf.mxu0  ;;  %v5232_v10 = vpop.eup %5231  ;;  %v1599_v12 = vadd.f32 1.0, %v5230_v63  ;;  %v1367_v36 = vmul.f32 0.5, %v6384_v52 }
 0x198   : > { %5245 = verf.f32 %v1447_v43  ;;  %v1445_v13 = vmul.f32 0.70710677, %v6390_v56  ;;  %v1597_v6 = vadd.f32 1.0, %v5232_v10  ;;  %v6397_v49 = vadd.f32 %v6345_v2, %v4839_v17 }
 0x199   : > { %v5234_v1 = vpop.eup %5233  ;;  %v1253_v4 = vpop.f32.mrf.mxu0  ;;  %v1725_v22 = vpack.c.bf16 %v1674_v62, %v1673_v0  ;;  %v1679_v50 = vmul.f32 %v1599_v12, %v1359_v60  ;;  %v1365_v33 = vmul.f32 0.5, %v6390_v56 }
 0x19a   : > { %v1600_v39 = vadd.f32 1.0, %v5234_v1  ;;  %5247 = verf.f32 %v1445_v13  ;;  %v6400_v15 = vadd.f32 %v6345_v2, %v1253_v4  ;;  %v1448_v5 = vmul.f32 0.70710677, %v6397_v49 }
 0x19b   : > { %4912 = vmatprep.mubr.msk.bf16.mxu1 %vm1776_vm3, %v1725_v22  ;;  %v4842_v23 = vpop.f32.mrf.mxu0  ;;  %v5236_v14 = vpop.eup %5235  ;;  %v1677_v47 = vmul.f32 %v1597_v6, %v1357_v16  ;;  %v1368_v1 = vmul.f32 0.5, %v6397_v49 }
 0x19c   : > { %v1680_v26 = vmul.f32 %v1600_v39, %v1360_v7  ;;  %v1446_v8 = vmul.f32 0.70710677, %v6400_v15  ;;  %v6407_v29 = vadd.f32 %v6345_v2, %v4842_v23  ;;  %4913 = vmatmul.mubr.msk.bf16.gmra.mxu1 %vm1776_vm3, %v1726_v30  ;;  %v1598_v20 = vadd.f32 1.0, %v5236_v14 }
 0x19d   : > { %5249 = verf.f32 %v1448_v5  ;;  %v1266_v32 = vpop.f32.mrf.mxu0  ;;  %v1366_v56 = vmul.f32 0.5, %v6400_v15 }
 0x19e   : > { %v5238_v21 = vpop.eup %5237  ;;  %5251 = verf.f32 %v1446_v8  ;;  %v1451_v11 = vmul.f32 0.70710677, %v6407_v29  ;;  %v1678_v9 = vmul.f32 %v1598_v20, %v1358_v61  ;;  %v6414_v41 = vadd.f32 %v6345_v2, %v1266_v32 }
 0x19f   : > { %v5240_v35 = vpop.eup %5239  ;;  %v4843_v42 = vpop.f32.mrf.mxu0  ;;  %v1728_v45 = vpack.c.bf16 %v1680_v26, %v1679_v50  ;;  %v1603_v46 = vadd.f32 1.0, %v5238_v21  ;;  %v1371_v15 = vmul.f32 0.5, %v6407_v29 }
 0x1a0   : > { %5253 = verf.f32 %v1451_v11  ;;  %v6417_v31 = vadd.f32 %v6345_v2, %v4843_v42  ;;  %v1601_v38 = vadd.f32 1.0, %v5240_v35  ;;  %v1449_v57 = vmul.f32 0.70710677, %v6414_v41 }
 0x1a1   : > { %v5242_v51 = vpop.eup %5241  ;;  %v1269_v58 = vpop.f32.mrf.mxu0  ;;  %v1727_v24 = vpack.c.bf16 %v1678_v9, %v1677_v47  ;;  %v1683_v40 = vmul.f32 %v1603_v46, %v1363_v28  ;;  %v1369_v9 = vmul.f32 0.5, %v6414_v41 }
 0x1a2   : > { %v1604_v18 = vadd.f32 1.0, %v5242_v51  ;;  %v1452_v34 = vmul.f32 0.70710677, %v6417_v31  ;;  %5255 = verf.f32 %v1449_v57  ;;  %v1270_v25 = vadd.f32 %v6345_v2, %v1269_v58 }
 0x1a3   : > { %4916 = vmatprep.mubr.msk.bf16.mxu1 %vm1776_vm3, %v1727_v24  ;;  %v4846_v53 = vpop.f32.mrf.mxu0  ;;  %v5244_v59 = vpop.eup %5243  ;;  %v1681_v0 = vmul.f32 %v1601_v38, %v1361_v55  ;;  %v1372_v21 = vmul.f32 0.5, %v6417_v31 }
 0x1a4   : > { %v1684_v48 = vmul.f32 %v1604_v18, %v1364_v27  ;;  %5257 = verf.f32 %v1452_v34  ;;  %v1291_v37 = vadd.f32 %v6345_v2, %v4846_v53  ;;  %4917 = vmatmul.mubr.msk.bf16.gmra.mxu1 %vm1776_vm3, %v1728_v45  ;;  %v1602_v3 = vadd.f32 1.0, %v5244_v59 }
 0x1a5   : > { %v5246_v63 = vpop.eup %5245  ;;  %v1450_v44 = vmul.f32 0.70710677, %v1270_v25  ;;  %v1282_v54 = vpop.f32.mrf.mxu0  ;;  %v1370_v42 = vmul.f32 0.5, %v1270_v25 }
 0x1a6   : > { %v1455_v43 = vmul.f32 0.70710677, %v1291_v37  ;;  %v1682_v60 = vmul.f32 %v1602_v3, %v1362_v19  ;;  %v1607_v7 = vadd.f32 1.0, %v5246_v63  ;;  %v1283_v17 = vadd.f32 %v6345_v2, %v1282_v54 }
 0x1a7   : > { %v5248_v62 = vpop.eup %5247  ;;  %5259 = verf.f32 %v1450_v44  ;;  %v4847_v10 = vpop.f32.mrf.mxu0  ;;  %v1730_v30 = vpack.c.bf16 %v1684_v48, %v1683_v40  ;;  %v1375_v58 = vmul.f32 0.5, %v1291_v37 }
 0x1a8   : > { %v1605_v12 = vadd.f32 1.0, %v5248_v62  ;;  %5261 = verf.f32 %v1455_v43  ;;  %v1294_v13 = vadd.f32 %v6345_v2, %v4847_v10  ;;  %v1453_v16 = vmul.f32 0.70710677, %v1283_v17 }
 0x1a9   : > { %v1285_v6 = vpop.f32.mrf.mxu0  ;;  %v1729_v52 = vpack.c.bf16 %v1682_v60, %v1681_v0  ;;  %v1687_v5 = vmul.f32 %v1607_v7, %v1367_v36  ;;  %v1373_v34 = vmul.f32 0.5, %v1283_v17 }
 0x1aa   : > { %v5250_v4 = vpop.eup %5249  ;;  %v1456_v22 = vmul.f32 0.70710677, %v1294_v13  ;;  %v1286_v39 = vadd.f32 %v6345_v2, %v1285_v6  ;;  %5263 = verf.f32 %v1453_v16  ;;  %v1685_v14 = vmul.f32 %v1605_v12, %v1365_v33  ;;  %v6448_v33 = vld [vmem:[%s7184_s4] ss:$0 sm:$0xff] }
 0x1ab   : > { %v5252_v61 = vpop.eup %5251  ;;  %v1608_v23 = vadd.f32 1.0, %v5250_v4  ;;  %4920 = vmatprep.mubr.msk.bf16.mxu1 %vm1776_vm3, %v1729_v52  ;;  %v1376_v41 = vmul.f32 0.5, %v1294_v13 }
 0x1ac   : > { %v1606_v50 = vadd.f32 1.0, %v5252_v61  ;;  %5265 = verf.f32 %v1456_v22  ;;  %v1454_v26 = vmul.f32 0.70710677, %v1286_v39  ;;  %4921 = vmatmul.mubr.msk.bf16.gmra.mxu1 %vm1776_vm3, %v1730_v30  ;;  %v1374_v25 = vmul.f32 0.5, %v1286_v39 }
 0x1ad   : > { %v5254_v49 = vpop.eup %5253  ;;  %v1688_v8 = vmul.f32 %v1608_v23, %v1368_v1 }
 0x1ae   : > { %v1686_v47 = vmul.f32 %v1606_v50, %v1366_v56  ;;  %5267 = verf.f32 %v1454_v26  ;;  %v1611_v32 = vadd.f32 1.0, %v5254_v49 }
 0x1af   : > { %v5256_v20 = vpop.eup %5255  ;;  %v1732_v2 = vpack.c.bf16 %v1688_v8, %v1687_v5 }
 0x1b0   : > { %v1731_v11 = vpack.c.bf16 %v1686_v47, %v1685_v14  ;;  %v1609_v28 = vadd.f32 1.0, %v5256_v20  ;;  %v1691_v46 = vmul.f32 %v1611_v32, %v1371_v15 }
 0x1b1   : > { %v5258_v35 = vpop.eup %5257 }
 0x1b2   : > { %v1612_v27 = vadd.f32 1.0, %v5258_v35  ;;  %4924 = vmatprep.mubr.msk.bf16.mxu1 %vm1776_vm3, %v1731_v11  ;;  %v1689_v55 = vmul.f32 %v1609_v28, %v1369_v9 }
 0x1b4   : > { %v5260_v45 = vpop.eup %5259  ;;  %v1692_v51 = vmul.f32 %v1612_v27, %v1372_v21  ;;  %4925 = vmatmul.mubr.msk.bf16.gmra.mxu1 %vm1776_vm3, %v1732_v2 }
 0x1b5   : > { %v5262_v29 = vpop.eup %5261  ;;  %v1610_v38 = vadd.f32 1.0, %v5260_v45 }
 0x1b6   : > { %v1734_v24 = vpack.c.bf16 %v1692_v51, %v1691_v46  ;;  %v1615_v18 = vadd.f32 1.0, %v5262_v29 }
 0x1b7   : > { %v1690_v57 = vmul.f32 %v1610_v38, %v1370_v42  ;;  %v5264_v31 = vpop.eup %5263 }
 0x1b8   : > { %v1613_v53 = vadd.f32 1.0, %v5264_v31  ;;  %v1695_v63 = vmul.f32 %v1615_v18, %v1375_v58 }
 0x1b9   : > { %v5266_v19 = vpop.eup %5265  ;;  %v1733_v59 = vpack.c.bf16 %v1690_v57, %v1689_v55 }
 0x1ba   : > { %v1616_v40 = vadd.f32 1.0, %v5266_v19  ;;  %v1693_v0 = vmul.f32 %v1613_v53, %v1373_v34 }
 0x1bb   : > { %v5268_v48 = vpop.eup %5267  ;;  %4928 = vmatprep.mubr.msk.bf16.mxu1 %vm1776_vm3, %v1733_v59 }
 0x1bc   : > { %v1696_v3 = vmul.f32 %v1616_v40, %v1376_v41  ;;  %v1614_v44 = vadd.f32 1.0, %v5268_v48  ;;  %4929 = vmatmul.mubr.msk.bf16.gmra.mxu1 %vm1776_vm3, %v1734_v24 }
 0x1be   : > { %v1694_v37 = vmul.f32 %v1614_v44, %v1374_v25  ;;  %v1736_v54 = vpack.c.bf16 %v1696_v3, %v1695_v63 }
 0x1c0   : > { %v1735_v36 = vpack.c.bf16 %v1694_v37, %v1693_v0 }
 0x1c2   : > { %4932 = vmatprep.mubr.msk.bf16.mxu1 %vm1776_vm3, %v1735_v36 }
 0x1c4   : > { %4933 = vmatmul.mubr.msk.bf16.gmra.mxu1 %vm1776_vm3, %v1736_v54 }
 0x1eb   : > { %v4858_v43 = vpop.f32.mrf.mxu0 }
 0x1ec   : > { %v1940_v62 = vadd.f32 %v4858_v43, %v6448_v33 }
 0x1ed   : > { %v1931_v60 = vpop.f32.mrf.mxu0 }
 0x1ee   : > { %v1932_v7 = vadd.f32 %v6448_v33, %v1931_v60  ;;  %v2332_v17 = vmul.f32 0.70710677, %v1940_v62  ;;  %v2252_v27 = vmul.f32 0.5, %v1940_v62 }
 0x1ef   : > { %v4859_v10 = vpop.f32.mrf.mxu0 }
 0x1f0   : > { %v2330_v30 = vmul.f32 0.70710677, %v1932_v7  ;;  %v1943_v12 = vadd.f32 %v4859_v10, %v6448_v33  ;;  %v2250_v58 = vmul.f32 0.5, %v1932_v7 }
 0x1f1   : > { %v1934_v13 = vpop.f32.mrf.mxu0 }
 0x1f2   : > { %5269 = verf.f32 %v2330_v30  ;;  %v2333_v1 = vmul.f32 0.70710677, %v1943_v12  ;;  %v1935_v16 = vadd.f32 %v6448_v33, %v1934_v13  ;;  %v2253_v45 = vmul.f32 0.5, %v1943_v12 }
 0x1f3   : > { %5271 = verf.f32 %v2332_v17  ;;  %v4862_v6 = vpop.f32.mrf.mxu0 }
 0x1f4   : > { %5273 = verf.f32 %v2333_v1  ;;  %v2331_v52 = vmul.f32 0.70710677, %v1935_v16  ;;  %v1956_v4 = vadd.f32 %v4862_v6, %v6448_v33  ;;  %v2251_v31 = vmul.f32 0.5, %v1935_v16 }
 0x1f5   : > { %v1947_v56 = vpop.f32.mrf.mxu0 }
 0x1f6   : > { %5275 = verf.f32 %v2331_v52  ;;  %v6456_v22 = vadd.f32 %v6448_v33, %v1947_v56  ;;  %v2336_v39 = vmul.f32 0.70710677, %v1956_v4  ;;  %v2256_v60 = vmul.f32 0.5, %v1956_v4 }
 0x1f7   : > { %v4863_v61 = vpop.f32.mrf.mxu0 }
 0x1f8   : > { %v2334_v5 = vmul.f32 0.70710677, %v6456_v22  ;;  %v1959_v23 = vadd.f32 %v4863_v61, %v6448_v33  ;;  %v2254_v6 = vmul.f32 0.5, %v6456_v22 }
 0x1f9   : > { %v1950_v14 = vpop.f32.mrf.mxu0 }
 0x1fa   : > { %5277 = verf.f32 %v2334_v5  ;;  %v2337_v50 = vmul.f32 0.70710677, %v1959_v23  ;;  %v1951_v26 = vadd.f32 %v6448_v33, %v1950_v14  ;;  %v2257_v17 = vmul.f32 0.5, %v1959_v23 }
 0x1fb   : > { %5279 = verf.f32 %v2336_v39 }
 0x1fc   : > { %5281 = verf.f32 %v2337_v50  ;;  %v2335_v49 = vmul.f32 0.70710677, %v1951_v26  ;;  %v4866_v8 = vpop.f32.mrf.mxu0  ;;  %v2255_v52 = vmul.f32 0.5, %v1951_v26 }
 0x1fd   : > { %v6462_v47 = vadd.f32 %v4866_v8, %v6448_v33 }
 0x1fe   : > { %5283 = verf.f32 %v2335_v49  ;;  %v1963_v15 = vpop.f32.mrf.mxu0 }
 0x1ff   : > { %v5270_v20 = vpop.eup %5269  ;;  %v6465_v2 = vadd.f32 %v6448_v33, %v1963_v15  ;;  %v2340_v21 = vmul.f32 0.70710677, %v6462_v47 }
 0x200   : > { %v5272_v32 = vpop.eup %5271  ;;  %v4867_v11 = vpop.f32.mrf.mxu0  ;;  %v2490_v42 = vadd.f32 1.0, %v5270_v20 }
 0x201   : > { %v5274_v35 = vpop.eup %5273  ;;  %v2338_v9 = vmul.f32 0.70710677, %v6465_v2  ;;  %v6470_v28 = vadd.f32 %v4867_v11, %v6448_v33  ;;  %v2492_v55 = vadd.f32 1.0, %v5272_v32 }
 0x202   : > { %v2493_v46 = vadd.f32 1.0, %v5274_v35  ;;  %v1966_v51 = vpop.f32.mrf.mxu0  ;;  %v2570_v53 = vmul.f32 %v2490_v42, %v2250_v58 }
 0x203   : > { %v5276_v29 = vpop.eup %5275  ;;  %5285 = verf.f32 %v2338_v9  ;;  %v2341_v38 = vmul.f32 0.70710677, %v6470_v28  ;;  %v6474_v57 = vadd.f32 %v6448_v33, %v1966_v51  ;;  %v2572_v48 = vmul.f32 %v2492_v55, %v2252_v27 }
 0x204   : > { %v2491_v24 = vadd.f32 1.0, %v5276_v29  ;;  %5287 = verf.f32 %v2340_v21  ;;  %v4870_v18 = vpop.f32.mrf.mxu0  ;;  %v2573_v34 = vmul.f32 %v2493_v46, %v2253_v45  ;;  %v2258_v9 = vmul.f32 0.5, %v6465_v2 }
 0x205   : > { %5289 = verf.f32 %v2341_v38  ;;  %v2339_v41 = vmul.f32 0.70710677, %v6474_v57  ;;  %v6478_v19 = vadd.f32 %v4870_v18, %v6448_v33  ;;  %v2261_v38 = vmul.f32 0.5, %v6470_v28 }
 0x206   : > { %v2571_v59 = vmul.f32 %v2491_v24, %v2251_v31  ;;  %v1979_v40 = vpop.f32.mrf.mxu0  ;;  %v2651_v36 = vpack.c.bf16 %v2573_v34, %v2572_v48  ;;  %v2259_v31 = vmul.f32 0.5, %v6474_v57  ;;  %v2260_v34 = vmul.f32 0.5, %v6462_v47 }
 0x207   : > { %v5278_v25 = vpop.eup %5277  ;;  %5291 = verf.f32 %v2339_v41  ;;  %v6481_v63 = vadd.f32 %v6448_v33, %v1979_v40  ;;  %v2344_v3 = vmul.f32 0.70710677, %v6478_v19 }
 0x208   : > { %v5280_v0 = vpop.eup %5279  ;;  %v4871_v44 = vpop.f32.mrf.mxu0  ;;  %v2650_v37 = vpack.c.bf16 %v2571_v59, %v2570_v53  ;;  %v2494_v7 = vadd.f32 1.0, %v5278_v25 }
 0x209   : > { %v5282_v54 = vpop.eup %5281  ;;  %v2342_v43 = vmul.f32 0.70710677, %v6481_v63  ;;  %v6486_v62 = vadd.f32 %v4871_v44, %v6448_v33  ;;  %v2496_v13 = vadd.f32 1.0, %v5280_v0 }
 0x20a   : > { %v2497_v10 = vadd.f32 1.0, %v5282_v54  ;;  %v1982_v30 = vpop.f32.mrf.mxu0  ;;  %4944 = vmatprep.mubr.msk.bf16.mxu0 %vm1776_vm3, %v2650_v37  ;;  %v2574_v23 = vmul.f32 %v2494_v7, %v2254_v6 }
 0x20b   : > { %v5284_v12 = vpop.eup %5283  ;;  %5293 = verf.f32 %v2342_v43  ;;  %v2345_v1 = vmul.f32 0.70710677, %v6486_v62  ;;  %v6491_v16 = vadd.f32 %v6448_v33, %v1982_v30  ;;  %4945 = vmatmul.mubr.msk.bf16.vlgmr.msra.gmra.mxu0 %vm1776_vm3, %v2651_v36  ;;  %v2576_v49 = vmul.f32 %v2496_v13, %v2256_v60 }
 0x20c   : > { %v2495_v4 = vadd.f32 1.0, %v5284_v12  ;;  %5295 = verf.f32 %v2344_v3  ;;  %v4874_v56 = vpop.f32.mrf.mxu0  ;;  %v2577_v39 = vmul.f32 %v2497_v10, %v2257_v17  ;;  %v2262_v43 = vmul.f32 0.5, %v6481_v63 }
 0x20d   : > { %5297 = verf.f32 %v2345_v1  ;;  %v2343_v61 = vmul.f32 0.70710677, %v6491_v16  ;;  %v6497_v5 = vadd.f32 %v4874_v56, %v6448_v33  ;;  %v2265_v1 = vmul.f32 0.5, %v6486_v62 }
 0x20e   : > { %v2575_v14 = vmul.f32 %v2495_v4, %v2255_v52  ;;  %v1995_v50 = vpop.f32.mrf.mxu0  ;;  %v2653_v21 = vpack.c.bf16 %v2577_v39, %v2576_v49  ;;  %v2263_v63 = vmul.f32 0.5, %v6491_v16  ;;  %v2264_v39 = vmul.f32 0.5, %v6478_v19  ;;  %v5085_v49 = vld [vmem:[%s7187_s7 + $0x70] ss:$8 sps:$4 sm:$0xff]   ;;  %v5087_v16 = vld [vmem:[%s7187_s7 + $0x74] ss:$8 sps:$4 sm:$0xff]  }
 0x20f   : > { %5299 = verf.f32 %v2343_v61  ;;  %v2348_v8 = vmul.f32 0.70710677, %v6497_v5  ;;  %v6501_v22 = vadd.f32 %v6448_v33, %v1995_v50  ;;  %3738 = vmatprep.subr.bf16.mxu1 %v5087_v16 }
 0x210   : > { %v5286_v15 = vpop.eup %5285  ;;  %v4875_v26 = vpop.f32.mrf.mxu0  ;;  %v2652_v20 = vpack.c.bf16 %v2575_v14, %v2574_v23  ;;  %3739 = vmatpush1.bf16.msra.mxu1 %v5085_v49 }
 0x211   : > { %v5288_v32 = vpop.eup %5287  ;;  %v6504_v11 = vadd.f32 %v4875_v26, %v6448_v33  ;;  %v2346_v27 = vmul.f32 0.70710677, %v6501_v22  ;;  %v2498_v45 = vadd.f32 1.0, %v5286_v15  ;;  %5301 = verf.f32 %v2348_v8 }
 0x212   : > { %v5290_v35 = vpop.eup %5289  ;;  %v1998_v42 = vpop.f32.mrf.mxu0  ;;  %4948 = vmatprep.mubr.msk.bf16.mxu0 %vm1776_vm3, %v2652_v20  ;;  %v2500_v55 = vadd.f32 1.0, %v5288_v32 }
 0x213   : > { %v2501_v46 = vadd.f32 1.0, %v5290_v35  ;;  %v2349_v51 = vmul.f32 0.70710677, %v6504_v11  ;;  %4949 = vmatmul.mubr.msk.bf16.gmra.mxu0 %vm1776_vm3, %v2653_v21  ;;  %5303 = verf.f32 %v2346_v27  ;;  %v6513_v58 = vadd.f32 %v6448_v33, %v1998_v42 }
 0x214   : > { %v5292_v29 = vpop.eup %5291  ;;  %v4878_v2 = vpop.f32.mrf.mxu0  ;;  %v2578_v40 = vmul.f32 %v2498_v45, %v2258_v9  ;;  %v2580_v48 = vmul.f32 %v2500_v55, %v2260_v34 }
 0x215   : > { %v2499_v24 = vadd.f32 1.0, %v5292_v29  ;;  %5305 = verf.f32 %v2349_v51  ;;  %v6517_v18 = vadd.f32 %v4878_v2, %v6448_v33  ;;  %v2581_v41 = vmul.f32 %v2501_v46, %v2261_v38 }
 0x216   : > { %v2347_v53 = vmul.f32 0.70710677, %v6513_v58  ;;  %v2011_v59 = vpop.f32.mrf.mxu0 }
 0x217   : > { %v2579_v28 = vmul.f32 %v2499_v24, %v2259_v31  ;;  %v2352_v0 = vmul.f32 0.70710677, %v6517_v18  ;;  %v6523_v57 = vadd.f32 %v6448_v33, %v2011_v59  ;;  %v2655_v36 = vpack.c.bf16 %v2581_v41, %v2580_v48  ;;  %v5088_v41 = vld [vmem:[%s7187_s7 + $0x60] ss:$8 sps:$4 sm:$0xff]  }
 0x218   : > { %v5294_v25 = vpop.eup %5293  ;;  %5307 = verf.f32 %v2347_v53  ;;  %v4879_v3 = vpop.f32.mrf.mxu0  ;;  %v2269_v24 = vmul.f32 0.5, %v6504_v11  ;;  %v2266_v53 = vmul.f32 0.5, %v6501_v22  ;;  %v2267_v59 = vmul.f32 0.5, %v6513_v58  ;;  %v5090_v11 = vld [vmem:[%s7187_s7 + $0x64] ss:$8 sps:$4 sm:$0xff]  }
 0x219   : > { %v5296_v44 = vpop.eup %5295  ;;  %v2654_v37 = vpack.c.bf16 %v2579_v28, %v2578_v40  ;;  %v6526_v54 = vadd.f32 %v4879_v3, %v6448_v33  ;;  %v2350_v60 = vmul.f32 0.70710677, %v6523_v57  ;;  %v2502_v17 = vadd.f32 1.0, %v5294_v25  ;;  %v5093_v22 = vld [vmem:[%s7187_s7 + $0x54] ss:$8 sps:$4 sm:$0xff]   ;;  %3740 = vmatprep.subr.bf16.mxu1 %v5090_v11 }
 0x21a   : > { %v5298_v47 = vpop.eup %5297  ;;  %v2014_v7 = vpop.f32.mrf.mxu0  ;;  %5309 = verf.f32 %v2352_v0  ;;  %v2504_v13 = vadd.f32 1.0, %v5296_v44  ;;  %v2268_v48 = vmul.f32 0.5, %v6497_v5  ;;  %3741 = vmatpush1.bf16.msra.mxu1 %v5088_v41 }
 0x21b   : > { %v2505_v10 = vadd.f32 1.0, %v5298_v47  ;;  %v2353_v30 = vmul.f32 0.70710677, %v6526_v54  ;;  %4952 = vmatprep.mubr.msk.bf16.mxu0 %vm1776_vm3, %v2654_v37  ;;  %5311 = verf.f32 %v2350_v60  ;;  %v6534_v6 = vadd.f32 %v6448_v33, %v2014_v7  ;;  %3742 = vmatprep.subr.bf16.mxu1 %v5093_v22 }
 0x21c   : > { %v5300_v12 = vpop.eup %5299  ;;  %v4882_v52 = vpop.f32.mrf.mxu0  ;;  %4953 = vmatmul.mubr.msk.bf16.gmra.mxu0 %vm1776_vm3, %v2655_v36  ;;  %v2582_v14 = vmul.f32 %v2502_v17, %v2262_v43  ;;  %v2584_v15 = vmul.f32 %v2504_v13, %v2264_v39  ;;  %v5091_v17 = vld [vmem:[%s7187_s7 + $0x50] ss:$8 sps:$4 sm:$0xff]   ;;  %v2270_v13 = vmul.f32 0.5, %v6523_v57 }
 0x21d   : > { %v2503_v4 = vadd.f32 1.0, %v5300_v12  ;;  %5313 = verf.f32 %v2353_v30  ;;  %v6539_v56 = vadd.f32 %v4882_v52, %v6448_v33  ;;  %v2585_v61 = vmul.f32 %v2505_v10, %v2265_v1  ;;  %v5096_v52 = vld [vmem:[%s7187_s7 + $0x44] ss:$8 sps:$4 sm:$0xff]  }
 0x21e   : > { %v2351_v23 = vmul.f32 0.70710677, %v6534_v6  ;;  %v2027_v62 = vpop.f32.mrf.mxu0  ;;  %v5302_v8 = vpop.eup %5301  ;;  %v2272_v12 = vmul.f32 0.5, %v6517_v18  ;;  %3743 = vmatpush1.bf16.msra.mxu1 %v5091_v17 }
 0x21f   : > { %v2583_v50 = vmul.f32 %v2503_v4, %v2263_v63  ;;  %v2356_v26 = vmul.f32 0.70710677, %v6539_v56  ;;  %v6551_v19 = vadd.f32 %v6448_v33, %v2027_v62  ;;  %v2657_v27 = vpack.c.bf16 %v2585_v61, %v2584_v15  ;;  %3744 = vmatprep.subr.bf16.mxu1 %v5096_v52 }
 0x220   : > { %5315 = verf.f32 %v2351_v23  ;;  %v4883_v20 = vpop.f32.mrf.mxu0  ;;  %v5304_v32 = vpop.eup %5303  ;;  %v2508_v31 = vadd.f32 1.0, %v5302_v8  ;;  %v2273_v23 = vmul.f32 0.5, %v6526_v54  ;;  %v2271_v62 = vmul.f32 0.5, %v6534_v6  ;;  %v5094_v54 = vld [vmem:[%s7187_s7 + $0x40] ss:$8 sps:$4 sm:$0xff]  }
 0x221   : > { %v2656_v21 = vpack.c.bf16 %v2583_v50, %v2582_v14  ;;  %v6554_v35 = vadd.f32 %v4883_v20, %v6448_v33  ;;  %5317 = verf.f32 %v2356_v26  ;;  %v2354_v42 = vmul.f32 0.70710677, %v6551_v19 }
 0x222   : > { %v5306_v9 = vpop.eup %5305  ;;  %v2030_v45 = vpop.f32.mrf.mxu0  ;;  %v2506_v55 = vadd.f32 1.0, %v5304_v32  ;;  %v2588_v60 = vmul.f32 %v2508_v31, %v2268_v48  ;;  %v2276_v49 = vmul.f32 0.5, %v6539_v56  ;;  %v2274_v8 = vmul.f32 0.5, %v6551_v19  ;;  %v5099_v56 = vld [vmem:[%s7187_s7 + $0x34] ss:$8 sps:$4 sm:$0xff]   ;;  %3745 = vmatpush1.bf16.msra.mxu1 %v5094_v54 }
 0x223   : > { %v2509_v46 = vadd.f32 1.0, %v5306_v9  ;;  %v2357_v51 = vmul.f32 0.70710677, %v6554_v35  ;;  %v6559_v29 = vadd.f32 %v6448_v33, %v2030_v45  ;;  %4956 = vmatprep.mubr.msk.bf16.mxu0 %vm1776_vm3, %v2656_v21  ;;  %5319 = verf.f32 %v2354_v42  ;;  %3746 = vmatprep.subr.bf16.mxu1 %v5099_v56 }
 0x224   : > { %v4886_v38 = vpop.f32.mrf.mxu0  ;;  %4957 = vmatmul.mubr.msk.bf16.gmra.mxu0 %vm1776_vm3, %v2657_v27  ;;  %v2586_v44 = vmul.f32 %v2506_v55, %v2266_v53  ;;  %v2277_v21 = vmul.f32 0.5, %v6554_v35  ;;  %v5097_v35 = vld [vmem:[%s7187_s7 + $0x30] ss:$8 sps:$4 sm:$0xff]  }
 0x225   : > { %v5308_v2 = vpop.eup %5307  ;;  %5321 = verf.f32 %v2357_v51  ;;  %v2355_v34 = vmul.f32 0.70710677, %v6559_v29  ;;  %v6571_v28 = vadd.f32 %v4886_v38, %v6448_v33  ;;  %v2589_v0 = vmul.f32 %v2509_v46, %v2269_v24 }
 0x226   : > { %v2507_v40 = vadd.f32 1.0, %v5308_v2  ;;  %v2043_v25 = vpop.f32.mrf.mxu0  ;;  %v2275_v41 = vmul.f32 0.5, %v6559_v29  ;;  %3747 = vmatpush1.bf16.msra.mxu1 %v5097_v35 }
 0x227   : > { %5323 = verf.f32 %v2355_v34  ;;  %v6578_v3 = vadd.f32 %v6448_v33, %v2043_v25  ;;  %v5310_v58 = vpop.eup %5309  ;;  %v2360_v47 = vmul.f32 0.70710677, %v6571_v28  ;;  %v2659_v63 = vpack.c.bf16 %v2589_v0, %v2588_v60 }
 0x228   : > { %v2587_v37 = vmul.f32 %v2507_v40, %v2267_v59  ;;  %v4887_v36 = vpop.f32.mrf.mxu0  ;;  %v5312_v43 = vpop.eup %5311  ;;  %v2512_v50 = vadd.f32 1.0, %v5310_v58 }
 0x229   : > { %v2358_v5 = vmul.f32 0.70710677, %v6578_v3  ;;  %v6586_v7 = vadd.f32 %v4887_v36, %v6448_v33  ;;  %5325 = verf.f32 %v2360_v47  ;;  %v2510_v61 = vadd.f32 1.0, %v5312_v43 }
 0x22a   : > { %v5314_v10 = vpop.eup %5313  ;;  %v2658_v30 = vpack.c.bf16 %v2587_v37, %v2586_v44  ;;  %v2046_v1 = vpop.f32.mrf.mxu0  ;;  %v2592_v55 = vmul.f32 %v2512_v50, %v2272_v12 }
 0x22b   : > { %v2513_v4 = vadd.f32 1.0, %v5314_v10  ;;  %5327 = verf.f32 %v2358_v5  ;;  %v2361_v39 = vmul.f32 0.70710677, %v6586_v7  ;;  %v6600_v18 = vadd.f32 %v6448_v33, %v2046_v1 }
 0x22c   : > { %4960 = vmatprep.mubr.msk.bf16.mxu0 %vm1776_vm3, %v2658_v30  ;;  %v4890_v57 = vpop.f32.mrf.mxu0  ;;  %v2590_v42 = vmul.f32 %v2510_v61, %v2270_v13  ;;  %v2280_v5 = vmul.f32 0.5, %v6571_v28  ;;  %v2281_v12 = vmul.f32 0.5, %v6586_v7  ;;  %v2278_v28 = vmul.f32 0.5, %v6578_v3 }
 0x22d   : > { %v5316_v14 = vpop.eup %5315  ;;  %5329 = verf.f32 %v2361_v39  ;;  %v6605_v16 = vadd.f32 %v4890_v57, %v6448_v33  ;;  %4961 = vmatmul.mubr.msk.bf16.gmra.mxu0 %vm1776_vm3, %v2659_v63  ;;  %v2359_v15 = vmul.f32 0.70710677, %v6600_v18  ;;  %v2593_v32 = vmul.f32 %v2513_v4, %v2273_v23 }
 0x22e   : > { %v2511_v6 = vadd.f32 1.0, %v5316_v14  ;;  %v2059_v26 = vpop.f32.mrf.mxu0  ;;  %v5318_v20 = vpop.eup %5317  ;;  %v2279_v14 = vmul.f32 0.5, %v6600_v18 }
 0x22f   : > { %v2364_v9 = vmul.f32 0.70710677, %v6605_v16  ;;  %v6619_v27 = vadd.f32 %v6448_v33, %v2059_v26  ;;  %v2516_v19 = vadd.f32 1.0, %v5318_v20  ;;  %5331 = verf.f32 %v2359_v15 }
 0x230   : > { %v2591_v45 = vmul.f32 %v2511_v6, %v2271_v62  ;;  %v4891_v46 = vpop.f32.mrf.mxu0  ;;  %v5320_v51 = vpop.eup %5319  ;;  %v2661_v59 = vpack.c.bf16 %v2593_v32, %v2592_v55  ;;  %v2284_v32 = vmul.f32 0.5, %v6605_v16 }
 0x231   : > { %5333 = verf.f32 %v2364_v9  ;;  %v2362_v38 = vmul.f32 0.70710677, %v6619_v27  ;;  %v6623_v2 = vadd.f32 %v4891_v46, %v6448_v33  ;;  %v2514_v34 = vadd.f32 1.0, %v5320_v51 }
 0x232   : > { %v5322_v31 = vpop.eup %5321  ;;  %v2660_v24 = vpack.c.bf16 %v2591_v45, %v2590_v42  ;;  %v2062_v53 = vpop.f32.mrf.mxu0  ;;  %v2596_v48 = vmul.f32 %v2516_v19, %v2276_v49  ;;  %v2282_v16 = vmul.f32 0.5, %v6619_v27 }
 0x233   : > { %v2517_v40 = vadd.f32 1.0, %v5322_v31  ;;  %5335 = verf.f32 %v2362_v38  ;;  %v2365_v25 = vmul.f32 0.70710677, %v6623_v2  ;;  %v2594_v0 = vmul.f32 %v2514_v34, %v2274_v8 }
 0x234   : > { %v5324_v11 = vpop.eup %5323  ;;  %v6631_v22 = vadd.f32 %v6448_v33, %v2062_v53  ;;  %4964 = vmatprep.mubr.msk.bf16.mxu0 %vm1776_vm3, %v2660_v24  ;;  %v4894_v58 = vpop.f32.mrf.mxu0  ;;  %v2285_v45 = vmul.f32 0.5, %v6623_v2 }
 0x235   : > { %v2597_v44 = vmul.f32 %v2517_v40, %v2277_v21  ;;  %v2515_v37 = vadd.f32 1.0, %v5324_v11  ;;  %5337 = verf.f32 %v2365_v25  ;;  %v6635_v29 = vadd.f32 %v4894_v58, %v6448_v33  ;;  %4965 = vmatmul.mubr.msk.bf16.gmra.mxu0 %vm1776_vm3, %v2661_v59 }
 0x236   : > { %v2363_v47 = vmul.f32 0.70710677, %v6631_v22  ;;  %v2075_v36 = vpop.f32.mrf.mxu0  ;;  %v5326_v43 = vpop.eup %5325  ;;  %v2283_v59 = vmul.f32 0.5, %v6631_v22 }
 0x237   : > { %v2595_v60 = vmul.f32 %v2515_v37, %v2275_v41  ;;  %v2368_v17 = vmul.f32 0.70710677, %v6635_v29  ;;  %v2663_v30 = vpack.c.bf16 %v2597_v44, %v2596_v48  ;;  %v6643_v13 = vadd.f32 %v6448_v33, %v2075_v36 }
 0x238   : > { %v5328_v10 = vpop.eup %5327  ;;  %5339 = verf.f32 %v2363_v47  ;;  %v4895_v1 = vpop.f32.mrf.mxu0  ;;  %v2520_v63 = vadd.f32 1.0, %v5326_v43  ;;  %v2288_v36 = vmul.f32 0.5, %v6635_v29 }
 0x239   : > { %v2662_v52 = vpack.c.bf16 %v2595_v60, %v2594_v0  ;;  %5341 = verf.f32 %v2368_v17  ;;  %v6646_v4 = vadd.f32 %v4895_v1, %v6448_v33  ;;  %v2518_v61 = vadd.f32 1.0, %v5328_v10 }
 0x23a   : > { %v5330_v39 = vpop.eup %5329  ;;  %v2366_v23 = vmul.f32 0.70710677, %v6643_v13  ;;  %v2078_v62 = vpop.f32.mrf.mxu0  ;;  %v2600_v6 = vmul.f32 %v2520_v63, %v2280_v5  ;;  %v2286_v29 = vmul.f32 0.5, %v6643_v13 }
 0x23b   : > { %v2521_v57 = vadd.f32 1.0, %v5330_v39  ;;  %v2369_v7 = vmul.f32 0.70710677, %v6646_v4  ;;  %4968 = vmatprep.mubr.msk.bf16.mxu0 %vm1776_vm3, %v2662_v52  ;;  %v6654_v50 = vadd.f32 %v6448_v33, %v2078_v62  ;;  %v2598_v26 = vmul.f32 %v2518_v61, %v2278_v28 }
 0x23c   : > { %5343 = verf.f32 %v2366_v23  ;;  %v4898_v49 = vpop.f32.mrf.mxu1  ;;  %v5332_v54 = vpop.eup %5331  ;;  %v2289_v5 = vmul.f32 0.5, %v6646_v4 }
 0x23d   : > { %v2601_v8 = vmul.f32 %v2521_v57, %v2281_v12  ;;  %5345 = verf.f32 %v2369_v7  ;;  %v6657_v3 = vadd.f32 %v4898_v49, %v6448_v33  ;;  %4969 = vmatmul.mubr.msk.bf16.gmra.mxu0 %vm1776_vm3, %v2663_v30  ;;  %v2519_v56 = vadd.f32 1.0, %v5332_v54 }
 0x23e   : > { %v5334_v15 = vpop.eup %5333  ;;  %v2367_v20 = vmul.f32 0.70710677, %v6654_v50  ;;  %v2091_v18 = vpop.f32.mrf.mxu1  ;;  %v2287_v7 = vmul.f32 0.5, %v6654_v50 }
 0x23f   : > { %v2372_v21 = vmul.f32 0.70710677, %v6657_v3  ;;  %v2599_v42 = vmul.f32 %v2519_v56, %v2279_v14  ;;  %v6665_v19 = vadd.f32 %v6448_v33, %v2091_v18  ;;  %v2665_v51 = vpack.c.bf16 %v2601_v8, %v2600_v6 }
 0x240   : > { %v5336_v9 = vpop.eup %5335  ;;  %5347 = verf.f32 %v2367_v20  ;;  %v4899_v46 = vpop.f32.mrf.mxu1  ;;  %v2524_v55 = vadd.f32 1.0, %v5334_v15 }
 0x241   : > { %5349 = verf.f32 %v2372_v21  ;;  %v6668_v38 = vadd.f32 %v4899_v46, %v6448_v33  ;;  %v2664_v31 = vpack.c.bf16 %v2599_v42, %v2598_v26  ;;  %v2522_v24 = vadd.f32 1.0, %v5336_v9 }
 0x242   : > { %v5338_v35 = vpop.eup %5337  ;;  %v2370_v34 = vmul.f32 0.70710677, %v6665_v19  ;;  %v2094_v41 = vpop.f32.mrf.mxu1  ;;  %v2604_v48 = vmul.f32 %v2524_v55, %v2284_v32  ;;  %v2292_v32 = vmul.f32 0.5, %v6657_v3 }
 0x243   : > { %v2525_v2 = vadd.f32 1.0, %v5338_v35  ;;  %v2373_v53 = vmul.f32 0.70710677, %v6668_v38  ;;  %v6675_v40 = vadd.f32 %v6448_v33, %v2094_v41  ;;  %4972 = vmatprep.mubr.msk.bf16.mxu0 %vm1776_vm3, %v2664_v31  ;;  %v2602_v44 = vmul.f32 %v2522_v24, %v2282_v16 }
 0x244   : > { %5351 = verf.f32 %v2370_v34  ;;  %v4902_v25 = vpop.f32.mrf.mxu1  ;;  %v2293_v21 = vmul.f32 0.5, %v6668_v38  ;;  %v2290_v24 = vmul.f32 0.5, %v6665_v19 }
 0x245   : > { %v5340_v11 = vpop.eup %5339  ;;  %v2605_v0 = vmul.f32 %v2525_v2, %v2285_v45  ;;  %5353 = verf.f32 %v2373_v53  ;;  %v6679_v27 = vadd.f32 %v4902_v25, %v6448_v33  ;;  %4973 = vmatmul.mubr.msk.bf16.gmra.mxu0 %vm1776_vm3, %v2665_v51  ;;  %v2371_v22 = vmul.f32 0.70710677, %v6675_v40 }
 0x246   : > { %v5342_v58 = vpop.eup %5341  ;;  %v2523_v37 = vadd.f32 1.0, %v5340_v11  ;;  %v2107_v47 = vpop.f32.mrf.mxu1  ;;  %v2291_v2 = vmul.f32 0.5, %v6675_v40 }
 0x247   : > { %v2376_v43 = vmul.f32 0.70710677, %v6679_v27  ;;  %5355 = verf.f32 %v2371_v22  ;;  %v6687_v17 = vadd.f32 %v6448_v33, %v2107_v47  ;;  %v2667_v12 = vpack.c.bf16 %v2605_v0, %v2604_v48 }
 0x248   : > { %v2603_v60 = vmul.f32 %v2523_v37, %v2283_v59  ;;  %v4903_v10 = vpop.f32.mrf.mxu1  ;;  %v2528_v1 = vadd.f32 1.0, %v5342_v58  ;;  %v2296_v22 = vmul.f32 0.5, %v6679_v27 }
 0x249   : > { %v5344_v30 = vpop.eup %5343  ;;  %5357 = verf.f32 %v2376_v43  ;;  %v6690_v52 = vadd.f32 %v4903_v10, %v6448_v33  ;;  %v2374_v61 = vmul.f32 0.70710677, %v6687_v17  ;;  %v2294_v27 = vmul.f32 0.5, %v6687_v17 }
 0x24a   : > { %v5346_v63 = vpop.eup %5345  ;;  %v2666_v39 = vpack.c.bf16 %v2603_v60, %v2602_v44  ;;  %v2526_v28 = vadd.f32 1.0, %v5344_v30  ;;  %v2110_v4 = vpop.f32.mrf.mxu1  ;;  %v2608_v54 = vmul.f32 %v2528_v1, %v2288_v36 }
 0x24b   : > { %v2529_v23 = vadd.f32 1.0, %v5346_v63  ;;  %v2377_v62 = vmul.f32 0.70710677, %v6690_v52  ;;  %v6696_v57 = vadd.f32 %v6448_v33, %v2110_v4  ;;  %5359 = verf.f32 %v2374_v61 }
 0x24c   : > { %4976 = vmatprep.mubr.msk.bf16.mxu0 %vm1776_vm3, %v2666_v39  ;;  %v4906_v14 = vpop.f32.mrf.mxu1  ;;  %v2606_v15 = vmul.f32 %v2526_v28, %v2286_v29  ;;  %v2297_v43 = vmul.f32 0.5, %v6690_v52 }
 0x24d   : > { %v5348_v49 = vpop.eup %5347  ;;  %v2609_v6 = vmul.f32 %v2529_v23, %v2289_v5  ;;  %5361 = verf.f32 %v2377_v62  ;;  %v2375_v13 = vmul.f32 0.70710677, %v6696_v57  ;;  %4977 = vmatmul.mubr.msk.bf16.gmra.mxu0 %vm1776_vm3, %v2667_v12  ;;  %v6703_v56 = vadd.f32 %v4906_v14, %v6448_v33 }
 0x24e   : > { %v5350_v8 = vpop.eup %5349  ;;  %v2527_v26 = vadd.f32 1.0, %v5348_v49  ;;  %v2123_v20 = vpop.f32.mrf.mxu1  ;;  %v2295_v4 = vmul.f32 0.5, %v6696_v57 }
 0x24f   : > { %5363 = verf.f32 %v2375_v13  ;;  %v6706_v50 = vadd.f32 %v6448_v33, %v2123_v20  ;;  %v2380_v9 = vmul.f32 0.70710677, %v6703_v56  ;;  %v2669_v46 = vpack.c.bf16 %v2609_v6, %v2608_v54 }
 0x250   : > { %v2607_v18 = vmul.f32 %v2527_v26, %v2287_v7  ;;  %v4907_v42 = vpop.f32.mrf.mxu1  ;;  %v2532_v51 = vadd.f32 1.0, %v5350_v8 }
 0x251   : > { %v5352_v45 = vpop.eup %5351  ;;  %v2378_v55 = vmul.f32 0.70710677, %v6706_v50  ;;  %v6713_v35 = vadd.f32 %v4907_v42, %v6448_v33  ;;  %5365 = verf.f32 %v2380_v9  ;;  %v2300_v9 = vmul.f32 0.5, %v6703_v56 }
 0x252   : > { %v5354_v31 = vpop.eup %5353  ;;  %v2668_v16 = vpack.c.bf16 %v2607_v18, %v2606_v15  ;;  %v2530_v34 = vadd.f32 1.0, %v5352_v45  ;;  %v2126_v3 = vpop.f32.mrf.mxu1  ;;  %v2612_v11 = vmul.f32 %v2532_v51, %v2292_v32  ;;  %v5102_v15 = vld [vmem:[%s7187_s7 + $0x24] ss:$8 sps:$4 sm:$0xff]   ;;  %v5100_v32 = vld [vmem:[%s7187_s7 + $0x20] ss:$8 sps:$4 sm:$0xff]  }
 0x253   : > { %v2533_v41 = vadd.f32 1.0, %v5354_v31  ;;  %5367 = verf.f32 %v2378_v55  ;;  %v2381_v38 = vmul.f32 0.70710677, %v6713_v35  ;;  %v6719_v53 = vadd.f32 %v6448_v33, %v2126_v3  ;;  %3748 = vmatprep.subr.bf16.mxu1 %v5102_v15 }
 0x254   : > { %4980 = vmatprep.mubr.msk.bf16.mxu0 %vm1776_vm3, %v2668_v16  ;;  %v4910_v59 = vpop.f32.mrf.mxu1  ;;  %v5356_v25 = vpop.eup %5355  ;;  %v2610_v58 = vmul.f32 %v2530_v34, %v2290_v24  ;;  %v2301_v42 = vmul.f32 0.5, %v6713_v35  ;;  %3749 = vmatpush1.bf16.msra.mxu1 %v5100_v32  ;;  %v2298_v34 = vmul.f32 0.5, %v6706_v50 }
 0x255   : > { %v2613_v48 = vmul.f32 %v2533_v41, %v2293_v21  ;;  %5369 = verf.f32 %v2381_v38  ;;  %v6723_v19 = vadd.f32 %v4910_v59, %v6448_v33  ;;  %4981 = vmatmul.mubr.msk.bf16.gmra.mxu0 %vm1776_vm3, %v2669_v46  ;;  %v2531_v44 = vadd.f32 1.0, %v5356_v25  ;;  %v5105_v41 = vld [vmem:[%s7187_s7 + $0x14] ss:$8 sps:$4 sm:$0xff]  }
 0x256   : > { %v5358_v0 = vpop.eup %5357  ;;  %v2379_v40 = vmul.f32 0.70710677, %v6719_v53  ;;  %v2139_v37 = vpop.f32.mrf.mxu1  ;;  %v2299_v59 = vmul.f32 0.5, %v6719_v53  ;;  %3750 = vmatprep.subr.bf16.mxu1 %v5105_v41 }
 0x257   : > { %v2384_v47 = vmul.f32 0.70710677, %v6723_v19  ;;  %v2611_v36 = vmul.f32 %v2531_v44, %v2291_v2  ;;  %v6731_v60 = vadd.f32 %v6448_v33, %v2139_v37  ;;  %v2671_v30 = vpack.c.bf16 %v2613_v48, %v2612_v11  ;;  %v5103_v2 = vld [vmem:[%s7187_s7 + $0x10] ss:$8 sps:$4 sm:$0xff]   ;;  %v6781_v44 = vld [vmem:[%s7184_s4] ss:$0 sm:$0xff] }
 0x258   : > { %5371 = verf.f32 %v2379_v40  ;;  %v4911_v5 = vpop.f32.mrf.mxu1  ;;  %v5360_v10 = vpop.eup %5359  ;;  %v2536_v12 = vadd.f32 1.0, %v5358_v0  ;;  %3751 = vmatpush1.bf16.msra.mxu1 %v5103_v2 }
 0x259   : > { %5373 = verf.f32 %v2384_v47  ;;  %v6734_v1 = vadd.f32 %v4911_v5, %v6448_v33  ;;  %v2534_v39 = vadd.f32 1.0, %v5360_v10  ;;  %v2382_v29 = vmul.f32 0.70710677, %v6731_v60  ;;  %v5106_v10 = vld [vmem:[%s7187_s7] ss:$8 sps:$4 sm:$0xff]  }
 0x25a   : > { %v5362_v63 = vpop.eup %5361  ;;  %v2142_v28 = vpop.f32.mrf.mxu1  ;;  %v2670_v52 = vpack.c.bf16 %v2611_v36, %v2610_v58  ;;  %v2616_v49 = vmul.f32 %v2536_v12, %v2296_v22  ;;  %v5108_v36 = vld [vmem:[%s7187_s7 + $0x4] ss:$8 sps:$4 sm:$0xff]  }
 0x25b   : > { %v2537_v61 = vadd.f32 1.0, %v5362_v63  ;;  %v2385_v23 = vmul.f32 0.70710677, %v6734_v1  ;;  %v6741_v62 = vadd.f32 %v6448_v33, %v2142_v28  ;;  %5375 = verf.f32 %v2382_v29  ;;  %3752 = vmatprep.subr.bf16.mxu1 %v5108_v36 }
 0x25c   : > { %v5364_v7 = vpop.eup %5363  ;;  %4984 = vmatprep.mubr.msk.bf16.mxu0 %vm1776_vm3, %v2670_v52  ;;  %v4914_v14 = vpop.f32.mrf.mxu1  ;;  %v2614_v6 = vmul.f32 %v2534_v39, %v2294_v27  ;;  %v2305_v12 = vmul.f32 0.5, %v6734_v1  ;;  %3753 = vmatpush1.bf16.msra.mxu1 %v5106_v10 }
 0x25d   : > { %v2617_v17 = vmul.f32 %v2537_v61, %v2297_v43  ;;  %v2535_v54 = vadd.f32 1.0, %v5364_v7  ;;  %5377 = verf.f32 %v2385_v23  ;;  %4985 = vmatmul.mubr.msk.bf16.gmra.mxu0 %vm1776_vm3, %v2671_v30  ;;  %v2383_v13 = vmul.f32 0.70710677, %v6741_v62 }
 0x25e   : > { %v6747_v57 = vadd.f32 %v4914_v14, %v6448_v33  ;;  %v2155_v8 = vpop.f32.mrf.mxu1  ;;  %v5366_v26 = vpop.eup %5365  ;;  %v2304_v43 = vmul.f32 0.5, %v6723_v19  ;;  %v2302_v61 = vmul.f32 0.5, %v6731_v60 }
 0x25f   : > { %v2615_v20 = vmul.f32 %v2535_v54, %v2295_v4  ;;  %v6753_v18 = vadd.f32 %v6448_v33, %v2155_v8  ;;  %5379 = verf.f32 %v2383_v13  ;;  %v2673_v51 = vpack.c.bf16 %v2617_v17, %v2616_v49 }
 0x260   : > { %v5368_v21 = vpop.eup %5367  ;;  %v2388_v45 = vmul.f32 0.70710677, %v6747_v57  ;;  %v4915_v46 = vpop.f32.mrf.mxu1  ;;  %v2540_v55 = vadd.f32 1.0, %v5366_v26  ;;  %v2303_v54 = vmul.f32 0.5, %v6741_v62  ;;  %v5633_v26 = vmov 0  }
 0x261   : > { %v2386_v31 = vmul.f32 0.70710677, %v6753_v18  ;;  %v6763_v16 = vadd.f32 %v4915_v46, %v6448_v33  ;;  %v2538_v3 = vadd.f32 1.0, %v5368_v21  ;;  %v2672_v35 = vpack.c.bf16 %v2615_v20, %v2614_v6  ;;  %3770 = vmatprep.mubr.bf16.mxu1 %v5633_v26 }
 0x262   : > { %v5370_v24 = vpop.eup %5369  ;;  %5381 = verf.f32 %v2388_v45  ;;  %v2158_v56 = vpop.f32.mrf.mxu1  ;;  %v2620_v0 = vmul.f32 %v2540_v55, %v2300_v9  ;;  %v2306_v55 = vmul.f32 0.5, %v6753_v18 }
 0x263   : > { %v2541_v38 = vadd.f32 1.0, %v5370_v24  ;;  %5383 = verf.f32 %v2386_v31  ;;  %v2389_v25 = vmul.f32 0.70710677, %v6763_v16  ;;  %v6775_v50 = vadd.f32 %v6448_v33, %v2158_v56  ;;  %4988 = vmatprep.mubr.msk.bf16.mxu0 %vm1776_vm3, %v2672_v35 }
 0x264   : > { %v4918_v11 = vpop.f32.mrf.mxu1  ;;  %v2618_v53 = vmul.f32 %v2538_v3, %v2298_v34 }
 0x265   : > { %v5372_v48 = vpop.eup %5371  ;;  %v2621_v58 = vmul.f32 %v2541_v38, %v2301_v42  ;;  %v6784_v40 = vadd.f32 %v6781_v44, %v4918_v11  ;;  %4989 = vmatmul.mubr.msk.bf16.gmra.mxu0 %vm1776_vm3, %v2673_v51  ;;  %5385 = verf.f32 %v2389_v25  ;;  %v2387_v22 = vmul.f32 0.70710677, %v6775_v50 }
 0x266   : > { %v5374_v33 = vpop.eup %5373  ;;  %v2539_v37 = vadd.f32 1.0, %v5372_v48  ;;  %v2171_v47 = vpop.f32.mrf.mxu1  ;;  %v2308_v51 = vmul.f32 0.5, %v6747_v57  ;;  %v2309_v38 = vmul.f32 0.5, %v6763_v16  ;;  %v2307_v11 = vmul.f32 0.5, %v6775_v50 }
 0x267   : > { %v2392_v5 = vmul.f32 0.70710677, %v6784_v40  ;;  %5387 = verf.f32 %v2387_v22  ;;  %v6798_v63 = vadd.f32 %v6781_v44, %v2171_v47  ;;  %v2675_v29 = vpack.c.bf16 %v2621_v58, %v2620_v0 }
 0x268   : > { %v2619_v30 = vmul.f32 %v2539_v37, %v2299_v59  ;;  %v4919_v27 = vpop.f32.mrf.mxu1  ;;  %v5376_v39 = vpop.eup %5375  ;;  %v2544_v28 = vadd.f32 1.0, %v5374_v33 }
 0x269   : > { %5389 = verf.f32 %v2392_v5  ;;  %v6801_v19 = vadd.f32 %v6781_v44, %v4919_v27  ;;  %v2542_v4 = vadd.f32 1.0, %v5376_v39  ;;  %v2390_v1 = vmul.f32 0.70710677, %v6798_v63 }
 0x26a   : > { %v5378_v52 = vpop.eup %5377  ;;  %v2174_v23 = vpop.f32.mrf.mxu1  ;;  %v2674_v7 = vpack.c.bf16 %v2619_v30, %v2618_v53  ;;  %v2624_v8 = vmul.f32 %v2544_v28, %v2304_v43  ;;  %v2312_v30 = vmul.f32 0.5, %v6784_v40 }
 0x26b   : > { %v2545_v14 = vadd.f32 1.0, %v5378_v52  ;;  %v2393_v49 = vmul.f32 0.70710677, %v6801_v19  ;;  %v6807_v17 = vadd.f32 %v6781_v44, %v2174_v23  ;;  %5391 = verf.f32 %v2390_v1 }
 0x26c   : > { %4992 = vmatprep.mubr.msk.bf16.mxu0 %vm1776_vm3, %v2674_v7  ;;  %v4922_v6 = vpop.f32.mrf.mxu1  ;;  %v5380_v13 = vpop.eup %5379  ;;  %v2622_v20 = vmul.f32 %v2542_v4, %v2302_v61  ;;  %v2310_v4 = vmul.f32 0.5, %v6798_v63 }
 0x26d   : > { %v2625_v60 = vmul.f32 %v2545_v14, %v2305_v12  ;;  %5393 = verf.f32 %v2393_v49  ;;  %v2391_v15 = vmul.f32 0.70710677, %v6807_v17  ;;  %4993 = vmatmul.mubr.msk.bf16.gmra.mxu0 %vm1776_vm3, %v2675_v29  ;;  %v2543_v32 = vadd.f32 1.0, %v5380_v13 }
 0x26e   : > { %v6815_v21 = vadd.f32 %v6781_v44, %v4922_v6  ;;  %v2187_v62 = vpop.f32.mrf.mxu1  ;;  %v2313_v12 = vmul.f32 0.5, %v6801_v19  ;;  %v2311_v19 = vmul.f32 0.5, %v6807_v17 }
 0x26f   : > { %v5382_v9 = vpop.eup %5381  ;;  %5395 = verf.f32 %v2391_v15  ;;  %v6818_v42 = vadd.f32 %v6781_v44, %v2187_v62  ;;  %v2623_v46 = vmul.f32 %v2543_v32, %v2303_v54  ;;  %v2677_v34 = vpack.c.bf16 %v2625_v60, %v2624_v8 }
 0x270   : > { %v5384_v45 = vpop.eup %5383  ;;  %v2396_v31 = vmul.f32 0.70710677, %v6815_v21  ;;  %v4923_v24 = vpop.f32.mrf.mxu1  ;;  %v2548_v3 = vadd.f32 1.0, %v5382_v9 }
 0x271   : > { %v2394_v56 = vmul.f32 0.70710677, %v6818_v42  ;;  %v6825_v35 = vadd.f32 %v6781_v44, %v4923_v24  ;;  %v2546_v41 = vadd.f32 1.0, %v5384_v45  ;;  %v2676_v59 = vpack.c.bf16 %v2623_v46, %v2622_v20 }
 0x272   : > { %5397 = verf.f32 %v2396_v31  ;;  %v2190_v2 = vpop.f32.mrf.mxu1  ;;  %v5386_v25 = vpop.eup %5385  ;;  %v2628_v33 = vmul.f32 %v2548_v3, %v2308_v51  ;;  %v2316_v51 = vmul.f32 0.5, %v6815_v21 }
 0x273   : > { %5399 = verf.f32 %v2394_v56  ;;  %v2397_v57 = vmul.f32 0.70710677, %v6825_v35  ;;  %v2549_v18 = vadd.f32 1.0, %v5386_v25  ;;  %v6831_v48 = vadd.f32 %v6781_v44, %v2190_v2  ;;  %4996 = vmatprep.mubr.msk.bf16.mxu0 %vm1776_vm3, %v2676_v59 }
 0x274   : > { %v4926_v0 = vpop.f32.mrf.mxu1  ;;  %v5388_v58 = vpop.eup %5387  ;;  %v2626_v37 = vmul.f32 %v2546_v41, %v2306_v55  ;;  %v2317_v55 = vmul.f32 0.5, %v6825_v35  ;;  %v2314_v2 = vmul.f32 0.5, %v6818_v42 }
 0x275   : > { %5401 = verf.f32 %v2397_v57  ;;  %v6835_v16 = vadd.f32 %v6781_v44, %v4926_v0  ;;  %4997 = vmatmul.mubr.msk.bf16.gmra.mxu0 %vm1776_vm3, %v2677_v34  ;;  %v2629_v22 = vmul.f32 %v2549_v18, %v2309_v38  ;;  %v2547_v47 = vadd.f32 1.0, %v5388_v58 }
 0x276   : > { %v5390_v53 = vpop.eup %5389  ;;  %v2395_v50 = vmul.f32 0.70710677, %v6831_v48  ;;  %v2203_v36 = vpop.f32.mrf.mxu1  ;;  %v2315_v35 = vmul.f32 0.5, %v6831_v48 }
 0x277   : > { %v2400_v43 = vmul.f32 0.70710677, %v6835_v16  ;;  %v6841_v5 = vadd.f32 %v6781_v44, %v2203_v36  ;;  %v2627_v10 = vmul.f32 %v2547_v47, %v2307_v11  ;;  %v2679_v29 = vpack.c.bf16 %v2629_v22, %v2628_v33 }
 0x278   : > { %5403 = verf.f32 %v2395_v50  ;;  %v4927_v27 = vpop.f32.mrf.mxu1  ;;  %v5392_v39 = vpop.eup %5391  ;;  %v2552_v28 = vadd.f32 1.0, %v5390_v53  ;;  %v2320_v36 = vmul.f32 0.5, %v6835_v16 }
 0x279   : > { %5405 = verf.f32 %v2400_v43  ;;  %v2398_v52 = vmul.f32 0.70710677, %v6841_v5  ;;  %v2550_v1 = vadd.f32 1.0, %v5392_v39  ;;  %v6848_v23 = vadd.f32 %v6781_v44, %v4927_v27 }
 0x27a   : > { %v5394_v61 = vpop.eup %5393  ;;  %v2206_v7 = vpop.f32.mrf.mxu1  ;;  %v2678_v14 = vpack.c.bf16 %v2627_v10, %v2626_v37  ;;  %v2632_v63 = vmul.f32 %v2552_v28, %v2312_v30  ;;  %v2318_v43 = vmul.f32 0.5, %v6841_v5 }
 0x27b   : > { %v2553_v40 = vadd.f32 1.0, %v5394_v61  ;;  %5407 = verf.f32 %v2398_v52  ;;  %v6852_v49 = vadd.f32 %v6781_v44, %v2206_v7  ;;  %v2401_v6 = vmul.f32 0.70710677, %v6848_v23 }
 0x27c   : > { %v5396_v54 = vpop.eup %5395  ;;  %5000 = vmatprep.mubr.msk.bf16.mxu0 %vm1776_vm3, %v2678_v14  ;;  %v4930_v13 = vpop.f32.mrf.mxu1  ;;  %v2630_v20 = vmul.f32 %v2550_v1, %v2310_v4  ;;  %v2321_v4 = vmul.f32 0.5, %v6848_v23 }
 0x27d   : > { %v2633_v8 = vmul.f32 %v2553_v40, %v2313_v12  ;;  %v2551_v60 = vadd.f32 1.0, %v5396_v54  ;;  %v2399_v15 = vmul.f32 0.70710677, %v6852_v49  ;;  %5001 = vmatmul.mubr.msk.bf16.gmra.mxu0 %vm1776_vm3, %v2679_v29  ;;  %5409 = verf.f32 %v2401_v6 }
 0x27e   : > { %v6859_v17 = vadd.f32 %v6781_v44, %v4930_v13  ;;  %v2219_v32 = vpop.f32.mrf.mxu1  ;;  %v2319_v14 = vmul.f32 0.5, %v6852_v49 }
 0x27f   : > { %v5398_v62 = vpop.eup %5397  ;;  %v2631_v9 = vmul.f32 %v2551_v60, %v2311_v19  ;;  %5411 = verf.f32 %v2399_v15  ;;  %v6862_v45 = vadd.f32 %v6781_v44, %v2219_v32  ;;  %v2681_v34 = vpack.c.bf16 %v2633_v8, %v2632_v63 }
 0x280   : > { %v5400_v46 = vpop.eup %5399  ;;  %v2404_v31 = vmul.f32 0.70710677, %v6859_v17  ;;  %v4931_v24 = vpop.f32.mrf.mxu1  ;;  %v2556_v3 = vadd.f32 1.0, %v5398_v62 }
 0x281   : > { %v2402_v56 = vmul.f32 0.70710677, %v6862_v45  ;;  %v6869_v41 = vadd.f32 %v6781_v44, %v4931_v24  ;;  %v2554_v59 = vadd.f32 1.0, %v5400_v46  ;;  %v2680_v57 = vpack.c.bf16 %v2631_v9, %v2630_v20 }
 0x282   : > { %v5402_v38 = vpop.eup %5401  ;;  %5413 = verf.f32 %v2404_v31  ;;  %v2222_v25 = vpop.f32.mrf.mxu1  ;;  %v2636_v33 = vmul.f32 %v2556_v3, %v2316_v51  ;;  %v2322_v46 = vmul.f32 0.5, %v6862_v45 }
 0x283   : > { %v2557_v21 = vadd.f32 1.0, %v5402_v38  ;;  %5415 = verf.f32 %v2402_v56  ;;  %v2405_v18 = vmul.f32 0.70710677, %v6869_v41  ;;  %v2223_v11 = vadd.f32 %v6781_v44, %v2222_v25  ;;  %5004 = vmatprep.mubr.msk.bf16.mxu0 %vm1776_vm3, %v2680_v57 }
 0x284   : > { %v4934_v0 = vpop.f32.mrf.mxu1  ;;  %v2634_v22 = vmul.f32 %v2554_v59, %v2314_v2 }
 0x285   : > { %v5404_v58 = vpop.eup %5403  ;;  %v2637_v53 = vmul.f32 %v2557_v21, %v2317_v55  ;;  %v6877_v42 = vadd.f32 %v6781_v44, %v4934_v0  ;;  %5005 = vmatmul.mubr.msk.bf16.gmra.mxu0 %vm1776_vm3, %v2681_v34  ;;  %5417 = verf.f32 %v2405_v18  ;;  %v2403_v48 = vmul.f32 0.70710677, %v2223_v11 }
 0x286   : > { %v5406_v37 = vpop.eup %5405  ;;  %v2555_v47 = vadd.f32 1.0, %v5404_v58  ;;  %v2235_v50 = vpop.f32.mrf.mxu1  ;;  %v2325_v55 = vmul.f32 0.5, %v6869_v41  ;;  %v2323_v34 = vmul.f32 0.5, %v2223_v11 }
 0x287   : > { %v2408_v10 = vmul.f32 0.70710677, %v6877_v42  ;;  %v2560_v27 = vadd.f32 1.0, %v5406_v37  ;;  %5419 = verf.f32 %v2403_v48  ;;  %v2236_v39 = vadd.f32 %v6781_v44, %v2235_v50 }
 0x288   : > { %v5408_v30 = vpop.eup %5407  ;;  %v2635_v12 = vmul.f32 %v2555_v47, %v2315_v35  ;;  %v4935_v29 = vpop.f32.mrf.mxu1  ;;  %v2683_v28 = vpack.c.bf16 %v2637_v53, %v2636_v33  ;;  %v2328_v57 = vmul.f32 0.5, %v6877_v42 }
 0x289   : > { %v2558_v52 = vadd.f32 1.0, %v5408_v30  ;;  %5421 = verf.f32 %v2408_v10  ;;  %v2247_v61 = vadd.f32 %v6781_v44, %v4935_v29  ;;  %v2406_v1 = vmul.f32 0.70710677, %v2236_v39  ;;  %v6903_v30 = vld [vmem:[%s7186_s6] ss:$0 sm:$0xff] }
 0x28a   : > { %v2238_v16 = vpop.f32.mrf.mxu1  ;;  %v2682_v7 = vpack.c.bf16 %v2635_v12, %v2634_v22  ;;  %v5410_v5 = vpop.eup %5409  ;;  %v2640_v6 = vmul.f32 %v2560_v27, %v2320_v36  ;;  %v2326_v41 = vmul.f32 0.5, %v2236_v39 }
 0x28b   : > { %v2409_v40 = vmul.f32 0.70710677, %v2247_v61  ;;  %v2239_v19 = vadd.f32 %v6781_v44, %v2238_v16  ;;  %v2561_v13 = vadd.f32 1.0, %v5410_v5  ;;  %5423 = verf.f32 %v2406_v1 }
 0x28c   : > { %v5412_v54 = vpop.eup %5411  ;;  %5008 = vmatprep.mubr.msk.bf16.mxu0 %vm1776_vm3, %v2682_v7  ;;  %v2638_v63 = vmul.f32 %v2558_v52, %v2318_v43  ;;  %v2324_v44 = vmul.f32 0.5, %v6859_v17  ;;  %v2329_v18 = vmul.f32 0.5, %v2247_v61 }
 0x28d   : > { %v2559_v8 = vadd.f32 1.0, %v5412_v54  ;;  %5425 = verf.f32 %v2409_v40  ;;  %v2407_v60 = vmul.f32 0.70710677, %v2239_v19  ;;  %5009 = vmatmul.mubr.msk.bf16.gmra.mxu0 %vm1776_vm3, %v2683_v28  ;;  %v2641_v23 = vmul.f32 %v2561_v13, %v2321_v4 }
 0x28e   : > { %v2327_v53 = vmul.f32 0.5, %v2239_v19 }
 0x28f   : > { %v5414_v15 = vpop.eup %5413  ;;  %v2639_v20 = vmul.f32 %v2559_v8, %v2319_v14  ;;  %5427 = verf.f32 %v2407_v60  ;;  %v2685_v32 = vpack.c.bf16 %v2641_v23, %v2640_v6 }
 0x290   : > { %v5416_v49 = vpop.eup %5415  ;;  %v2564_v62 = vadd.f32 1.0, %v5414_v15 }
 0x291   : > { %v2684_v9 = vpack.c.bf16 %v2639_v20, %v2638_v63  ;;  %v2562_v51 = vadd.f32 1.0, %v5416_v49 }
 0x292   : > { %v5418_v31 = vpop.eup %5417  ;;  %v2644_v56 = vmul.f32 %v2564_v62, %v2324_v44 }
 0x293   : > { %5012 = vmatprep.mubr.msk.bf16.mxu0 %vm1776_vm3, %v2684_v9  ;;  %v2565_v24 = vadd.f32 1.0, %v5418_v31  ;;  %v2642_v2 = vmul.f32 %v2562_v51, %v2322_v46 }
 0x294   : > { %v5420_v3 = vpop.eup %5419 }
 0x295   : > { %5013 = vmatmul.mubr.msk.bf16.gmra.mxu0 %vm1776_vm3, %v2685_v32  ;;  %v2645_v59 = vmul.f32 %v2565_v24, %v2325_v55  ;;  %v2563_v17 = vadd.f32 1.0, %v5420_v3 }
 0x296   : > { %v5422_v38 = vpop.eup %5421 }
 0x297   : > { %v2643_v25 = vmul.f32 %v2563_v17, %v2323_v34  ;;  %v2687_v21 = vpack.c.bf16 %v2645_v59, %v2644_v56  ;;  %v2568_v35 = vadd.f32 1.0, %v5422_v38 }
 0x298   : > { %v5424_v45 = vpop.eup %5423 }
 0x299   : > { %v2566_v58 = vadd.f32 1.0, %v5424_v45  ;;  %v2686_v33 = vpack.c.bf16 %v2643_v25, %v2642_v2  ;;  %v2648_v22 = vmul.f32 %v2568_v35, %v2328_v57 }
 0x29a   : > { %v5426_v0 = vpop.eup %5425 }
 0x29b   : > { %v2569_v11 = vadd.f32 1.0, %v5426_v0  ;;  %5016 = vmatprep.mubr.msk.bf16.mxu0 %vm1776_vm3, %v2686_v33  ;;  %v2646_v47 = vmul.f32 %v2566_v58, %v2326_v41 }
 0x29c   : > { %v5428_v37 = vpop.eup %5427 }
 0x29d   : > { %v2649_v48 = vmul.f32 %v2569_v11, %v2329_v18  ;;  %v2567_v50 = vadd.f32 1.0, %v5428_v37  ;;  %5017 = vmatmul.mubr.msk.bf16.gmra.mxu0 %vm1776_vm3, %v2687_v21 }
 0x29f   : > { %v2647_v42 = vmul.f32 %v2567_v50, %v2327_v53  ;;  %v2689_v36 = vpack.c.bf16 %v2649_v48, %v2648_v22 }
 0x2a1   : > { %v2688_v43 = vpack.c.bf16 %v2647_v42, %v2646_v47 }
 0x2a3   : > { %5020 = vmatprep.mubr.msk.bf16.mxu0 %vm1776_vm3, %v2688_v43 }
 0x2a5   : > { %5021 = vmatmul.mubr.msk.bf16.gmra.mxu0 %vm1776_vm3, %v2689_v36 }
 0x2cb   : > { %v4946_v10 = vpop.f32.mrf.mxu0 }
 0x2cc   : > { %v2892_v61 = vadd.f32 %v4946_v10, %v6903_v30 }
 0x2cd   : > { %v2883_v12 = vpop.f32.mrf.mxu0 }
 0x2ce   : > { %v2884_v27 = vadd.f32 %v6903_v30, %v2883_v12  ;;  %v3284_v14 = vmul.f32 0.70710677, %v2892_v61  ;;  %v3204_v21 = vmul.f32 0.5, %v2892_v61 }
 0x2cf   : > { %v4947_v39 = vpop.f32.mrf.mxu0 }
 0x2d0   : > { %v3282_v29 = vmul.f32 0.70710677, %v2884_v27  ;;  %v2895_v28 = vadd.f32 %v4947_v39, %v6903_v30  ;;  %v3202_v62 = vmul.f32 0.5, %v2884_v27 }
 0x2d1   : > { %v2886_v52 = vpop.f32.mrf.mxu0 }
 0x2d2   : > { %5429 = verf.f32 %v3282_v29  ;;  %v2887_v4 = vadd.f32 %v6903_v30, %v2886_v52  ;;  %v3285_v16 = vmul.f32 0.70710677, %v2895_v28  ;;  %v3205_v57 = vmul.f32 0.5, %v2895_v28 }
 0x2d3   : > { %v4950_v1 = vpop.f32.mrf.mxu0 }
 0x2d4   : > { %v3283_v7 = vmul.f32 0.70710677, %v2887_v4  ;;  %v2908_v32 = vadd.f32 %v4950_v1, %v6903_v30  ;;  %v3203_v9 = vmul.f32 0.5, %v2887_v4 }
 0x2d5   : > { %v2899_v5 = vpop.f32.mrf.mxu0 }
 0x2d6   : > { %5431 = verf.f32 %v3283_v7  ;;  %v2900_v54 = vadd.f32 %v6903_v30, %v2899_v5  ;;  %v3288_v3 = vmul.f32 0.70710677, %v2908_v32 }
 0x2d7   : > { %v4951_v40 = vpop.f32.mrf.mxu0  ;;  %5433 = verf.f32 %v3285_v16 }
 0x2d8   : > { %5435 = verf.f32 %v3284_v14  ;;  %v3286_v8 = vmul.f32 0.70710677, %v2900_v54  ;;  %v2911_v15 = vadd.f32 %v4951_v40, %v6903_v30  ;;  %v3206_v36 = vmul.f32 0.5, %v2900_v54 }
 0x2d9   : > { %v2902_v19 = vpop.f32.mrf.mxu0  ;;  %v3208_v14 = vmul.f32 0.5, %v2908_v32 }
 0x2da   : > { %v2903_v6 = vadd.f32 %v6903_v30, %v2902_v19  ;;  %v3289_v51 = vmul.f32 0.70710677, %v2911_v15  ;;  %v3209_v7 = vmul.f32 0.5, %v2911_v15 }
 0x2dc   : > { %v3287_v13 = vmul.f32 0.70710677, %v2903_v6  ;;  %v4954_v63 = vpop.f32.mrf.mxu0  ;;  %v3207_v50 = vmul.f32 0.5, %v2903_v6 }
 0x2dd   : > { %v2924_v42 = vadd.f32 %v4954_v63, %v6903_v30 }
 0x2de   : > { %v2915_v60 = vpop.f32.mrf.mxu0  ;;  %5437 = verf.f32 %v3287_v13 }
 0x2df   : > { %v5430_v23 = vpop.eup %5429  ;;  %5439 = verf.f32 %v3286_v8  ;;  %v2916_v45 = vadd.f32 %v6903_v30, %v2915_v60  ;;  %v3292_v29 = vmul.f32 0.70710677, %v2924_v42 }
 0x2e0   : > { %v4955_v20 = vpop.f32.mrf.mxu0  ;;  %v3442_v49 = vadd.f32 1.0, %v5430_v23  ;;  %5441 = verf.f32 %v3289_v51 }
 0x2e1   : > { %5443 = verf.f32 %v3288_v3  ;;  %v3290_v33 = vmul.f32 0.70710677, %v2916_v45  ;;  %v2927_v37 = vadd.f32 %v4955_v20, %v6903_v30  ;;  %v3210_v32 = vmul.f32 0.5, %v2916_v45 }
 0x2e2   : > { %v2918_v31 = vpop.f32.mrf.mxu0  ;;  %v3522_v24 = vmul.f32 %v3442_v49, %v3202_v62 }
 0x2e3   : > { %v5432_v44 = vpop.eup %5431  ;;  %v2919_v59 = vadd.f32 %v6903_v30, %v2918_v31  ;;  %v3293_v10 = vmul.f32 0.70710677, %v2927_v37 }
 0x2e4   : > { %v3443_v46 = vadd.f32 1.0, %v5432_v44  ;;  %v5434_v55 = vpop.eup %5433  ;;  %v4958_v17 = vpop.f32.mrf.mxu0 }
 0x2e5   : > { %v5436_v56 = vpop.eup %5435  ;;  %v3445_v38 = vadd.f32 1.0, %v5434_v55  ;;  %v3291_v41 = vmul.f32 0.70710677, %v2919_v59  ;;  %v3211_v44 = vmul.f32 0.5, %v2919_v59  ;;  %v2940_v62 = vadd.f32 %v4958_v17, %v6903_v30 }
 0x2e6   : > { %v3523_v34 = vmul.f32 %v3443_v46, %v3203_v9  ;;  %v3444_v25 = vadd.f32 1.0, %v5436_v56  ;;  %v2931_v0 = vpop.f32.mrf.mxu0  ;;  %v3213_v17 = vmul.f32 0.5, %v2927_v37 }
 0x2e7   : > { %v3525_v35 = vmul.f32 %v3445_v38, %v3205_v57  ;;  %5445 = verf.f32 %v3291_v41  ;;  %v2932_v5 = vadd.f32 %v6903_v30, %v2931_v0  ;;  %v3212_v57 = vmul.f32 0.5, %v2924_v42 }
 0x2e8   : > { %v3602_v2 = vpack.c.bf16 %v3523_v34, %v3522_v24  ;;  %v3524_v58 = vmul.f32 %v3444_v25, %v3204_v21  ;;  %v4959_v47 = vpop.f32.mrf.mxu0  ;;  %5447 = verf.f32 %v3290_v33  ;;  %v3296_v24 = vmul.f32 0.70710677, %v2940_v62 }
 0x2e9   : > { %5449 = verf.f32 %v3293_v10  ;;  %v3294_v63 = vmul.f32 0.70710677, %v2932_v5  ;;  %v2943_v23 = vadd.f32 %v4959_v47, %v6903_v30 }
 0x2ea   : > { %3771 = vmatmul.mubr.bf16.vlgmr.msra.gmra.mxu1 %v3602_v2  ;;  %v3603_v22 = vpack.c.bf16 %v3525_v35, %v3524_v58  ;;  %v2934_v27 = vpop.f32.mrf.mxu0  ;;  %5451 = verf.f32 %v3292_v29 }
 0x2eb   : > { %3780 = vmatprep.mubr.bf16.mxu1 %v5633_v26  ;;  %v5438_v18 = vpop.eup %5437  ;;  %v2935_v61 = vadd.f32 %v6903_v30, %v2934_v27  ;;  %v3297_v46 = vmul.f32 0.70710677, %v2943_v23 }
 0x2ec   : > { %v5440_v11 = vpop.eup %5439  ;;  %v3447_v53 = vadd.f32 1.0, %v5438_v18 }
 0x2ed   : > { %v3446_v48 = vadd.f32 1.0, %v5440_v11  ;;  %v5442_v12 = vpop.eup %5441  ;;  %v4962_v1 = vpop.f32.mrf.mxu0  ;;  %v3295_v19 = vmul.f32 0.70710677, %v2935_v61  ;;  %v3215_v47 = vmul.f32 0.5, %v2935_v61 }
 0x2ee   : > { %v3527_v43 = vmul.f32 %v3447_v53, %v3207_v50  ;;  %v5444_v28 = vpop.eup %5443  ;;  %v3449_v52 = vadd.f32 1.0, %v5442_v12  ;;  %v3214_v50 = vmul.f32 0.5, %v2932_v5 }
 0x2ef   : > { %v3526_v39 = vmul.f32 %v3446_v48, %v3206_v36  ;;  %v3448_v16 = vadd.f32 1.0, %v5444_v28  ;;  %v2947_v6 = vpop.f32.mrf.mxu0  ;;  %5453 = verf.f32 %v3295_v19  ;;  %v2956_v48 = vadd.f32 %v4962_v1, %v6903_v30 }
 0x2f0   : > { %v3529_v40 = vmul.f32 %v3449_v52, %v3209_v7  ;;  %5455 = verf.f32 %v3294_v63  ;;  %v2948_v25 = vadd.f32 %v6903_v30, %v2947_v6  ;;  %v3217_v1 = vmul.f32 0.5, %v2943_v23 }
 0x2f1   : > { %v3604_v4 = vpack.c.bf16 %v3527_v43, %v3526_v39  ;;  %v3528_v13 = vmul.f32 %v3448_v16, %v3208_v14  ;;  %v4963_v15 = vpop.f32.mrf.mxu0  ;;  %5457 = verf.f32 %v3297_v46  ;;  %v3300_v27 = vmul.f32 0.70710677, %v2956_v48 }
 0x2f2   : > { %3781 = vmatmul.mubr.bf16.gmra.mxu1 %v3603_v22  ;;  %5459 = verf.f32 %v3296_v24  ;;  %v3298_v0 = vmul.f32 0.70710677, %v2948_v25  ;;  %v2959_v11 = vadd.f32 %v4963_v15, %v6903_v30  ;;  %v3216_v7 = vmul.f32 0.5, %v2940_v62 }
 0x2f3   : > { %3790 = vmatprep.mubr.bf16.mxu1 %v5633_v26  ;;  %v3605_v20 = vpack.c.bf16 %v3529_v40, %v3528_v13  ;;  %v2950_v55 = vpop.f32.mrf.mxu0 }
 0x2f4   : > { %v5446_v54 = vpop.eup %5445  ;;  %v2951_v56 = vadd.f32 %v6903_v30, %v2950_v55  ;;  %v3301_v36 = vmul.f32 0.70710677, %v2959_v11 }
 0x2f5   : > { %v5448_v8 = vpop.eup %5447  ;;  %v3451_v60 = vadd.f32 1.0, %v5446_v54  ;;  %v4966_v2 = vpop.f32.mrf.mxu0 }
 0x2f6   : > { %v3450_v49 = vadd.f32 1.0, %v5448_v8  ;;  %v5450_v51 = vpop.eup %5449  ;;  %v3299_v21 = vmul.f32 0.70710677, %v2951_v56  ;;  %v3219_v15 = vmul.f32 0.5, %v2951_v56 }
 0x2f7   : > { %v3531_v9 = vmul.f32 %v3451_v60, %v3211_v44  ;;  %v5452_v34 = vpop.eup %5451  ;;  %v3453_v3 = vadd.f32 1.0, %v5450_v51  ;;  %v2963_v41 = vpop.f32.mrf.mxu0  ;;  %v3218_v44 = vmul.f32 0.5, %v2948_v25 }
 0x2f8   : > { %v3530_v31 = vmul.f32 %v3450_v49, %v3210_v32  ;;  %v3452_v59 = vadd.f32 1.0, %v5452_v34  ;;  %5461 = verf.f32 %v3299_v21  ;;  %v2964_v16 = vadd.f32 %v6903_v30, %v2963_v41 }
 0x2f9   : > { %v3533_v45 = vmul.f32 %v3453_v3, %v3213_v17  ;;  %v4967_v37 = vpop.f32.mrf.mxu0  ;;  %5463 = verf.f32 %v3298_v0  ;;  %v2972_v49 = vadd.f32 %v4966_v2, %v6903_v30  ;;  %v3221_v2 = vmul.f32 0.5, %v2959_v11 }
 0x2fa   : > { %3791 = vmatmul.mubr.bf16.gmra.mxu1 %v3604_v4  ;;  %v3606_v38 = vpack.c.bf16 %v3531_v9, %v3530_v31  ;;  %v3532_v18 = vmul.f32 %v3452_v59, %v3212_v57  ;;  %5465 = verf.f32 %v3301_v36  ;;  %v3302_v6 = vmul.f32 0.70710677, %v2964_v16 }
 0x2fb   : > { %3800 = vmatprep.mubr.bf16.mxu1 %v5633_v26  ;;  %v2966_v10 = vpop.f32.mrf.mxu0  ;;  %5467 = verf.f32 %v3300_v27  ;;  %v2975_v8 = vadd.f32 %v4967_v37, %v6903_v30  ;;  %v3304_v55 = vmul.f32 0.70710677, %v2972_v49  ;;  %v3220_v17 = vmul.f32 0.5, %v2956_v48 }
 0x2fc   : > { %v5454_v35 = vpop.eup %5453  ;;  %v3607_v53 = vpack.c.bf16 %v3533_v45, %v3532_v18  ;;  %v2967_v28 = vadd.f32 %v6903_v30, %v2966_v10 }
 0x2fd   : > { %v5456_v58 = vpop.eup %5455  ;;  %v3455_v33 = vadd.f32 1.0, %v5454_v35  ;;  %v4970_v61 = vpop.f32.mrf.mxu0  ;;  %v3305_v32 = vmul.f32 0.70710677, %v2975_v8 }
 0x2fe   : > { %v3454_v22 = vadd.f32 1.0, %v5456_v58  ;;  %v5458_v43 = vpop.eup %5457  ;;  %v3303_v14 = vmul.f32 0.70710677, %v2967_v28  ;;  %v3223_v37 = vmul.f32 0.5, %v2967_v28 }
 0x2ff   : > { %v3535_v42 = vmul.f32 %v3455_v33, %v3215_v47  ;;  %v5460_v39 = vpop.eup %5459  ;;  %v3457_v29 = vadd.f32 1.0, %v5458_v43  ;;  %v2979_v19 = vpop.f32.mrf.mxu0  ;;  %v3222_v47 = vmul.f32 0.5, %v2964_v16 }
 0x300   : > { %v3534_v12 = vmul.f32 %v3454_v22, %v3214_v50  ;;  %v3456_v4 = vadd.f32 1.0, %v5460_v39  ;;  %5469 = verf.f32 %v3303_v14  ;;  %v2980_v59 = vadd.f32 %v6903_v30, %v2979_v19 }
 0x301   : > { %v3537_v5 = vmul.f32 %v3457_v29, %v3217_v1  ;;  %v4971_v23 = vpop.f32.mrf.mxu0  ;;  %5471 = verf.f32 %v3302_v6  ;;  %v2988_v22 = vadd.f32 %v4970_v61, %v6903_v30  ;;  %v3225_v61 = vmul.f32 0.5, %v2975_v8 }
 0x302   : > { %3801 = vmatmul.mubr.bf16.gmra.mxu1 %v3605_v20  ;;  %v3608_v52 = vpack.c.bf16 %v3535_v42, %v3534_v12  ;;  %v3536_v54 = vmul.f32 %v3456_v4, %v3216_v7  ;;  %5473 = verf.f32 %v3305_v32  ;;  %v3306_v41 = vmul.f32 0.70710677, %v2980_v59 }
 0x303   : > { %3810 = vmatprep.mubr.bf16.mxu1 %v5633_v26  ;;  %v2982_v46 = vpop.f32.mrf.mxu0  ;;  %5475 = verf.f32 %v3304_v55  ;;  %v2991_v58 = vadd.f32 %v4971_v23, %v6903_v30  ;;  %v3308_v10 = vmul.f32 0.70710677, %v2988_v22  ;;  %v3224_v1 = vmul.f32 0.5, %v2972_v49 }
 0x304   : > { %v3609_v60 = vpack.c.bf16 %v3537_v5, %v3536_v54  ;;  %v2983_v34 = vadd.f32 %v6903_v30, %v2982_v46 }
 0x305   : > { %v5462_v40 = vpop.eup %5461  ;;  %v4974_v56 = vpop.f32.mrf.mxu0  ;;  %v3309_v50 = vmul.f32 0.70710677, %v2991_v58 }
 0x306   : > { %v5464_v13 = vpop.eup %5463  ;;  %v3459_v63 = vadd.f32 1.0, %v5462_v40  ;;  %v3307_v57 = vmul.f32 0.70710677, %v2983_v34  ;;  %v3227_v23 = vmul.f32 0.5, %v2983_v34 }
 0x307   : > { %v3458_v20 = vadd.f32 1.0, %v5464_v13  ;;  %v5466_v9 = vpop.eup %5465  ;;  %v2995_v21 = vpop.f32.mrf.mxu0 }
 0x308   : > { %v3539_v62 = vmul.f32 %v3459_v63, %v3219_v15  ;;  %v5468_v31 = vpop.eup %5467  ;;  %v3461_v24 = vadd.f32 1.0, %v5466_v9  ;;  %5477 = verf.f32 %v3307_v57  ;;  %v2996_v4 = vadd.f32 %v6903_v30, %v2995_v21 }
 0x309   : > { %v3538_v51 = vmul.f32 %v3458_v20, %v3218_v44  ;;  %v4975_v11 = vpop.f32.mrf.mxu0  ;;  %5479 = verf.f32 %v3306_v41  ;;  %v3004_v20 = vadd.f32 %v4974_v56, %v6903_v30  ;;  %v3226_v15 = vmul.f32 0.5, %v2980_v59 }
 0x30a   : > { %3811 = vmatmul.mubr.bf16.gmra.mxu1 %v3606_v38  ;;  %v3460_v38 = vadd.f32 1.0, %v5468_v31  ;;  %v3541_v25 = vmul.f32 %v3461_v24, %v3221_v2  ;;  %5481 = verf.f32 %v3309_v50  ;;  %v3310_v19 = vmul.f32 0.70710677, %v2996_v4 }
 0x30b   : > { %3820 = vmatprep.mubr.bf16.mxu1 %v5633_v26  ;;  %v3610_v3 = vpack.c.bf16 %v3539_v62, %v3538_v51  ;;  %v2998_v36 = vpop.f32.mrf.mxu0  ;;  %5483 = verf.f32 %v3308_v10  ;;  %v3007_v13 = vadd.f32 %v4975_v11, %v6903_v30  ;;  %v3312_v46 = vmul.f32 0.70710677, %v3004_v20 }
 0x30c   : > { %v3540_v35 = vmul.f32 %v3460_v38, %v3220_v17  ;;  %v2999_v39 = vadd.f32 %v6903_v30, %v2998_v36  ;;  %v3229_v56 = vmul.f32 0.5, %v2991_v58  ;;  %v3228_v2 = vmul.f32 0.5, %v2988_v22 }
 0x30d   : > { %v5470_v45 = vpop.eup %5469  ;;  %v4978_v28 = vpop.f32.mrf.mxu0  ;;  %v3313_v44 = vmul.f32 0.70710677, %v3007_v13 }
 0x30e   : > { %v5472_v18 = vpop.eup %5471  ;;  %v3463_v0 = vadd.f32 1.0, %v5470_v45  ;;  %v3611_v33 = vpack.c.bf16 %v3541_v25, %v3540_v35  ;;  %v3311_v7 = vmul.f32 0.70710677, %v2999_v39  ;;  %v3231_v11 = vmul.f32 0.5, %v2999_v39 }
 0x30f   : > { %v5474_v42 = vpop.eup %5473  ;;  %v3011_v14 = vpop.f32.mrf.mxu0 }
 0x310   : > { %v3543_v48 = vmul.f32 %v3463_v0, %v3223_v37  ;;  %v5476_v12 = vpop.eup %5475  ;;  %v3465_v27 = vadd.f32 1.0, %v5474_v42  ;;  %5485 = verf.f32 %v3311_v7  ;;  %v3012_v38 = vadd.f32 %v6903_v30, %v3011_v14 }
 0x311   : > { %v4979_v8 = vpop.f32.mrf.mxu0  ;;  %5487 = verf.f32 %v3310_v19  ;;  %v3230_v37 = vmul.f32 0.5, %v2996_v4 }
 0x312   : > { %3821 = vmatmul.mubr.bf16.gmra.mxu1 %v3607_v53  ;;  %v3462_v53 = vadd.f32 1.0, %v5472_v18  ;;  %v3545_v16 = vmul.f32 %v3465_v27, %v3225_v61  ;;  %5489 = verf.f32 %v3313_v44  ;;  %v3314_v21 = vmul.f32 0.70710677, %v3012_v38 }
 0x313   : > { %3830 = vmatprep.mubr.bf16.mxu1 %v5633_v26  ;;  %v3014_v32 = vpop.f32.mrf.mxu0  ;;  %5491 = verf.f32 %v3312_v46  ;;  %v3023_v18 = vadd.f32 %v4979_v8, %v6903_v30  ;;  %v3232_v61 = vmul.f32 0.5, %v3004_v20 }
 0x314   : > { %v3542_v43 = vmul.f32 %v3462_v53, %v3222_v47  ;;  %v3015_v31 = vadd.f32 %v6903_v30, %v3014_v32  ;;  %v3020_v53 = vadd.f32 %v4978_v28, %v6903_v30  ;;  %v3233_v28 = vmul.f32 0.5, %v3007_v13 }
 0x315   : > { %v5478_v5 = vpop.eup %5477  ;;  %v4982_v34 = vpop.f32.mrf.mxu0  ;;  %v3317_v47 = vmul.f32 0.70710677, %v3023_v18  ;;  %v3234_v13 = vmul.f32 0.5, %v3012_v38 }
 0x316   : > { %v3612_v29 = vpack.c.bf16 %v3543_v48, %v3542_v43  ;;  %v5480_v54 = vpop.eup %5479  ;;  %v3467_v6 = vadd.f32 1.0, %v5478_v5  ;;  %v3315_v17 = vmul.f32 0.70710677, %v3015_v31  ;;  %v3316_v36 = vmul.f32 0.70710677, %v3020_v53 }
 0x317   : > { %v5482_v62 = vpop.eup %5481  ;;  %v3027_v57 = vpop.f32.mrf.mxu0 }
 0x318   : > { %v3547_v49 = vmul.f32 %v3467_v6, %v3227_v23  ;;  %v5484_v51 = vpop.eup %5483  ;;  %v3469_v55 = vadd.f32 1.0, %v5482_v62  ;;  %5493 = verf.f32 %v3315_v17  ;;  %v3036_v23 = vadd.f32 %v4982_v34, %v6903_v30 }
 0x319   : > { %v4983_v58 = vpop.f32.mrf.mxu0  ;;  %5495 = verf.f32 %v3314_v21  ;;  %v3237_v34 = vmul.f32 0.5, %v3023_v18 }
 0x31a   : > { %3831 = vmatmul.mubr.bf16.gmra.mxu1 %v3608_v52  ;;  %v3464_v52 = vadd.f32 1.0, %v5476_v12  ;;  %v3549_v59 = vmul.f32 %v3469_v55, %v3229_v56  ;;  %5497 = verf.f32 %v3317_v47  ;;  %v3320_v32 = vmul.f32 0.70710677, %v3036_v23 }
 0x31b   : > { %3840 = vmatprep.mubr.bf16.mxu1 %v5633_v26  ;;  %v3030_v50 = vpop.f32.mrf.mxu0  ;;  %5499 = verf.f32 %v3316_v36 }
 0x31c   : > { %v3544_v40 = vmul.f32 %v3464_v52, %v3224_v1  ;;  %v3031_v12 = vadd.f32 %v6903_v30, %v3030_v50  ;;  %v3028_v52 = vadd.f32 %v6903_v30, %v3027_v57 }
 0x31d   : > { %v5486_v25 = vpop.eup %5485  ;;  %v4986_v39 = vpop.f32.mrf.mxu0 }
 0x31e   : > { %v3613_v63 = vpack.c.bf16 %v3545_v16, %v3544_v40  ;;  %v5488_v35 = vpop.eup %5487  ;;  %v3471_v41 = vadd.f32 1.0, %v5486_v25  ;;  %v3319_v1 = vmul.f32 0.70710677, %v3031_v12  ;;  %v3318_v14 = vmul.f32 0.70710677, %v3028_v52 }
 0x31f   : > { %v5490_v48 = vpop.eup %5489  ;;  %v3043_v7 = vpop.f32.mrf.mxu0 }
 0x320   : > { %v3551_v22 = vmul.f32 %v3471_v41, %v3231_v11  ;;  %v5492_v43 = vpop.eup %5491  ;;  %v3473_v10 = vadd.f32 1.0, %v5490_v48  ;;  %5501 = verf.f32 %v3319_v1  ;;  %v3044_v56 = vadd.f32 %v6903_v30, %v3043_v7 }
 0x321   : > { %5503 = verf.f32 %v3318_v14  ;;  %v3052_v11 = vadd.f32 %v4986_v39, %v6903_v30 }
 0x322   : > { %3841 = vmatmul.mubr.bf16.gmra.mxu1 %v3609_v60  ;;  %v3466_v60 = vadd.f32 1.0, %v5480_v54  ;;  %v3553_v4 = vmul.f32 %v3473_v10, %v3233_v28  ;;  %v3039_v54 = vadd.f32 %v4983_v58, %v6903_v30  ;;  %v3322_v57 = vmul.f32 0.70710677, %v3044_v56 }
 0x323   : > { %3850 = vmatprep.mubr.bf16.mxu1 %v5633_v26  ;;  %v3324_v50 = vmul.f32 0.70710677, %v3052_v11 }
 0x324   : > { %v3546_v9 = vmul.f32 %v3466_v60, %v3226_v15  ;;  %v3235_v60 = vmul.f32 0.5, %v3015_v31  ;;  %v3321_v15 = vmul.f32 0.70710677, %v3039_v54  ;;  %v3241_v39 = vmul.f32 0.5, %v3039_v54 }
 0x325   : > { %v5494_v16 = vpop.eup %5493 }
 0x326   : > { %v3614_v24 = vpack.c.bf16 %v3547_v49, %v3546_v9  ;;  %v5496_v40 = vpop.eup %5495  ;;  %v3475_v19 = vadd.f32 1.0, %v5494_v16  ;;  %5505 = verf.f32 %v3321_v15 }
 0x327   : > { %v3474_v8 = vadd.f32 1.0, %v5496_v40  ;;  %v5498_v49 = vpop.eup %5497  ;;  %5507 = verf.f32 %v3320_v32 }
 0x328   : > { %v3555_v20 = vmul.f32 %v3475_v19, %v3235_v60  ;;  %v5500_v9 = vpop.eup %5499  ;;  %v3477_v46 = vadd.f32 1.0, %v5498_v49 }
 0x329   : > { %v3554_v62 = vmul.f32 %v3474_v8, %v3234_v13 }
 0x32a   : > { %3851 = vmatmul.mubr.bf16.gmra.mxu1 %v3610_v3  ;;  %v3468_v3 = vadd.f32 1.0, %v5484_v51  ;;  %v3557_v38 = vmul.f32 %v3477_v46, %v3237_v34 }
 0x32b   : > { %3860 = vmatprep.mubr.bf16.mxu1 %v5633_v26  ;;  %v3618_v55 = vpack.c.bf16 %v3555_v20, %v3554_v62 }
 0x32c   : > { %v3548_v45 = vmul.f32 %v3468_v3, %v3228_v2  ;;  %v3476_v3 = vadd.f32 1.0, %v5500_v9 }
 0x32e   : > { %v3615_v0 = vpack.c.bf16 %v3549_v59, %v3548_v45  ;;  %v5502_v59 = vpop.eup %5501 }
 0x32f   : > { %v5504_v45 = vpop.eup %5503  ;;  %v3479_v21 = vadd.f32 1.0, %v5502_v59 }
 0x330   : > { %v3478_v58 = vadd.f32 1.0, %v5504_v45 }
 0x332   : > { %3861 = vmatmul.mubr.bf16.gmra.mxu1 %v3611_v33  ;;  %v3470_v33 = vadd.f32 1.0, %v5488_v35 }
 0x333   : > { %3870 = vmatprep.mubr.bf16.mxu1 %v5633_v26 }
 0x334   : > { %v3550_v42 = vmul.f32 %v3470_v33, %v3230_v37  ;;  %v3239_v33 = vmul.f32 0.5, %v3031_v12 }
 0x336   : > { %v3616_v27 = vpack.c.bf16 %v3551_v22, %v3550_v42  ;;  %v5506_v22 = vpop.eup %5505 }
 0x337   : > { %v5508_v42 = vpop.eup %5507  ;;  %v3481_v36 = vadd.f32 1.0, %v5506_v22 }
 0x33a   : > { %3871 = vmatmul.mubr.bf16.gmra.mxu1 %v3612_v29  ;;  %v3472_v29 = vadd.f32 1.0, %v5492_v43 }
 0x33b   : > { %3880 = vmatprep.mubr.bf16.mxu1 %v5633_v26 }
 0x33c   : > { %v3552_v5 = vmul.f32 %v3472_v29, %v3232_v61  ;;  %v3480_v29 = vadd.f32 1.0, %v5508_v42 }
 0x33e   : > { %v3617_v6 = vpack.c.bf16 %v3553_v4, %v3552_v5 }
 0x342   : > { %3881 = vmatmul.mubr.bf16.gmra.mxu1 %v3613_v63  ;;  %v4987_v63 = vpop.f32.mrf.mxu0 }
 0x343   : > { %3890 = vmatprep.mubr.bf16.mxu1 %v5633_v26  ;;  %v3055_v35 = vadd.f32 %v4987_v63, %v6903_v30 }
 0x344   : > { %v3046_v44 = vpop.f32.mrf.mxu0 }
 0x345   : > { %v3047_v51 = vadd.f32 %v6903_v30, %v3046_v44  ;;  %v3325_v37 = vmul.f32 0.70710677, %v3055_v35 }
 0x346   : > { %v4990_v31 = vpop.f32.mrf.mxu0 }
 0x347   : > { %v3323_v2 = vmul.f32 0.70710677, %v3047_v51  ;;  %v3243_v63 = vmul.f32 0.5, %v3047_v51  ;;  %v3068_v8 = vadd.f32 %v4990_v31, %v6903_v30  ;;  %v3245_v31 = vmul.f32 0.5, %v3055_v35 }
 0x348   : > { %v3059_v17 = vpop.f32.mrf.mxu0 }
 0x349   : > { %5509 = verf.f32 %v3323_v2  ;;  %v3060_v28 = vadd.f32 %v6903_v30, %v3059_v17  ;;  %v3328_v44 = vmul.f32 0.70710677, %v3068_v8 }
 0x34a   : > { %3891 = vmatmul.mubr.bf16.gmra.mxu1 %v3614_v24  ;;  %v3236_v24 = vmul.f32 0.5, %v3020_v53  ;;  %v4991_v18 = vpop.f32.mrf.mxu0  ;;  %5511 = verf.f32 %v3322_v57  ;;  %v3559_v53 = vmul.f32 %v3479_v21, %v3239_v33 }
 0x34b   : > { %3900 = vmatprep.mubr.bf16.mxu1 %v5633_v26  ;;  %5513 = verf.f32 %v3325_v37  ;;  %v3326_v7 = vmul.f32 0.70710677, %v3060_v28  ;;  %v3071_v19 = vadd.f32 %v4991_v18, %v6903_v30 }
 0x34c   : > { %v3556_v25 = vmul.f32 %v3476_v3, %v3236_v24  ;;  %v3062_v47 = vpop.f32.mrf.mxu0  ;;  %5515 = verf.f32 %v3324_v50 }
 0x34d   : > { %v3063_v10 = vadd.f32 %v6903_v30, %v3062_v47 }
 0x34e   : > { %v3619_v41 = vpack.c.bf16 %v3557_v38, %v3556_v25  ;;  %v4994_v12 = vpop.f32.mrf.mxu0 }
 0x34f   : > { %v3327_v61 = vmul.f32 0.70710677, %v3063_v10  ;;  %v3247_v18 = vmul.f32 0.5, %v3063_v10 }
 0x350   : > { %v3075_v1 = vpop.f32.mrf.mxu0 }
 0x351   : > { %5517 = verf.f32 %v3327_v61  ;;  %v3076_v3 = vadd.f32 %v6903_v30, %v3075_v1 }
 0x352   : > { %3901 = vmatmul.mubr.bf16.gmra.mxu1 %v3615_v0  ;;  %v3238_v0 = vmul.f32 0.5, %v3028_v52  ;;  %v3561_v52 = vmul.f32 %v3481_v36, %v3241_v39  ;;  %v4995_v54 = vpop.f32.mrf.mxu0  ;;  %5519 = verf.f32 %v3326_v7 }
 0x353   : > { %3910 = vmatprep.mubr.bf16.mxu1 %v5633_v26  ;;  %v3330_v17 = vmul.f32 0.70710677, %v3076_v3  ;;  %v3087_v21 = vadd.f32 %v4995_v54, %v6903_v30 }
 0x354   : > { %v3558_v48 = vmul.f32 %v3478_v58, %v3238_v0  ;;  %v3078_v15 = vpop.f32.mrf.mxu0  ;;  %v3084_v58 = vadd.f32 %v4994_v12, %v6903_v30  ;;  %v3249_v12 = vmul.f32 0.5, %v3071_v19 }
 0x355   : > { %v3079_v46 = vadd.f32 %v6903_v30, %v3078_v15 }
 0x356   : > { %v3620_v43 = vpack.c.bf16 %v3559_v53, %v3558_v48  ;;  %v5510_v4 = vpop.eup %5509  ;;  %v4998_v51 = vpop.f32.mrf.mxu0  ;;  %v3332_v47 = vmul.f32 0.70710677, %v3084_v58 }
 0x357   : > { %v5512_v5 = vpop.eup %5511  ;;  %v3483_v40 = vadd.f32 1.0, %v5510_v4  ;;  %v3251_v54 = vmul.f32 0.5, %v3079_v46 }
 0x358   : > { %v3482_v13 = vadd.f32 1.0, %v5512_v5  ;;  %v5514_v20 = vpop.eup %5513  ;;  %v3091_v2 = vpop.f32.mrf.mxu0 }
 0x359   : > { %v3563_v60 = vmul.f32 %v3483_v40, %v3243_v63  ;;  %v5516_v62 = vpop.eup %5515  ;;  %v3485_v32 = vadd.f32 1.0, %v5514_v20  ;;  %v3250_v40 = vmul.f32 0.5, %v3076_v3 }
 0x35a   : > { %3911 = vmatmul.mubr.bf16.gmra.mxu1 %v3616_v27  ;;  %v3240_v27 = vmul.f32 0.5, %v3036_v23  ;;  %v3329_v23 = vmul.f32 0.70710677, %v3071_v19  ;;  %v3484_v24 = vadd.f32 1.0, %v5516_v62  ;;  %v4999_v35 = vpop.f32.mrf.mxu0 }
 0x35b   : > { %3920 = vmatprep.mubr.bf16.mxu1 %v5633_v26  ;;  %v3565_v34 = vmul.f32 %v3485_v32, %v3245_v31 }
 0x35c   : > { %v3560_v16 = vmul.f32 %v3480_v29, %v3240_v27  ;;  %5521 = verf.f32 %v3329_v23  ;;  %v3094_v37 = vpop.f32.mrf.mxu0  ;;  %v3092_v29 = vadd.f32 %v6903_v30, %v3091_v2 }
 0x35d   : > { %5523 = verf.f32 %v3328_v44  ;;  %v6980_v36 = vadd.f32 %v6903_v30, %v3094_v37 }
 0x35e   : > { %v3621_v14 = vpack.c.bf16 %v3561_v52, %v3560_v16  ;;  %v5518_v38 = vpop.eup %5517  ;;  %v6982_v10 = vpop.f32.mrf.mxu0  ;;  %v3334_v1 = vmul.f32 0.70710677, %v3092_v29 }
 0x35f   : > { %v5520_v25 = vpop.eup %5519  ;;  %v3487_v45 = vadd.f32 1.0, %v5518_v38 }
 0x360   : > { %v3486_v0 = vadd.f32 1.0, %v5520_v25  ;;  %v3107_v61 = vpop.f32.mrf.mxu0 }
 0x361   : > { %v3567_v33 = vmul.f32 %v3487_v45, %v3247_v18  ;;  %v3254_v18 = vmul.f32 0.5, %v3092_v29 }
 0x362   : > { %3921 = vmatmul.mubr.bf16.gmra.mxu1 %v3617_v6  ;;  %v3242_v6 = vmul.f32 0.5, %v3044_v56  ;;  %v3331_v56 = vmul.f32 0.70710677, %v3079_v46  ;;  %v5003_v19 = vpop.f32.mrf.mxu0 }
 0x363   : > { %3930 = vmatprep.mubr.bf16.mxu1 %v5633_v26 }
 0x364   : > { %v3562_v49 = vmul.f32 %v3482_v13, %v3242_v6  ;;  %5525 = verf.f32 %v3331_v56  ;;  %v6991_v13 = vadd.f32 %v4998_v51, %v6903_v30  ;;  %v3110_v23 = vpop.f32.mrf.mxu0  ;;  %v3253_v51 = vmul.f32 0.5, %v3087_v21 }
 0x365   : > { %5527 = verf.f32 %v3330_v17  ;;  %v6997_v32 = vadd.f32 %v6903_v30, %v3110_v23 }
 0x366   : > { %v3622_v9 = vpack.c.bf16 %v3563_v60, %v3562_v49  ;;  %v3336_v15 = vmul.f32 0.70710677, %v6991_v13  ;;  %v6999_v46 = vpop.f32.mrf.mxu0 }
 0x368   : > { %v3123_v2 = vpop.f32.mrf.mxu0 }
 0x369   : > { %v5522_v53 = vpop.eup %5521 }
 0x36a   : > { %3931 = vmatmul.mubr.bf16.gmra.mxu1 %v3618_v55  ;;  %v3244_v55 = vmul.f32 0.5, %v3052_v11  ;;  %v3333_v11 = vmul.f32 0.70710677, %v3087_v21  ;;  %v5524_v48 = vpop.eup %5523  ;;  %v3489_v50 = vadd.f32 1.0, %v5522_v53  ;;  %v3255_v53 = vmul.f32 0.5, %v6980_v36 }
 0x36b   : > { %3940 = vmatprep.mubr.bf16.mxu1 %v5633_v26  ;;  %v3488_v27 = vadd.f32 1.0, %v5524_v48 }
 0x36c   : > { %v3564_v59 = vmul.f32 %v3484_v24, %v3244_v55  ;;  %5529 = verf.f32 %v3333_v11  ;;  %v3569_v39 = vmul.f32 %v3489_v50, %v3249_v12  ;;  %v7002_v24 = vadd.f32 %v6903_v30, %v3107_v61 }
 0x36d   : > { %5531 = verf.f32 %v3332_v47 }
 0x36e   : > { %v3623_v57 = vpack.c.bf16 %v3565_v34, %v3564_v59  ;;  %v3339_v34 = vmul.f32 0.70710677, %v6997_v32  ;;  %v3338_v17 = vmul.f32 0.70710677, %v7002_v24 }
 0x371   : > { %v5526_v52 = vpop.eup %5525 }
 0x372   : > { %3941 = vmatmul.mubr.bf16.gmra.mxu1 %v3619_v41  ;;  %v3246_v41 = vmul.f32 0.5, %v3060_v28  ;;  %v3335_v28 = vmul.f32 0.70710677, %v6980_v36  ;;  %v5528_v16 = vpop.eup %5527  ;;  %v3491_v5 = vadd.f32 1.0, %v5526_v52 }
 0x373   : > { %3950 = vmatprep.mubr.bf16.mxu1 %v5633_v26  ;;  %v3490_v6 = vadd.f32 1.0, %v5528_v16  ;;  %v3256_v16 = vmul.f32 0.5, %v6991_v13 }
 0x374   : > { %v3566_v22 = vmul.f32 %v3486_v0, %v3246_v41  ;;  %5533 = verf.f32 %v3335_v28  ;;  %v3571_v63 = vmul.f32 %v3491_v5, %v3251_v54 }
 0x375   : > { %5535 = verf.f32 %v3334_v1  ;;  %v3570_v20 = vmul.f32 %v3490_v6, %v3250_v40 }
 0x376   : > { %v3624_v42 = vpack.c.bf16 %v3567_v33, %v3566_v22 }
 0x377   : > { %v3626_v62 = vpack.c.bf16 %v3571_v63, %v3570_v20 }
 0x379   : > { %v5530_v60 = vpop.eup %5529 }
 0x37a   : > { %3951 = vmatmul.mubr.bf16.gmra.mxu1 %v3620_v43  ;;  %v3248_v43 = vmul.f32 0.5, %v3068_v8  ;;  %v5532_v49 = vpop.eup %5531  ;;  %v3493_v44 = vadd.f32 1.0, %v5530_v60 }
 0x37b   : > { %3960 = vmatprep.mubr.bf16.mxu1 %v5633_v26  ;;  %v3492_v55 = vadd.f32 1.0, %v5532_v49 }
 0x37c   : > { %v3568_v4 = vmul.f32 %v3488_v27, %v3248_v43  ;;  %v3573_v3 = vmul.f32 %v3493_v44, %v3253_v51 }
 0x37e   : > { %v3625_v7 = vpack.c.bf16 %v3569_v39, %v3568_v4 }
 0x381   : > { %v5534_v38 = vpop.eup %5533 }
 0x382   : > { %3961 = vmatmul.mubr.bf16.gmra.mxu1 %v3621_v14  ;;  %v6988_v14 = vadd.f32 %v4999_v35, %v6903_v30  ;;  %v3495_v41 = vadd.f32 1.0, %v5534_v38  ;;  %v7010_v30 = vld [vmem:[%s7186_s6] ss:$0 sm:$0xff] }
 0x383   : > { %3970 = vmatprep.mubr.bf16.mxu1 %v5633_v26  ;;  %v7013_v35 = vadd.f32 %v7010_v30, %v5003_v19  ;;  %v7018_v37 = vadd.f32 %v7010_v30, %v6982_v10  ;;  %v7031_v6 = vadd.f32 %v7010_v30, %v3123_v2 }
 0x384   : > { %v3337_v8 = vmul.f32 0.70710677, %v6988_v14  ;;  %v3575_v48 = vmul.f32 %v3495_v41, %v3255_v53  ;;  %v3257_v19 = vmul.f32 0.5, %v6988_v14 }
 0x385   : > { %v3341_v50 = vmul.f32 0.70710677, %v7013_v35  ;;  %v3340_v36 = vmul.f32 0.70710677, %v7018_v37  ;;  %v3342_v44 = vmul.f32 0.70710677, %v7031_v6 }
 0x386   : > { %5537 = verf.f32 %v3337_v8 }
 0x387   : > { %5539 = verf.f32 %v3336_v15 }
 0x388   : > { %5541 = verf.f32 %v3339_v34  ;;  %v3258_v34 = vmul.f32 0.5, %v7002_v24 }
 0x389   : > { %5543 = verf.f32 %v3338_v17  ;;  %v7043_v17 = vadd.f32 %v7010_v30, %v6999_v46 }
 0x38a   : > { %3971 = vmatmul.mubr.bf16.gmra.mxu1 %v3622_v9  ;;  %v3252_v9 = vmul.f32 0.5, %v3084_v58  ;;  %v5007_v58 = vpop.f32.mrf.mxu0  ;;  %5545 = verf.f32 %v3341_v50  ;;  %v3260_v50 = vmul.f32 0.5, %v7018_v37 }
 0x38b   : > { %3980 = vmatprep.mubr.bf16.mxu1 %v5633_v26  ;;  %5547 = verf.f32 %v3340_v36 }
 0x38c   : > { %v3572_v59 = vmul.f32 %v3492_v55, %v3252_v9  ;;  %v3126_v27 = vpop.f32.mrf.mxu0 }
 0x38d   : > { %v7024_v4 = vadd.f32 %v7010_v30, %v3126_v27 }
 0x38e   : > { %v3627_v21 = vpack.c.bf16 %v3573_v3, %v3572_v59  ;;  %v3259_v59 = vmul.f32 0.5, %v6997_v32  ;;  %v3344_v32 = vmul.f32 0.70710677, %v7043_v17 }
 0x38f   : > { %v3343_v60 = vmul.f32 0.70710677, %v7024_v4 }
 0x391   : > { %5549 = verf.f32 %v3343_v60 }
 0x392   : > { %3981 = vmatmul.mubr.bf16.gmra.mxu1 %v3623_v57  ;;  %v5536_v57 = vpop.eup %5535  ;;  %5551 = verf.f32 %v3342_v44 }
 0x393   : > { %3990 = vmatprep.mubr.bf16.mxu1 %v5633_v26  ;;  %v3494_v11 = vadd.f32 1.0, %v5536_v57  ;;  %v5538_v43 = vpop.eup %5537 }
 0x394   : > { %v5540_v28 = vpop.eup %5539  ;;  %v3497_v52 = vadd.f32 1.0, %v5538_v43 }
 0x395   : > { %v3574_v29 = vmul.f32 %v3494_v11, %v3254_v18  ;;  %v3496_v40 = vadd.f32 1.0, %v5540_v28  ;;  %v5542_v13 = vpop.eup %5541 }
 0x396   : > { %v3577_v8 = vmul.f32 %v3497_v52, %v3257_v19  ;;  %v3499_v51 = vadd.f32 1.0, %v5542_v13 }
 0x397   : > { %v3628_v61 = vpack.c.bf16 %v3575_v48, %v3574_v29  ;;  %v3576_v49 = vmul.f32 %v3496_v40, %v3256_v16 }
 0x399   : > { %v3629_v55 = vpack.c.bf16 %v3577_v8, %v3576_v49  ;;  %v3263_v49 = vmul.f32 0.5, %v7024_v4 }
 0x39a   : > { %3991 = vmatmul.mubr.bf16.gmra.mxu1 %v3624_v42 }
 0x39b   : > { %4000 = vmatprep.mubr.bf16.mxu1 %v5633_v26 }
 0x3a2   : > { %4001 = vmatmul.mubr.bf16.gmra.mxu1 %v3625_v7  ;;  %v7027_v7 = vpop.f32.mrf.mxu0 }
 0x3a3   : > { %4010 = vmatprep.mubr.bf16.mxu1 %v5633_v26  ;;  %v7068_v44 = vadd.f32 %v7010_v30, %v7027_v7 }
 0x3a4   : > { %v3139_v20 = vpop.f32.mrf.mxu0 }
 0x3a5   : > { %v7056_v29 = vadd.f32 %v7010_v30, %v3139_v20  ;;  %v3348_v4 = vmul.f32 0.70710677, %v7068_v44 }
 0x3aa   : > { %v3772_v31 = vpop.f32.mrf.mxu1  ;;  %4011 = vmatmul.mubr.bf16.gmra.mxu1 %v3626_v62  ;;  %v5544_v62 = vpop.eup %5543 }
 0x3ab   : > { %4020 = vmatprep.mubr.bf16.mxu1 %v5633_v26  ;;  %v3498_v2 = vadd.f32 1.0, %v5544_v62  ;;  %v5546_v24 = vpop.eup %5545 }
 0x3ac   : > { %v3774_v56 = vpop.f32.mrf.mxu1  ;;  %v5548_v11 = vpop.eup %5547  ;;  %v3501_v53 = vadd.f32 1.0, %v5546_v24 }
 0x3ad   : > { %v3500_v27 = vadd.f32 1.0, %v5548_v11  ;;  %v5550_v37 = vpop.eup %5549 }
 0x3ae   : > { %v3776_v25 = vpop.f32.mrf.mxu1  ;;  %v5552_v40 = vpop.eup %5551 }
 0x3af   : > { %v4171_v45 = vmax.f32 %v3772_v31, %v3776_v25  ;;  %v7037_v31 = vadd.f32 %v7010_v30, %v5007_v58  ;;  %v3578_v58 = vmul.f32 %v3498_v2, %v3258_v34  ;;  %v3580_v16 = vmul.f32 %v3500_v27, %v3260_v50 }
 0x3b0   : > { %v3778_v0 = vpop.f32.mrf.mxu1 }
 0x3b1   : > { %v4216_v33 = vmax.f32 %v3774_v56, %v3778_v0  ;;  %v5011_v56 = vpop.f32.mrf.mxu0 }
 0x3b2   : > { %v3782_v22 = vpop.f32.mrf.mxu1  ;;  %4021 = vmatmul.mubr.bf16.gmra.mxu1 %v3627_v21  ;;  %v3345_v21 = vmul.f32 0.70710677, %v7037_v31  ;;  %v7062_v8 = vadd.f32 %v7010_v30, %v5011_v56 }
 0x3b3   : > { %v4172_v47 = vmax.f32 %v4171_v45, %v3782_v22  ;;  %4030 = vmatprep.mubr.bf16.mxu1 %v5633_v26  ;;  %v3579_v45 = vmul.f32 %v3499_v51, %v3259_v59  ;;  %v3142_v0 = vpop.f32.mrf.mxu0 }
 0x3b4   : > { %v3784_v42 = vpop.f32.mrf.mxu1  ;;  %5553 = verf.f32 %v3345_v21  ;;  %v3264_v21 = vmul.f32 0.5, %v7043_v17 }
 0x3b5   : > { %v4217_v12 = vmax.f32 %v4216_v33, %v3784_v42  ;;  %v3630_v22 = vpack.c.bf16 %v3579_v45, %v3578_v58  ;;  %v7052_v42 = vpop.f32.mrf.mxu0  ;;  %5555 = verf.f32 %v3344_v32 }
 0x3b6   : > { %v3786_v39 = vpop.f32.mrf.mxu1 }
 0x3b7   : > { %v4173_v10 = vmax.f32 %v4172_v47, %v3786_v39  ;;  %v7049_v47 = vadd.f32 %v7010_v30, %v3142_v0 }
 0x3b8   : > { %v3788_v1 = vpop.f32.mrf.mxu1 }
 0x3b9   : > { %v4218_v5 = vmax.f32 %v4217_v12, %v3788_v1  ;;  %v3261_v12 = vmul.f32 0.5, %v7013_v35 }
 0x3ba   : > { %v3792_v54 = vpop.f32.mrf.mxu1  ;;  %4031 = vmatmul.mubr.bf16.gmra.mxu1 %v3628_v61  ;;  %v3155_v61 = vpop.f32.mrf.mxu0 }
 0x3bb   : > { %v4174_v63 = vmax.f32 %v4173_v10, %v3792_v54  ;;  %4040 = vmatprep.mubr.bf16.mxu1 %v5633_v26  ;;  %v3581_v28 = vmul.f32 %v3501_v53, %v3261_v12  ;;  %v3347_v10 = vmul.f32 0.70710677, %v7049_v47  ;;  %v7081_v58 = vadd.f32 %v7010_v30, %v3155_v61 }
 0x3bc   : > { %v3794_v23 = vpop.f32.mrf.mxu1  ;;  %v5015_v13 = vpop.f32.mrf.mxu0 }
 0x3bd   : > { %v4219_v15 = vmax.f32 %v4218_v5, %v3794_v23  ;;  %v3346_v5 = vmul.f32 0.70710677, %v7056_v29  ;;  %v3631_v54 = vpack.c.bf16 %v3581_v28, %v3580_v16  ;;  %5557 = verf.f32 %v3347_v10 }
 0x3be   : > { %v3796_v14 = vpop.f32.mrf.mxu1  ;;  %v3262_v23 = vmul.f32 0.5, %v7031_v6  ;;  %v7087_v28 = vadd.f32 %v7010_v30, %v5015_v13  ;;  %v3267_v16 = vmul.f32 0.5, %v7049_v47 }
 0x3bf   : > { %v4175_v9 = vmax.f32 %v4174_v63, %v3796_v14  ;;  %v3503_v63 = vadd.f32 1.0, %v5550_v37  ;;  %5559 = verf.f32 %v3346_v5  ;;  %v7093_v5 = vadd.f32 %v7010_v30, %v7052_v42 }
 0x3c0   : > { %v3798_v3 = vpop.f32.mrf.mxu1 }
 0x3c1   : > { %v4220_v38 = vmax.f32 %v4219_v15, %v3798_v3  ;;  %v3502_v15 = vadd.f32 1.0, %v5552_v40  ;;  %v5554_v6 = vpop.eup %5553  ;;  %v3158_v3 = vpop.f32.mrf.mxu0  ;;  %v3352_v47 = vmul.f32 0.70710677, %v7093_v5 }
 0x3c2   : > { %v3802_v25 = vpop.f32.mrf.mxu1  ;;  %4041 = vmatmul.mubr.bf16.gmra.mxu1 %v3629_v55  ;;  %v3349_v55 = vmul.f32 0.70710677, %v7062_v8  ;;  %v5556_v2 = vpop.eup %5555  ;;  %v3505_v59 = vadd.f32 1.0, %v5554_v6 }
 0x3c3   : > { %v4176_v57 = vmax.f32 %v4175_v9, %v3802_v25  ;;  %4050 = vmatprep.mubr.bf16.mxu1 %v5633_v26  ;;  %v3583_v9 = vmul.f32 %v3503_v63, %v3263_v49  ;;  %v3582_v56 = vmul.f32 %v3502_v15, %v3262_v23  ;;  %v3504_v0 = vadd.f32 1.0, %v5556_v2 }
 0x3c4   : > { %v3804_v41 = vpop.f32.mrf.mxu1  ;;  %5561 = verf.f32 %v3349_v55  ;;  %v3268_v55 = vmul.f32 0.5, %v7068_v44 }
 0x3c5   : > { %v4221_v18 = vmax.f32 %v4220_v38, %v3804_v41  ;;  %v3632_v25 = vpack.c.bf16 %v3583_v9, %v3582_v56  ;;  %v7077_v41 = vpop.f32.mrf.mxu0  ;;  %5563 = verf.f32 %v3348_v4  ;;  %v3584_v50 = vmul.f32 %v3504_v0, %v3264_v21 }
 0x3c6   : > { %v3806_v33 = vpop.f32.mrf.mxu1 }
 0x3c7   : > { %v4177_v46 = vmax.f32 %v4176_v57, %v3806_v33  ;;  %v7074_v57 = vadd.f32 %v7010_v30, %v3158_v3 }
 0x3c8   : > { %v3808_v48 = vpop.f32.mrf.mxu1 }
 0x3c9   : > { %v4222_v43 = vmax.f32 %v4221_v18, %v3808_v48  ;;  %v3265_v18 = vmul.f32 0.5, %v7037_v31 }
 0x3ca   : > { %v3812_v36 = vpop.f32.mrf.mxu1  ;;  %4051 = vmatmul.mubr.bf16.gmra.mxu1 %v3630_v22  ;;  %v5558_v17 = vpop.eup %5557 }
 0x3cb   : > { %v4178_v39 = vmax.f32 %v4177_v46, %v3812_v36  ;;  %4060 = vmatprep.mubr.bf16.mxu1 %v5633_v26  ;;  %v3585_v11 = vmul.f32 %v3505_v59, %v3265_v18  ;;  %v3351_v46 = vmul.f32 0.70710677, %v7074_v57  ;;  %v3171_v22 = vpop.f32.mrf.mxu0 }
 0x3cc   : > { %v3814_v52 = vpop.f32.mrf.mxu1  ;;  %v5560_v27 = vpop.eup %5559  ;;  %v7106_v56 = vadd.f32 %v7010_v30, %v3171_v22 }
 0x3cd   : > { %v4223_v1 = vmax.f32 %v4222_v43, %v3814_v52  ;;  %v3350_v43 = vmul.f32 0.70710677, %v7081_v58  ;;  %v3633_v36 = vpack.c.bf16 %v3585_v11, %v3584_v50  ;;  %5565 = verf.f32 %v3351_v46  ;;  %v5019_v37 = vpop.f32.mrf.mxu0 }
 0x3ce   : > { %v3816_v35 = vpop.f32.mrf.mxu1  ;;  %v3266_v52 = vmul.f32 0.5, %v7056_v29  ;;  %v7112_v11 = vadd.f32 %v7010_v30, %v5019_v37  ;;  %v3271_v50 = vmul.f32 0.5, %v7074_v57 }
 0x3cf   : > { %v4179_v19 = vmax.f32 %v4178_v39, %v3816_v35  ;;  %v3507_v39 = vadd.f32 1.0, %v5558_v17  ;;  %5567 = verf.f32 %v3350_v43  ;;  %v7118_v43 = vadd.f32 %v7010_v30, %v7077_v41 }
 0x3d0   : > { %v3818_v60 = vpop.f32.mrf.mxu1 }
 0x3d1   : > { %v4224_v20 = vmax.f32 %v4223_v1, %v3818_v60  ;;  %v3506_v1 = vadd.f32 1.0, %v5560_v27  ;;  %v5562_v29 = vpop.eup %5561  ;;  %v3174_v60 = vpop.f32.mrf.mxu0  ;;  %v3356_v57 = vmul.f32 0.70710677, %v7118_v43 }
 0x3d2   : > { %v3822_v14 = vpop.f32.mrf.mxu1  ;;  %4061 = vmatmul.mubr.bf16.gmra.mxu1 %v3631_v54  ;;  %v3353_v54 = vmul.f32 0.70710677, %v7087_v28  ;;  %v5564_v15 = vpop.eup %5563  ;;  %v3509_v49 = vadd.f32 1.0, %v5562_v29 }
 0x3d3   : > { %v4180_v62 = vmax.f32 %v4179_v19, %v3822_v14  ;;  %4070 = vmatprep.mubr.bf16.mxu1 %v5633_v26  ;;  %v3587_v19 = vmul.f32 %v3507_v39, %v3267_v16  ;;  %v3586_v13 = vmul.f32 %v3506_v1, %v3266_v52  ;;  %v3508_v3 = vadd.f32 1.0, %v5564_v15 }
 0x3d4   : > { %v3824_v51 = vpop.f32.mrf.mxu1  ;;  %5569 = verf.f32 %v3353_v54  ;;  %v3272_v54 = vmul.f32 0.5, %v7093_v5 }
 0x3d5   : > { %v4225_v34 = vmax.f32 %v4224_v20, %v3824_v51  ;;  %v3634_v14 = vpack.c.bf16 %v3587_v19, %v3586_v13  ;;  %v7102_v51 = vpop.f32.mrf.mxu0  ;;  %5571 = verf.f32 %v3352_v47  ;;  %v3588_v21 = vmul.f32 %v3508_v3, %v3268_v55 }
 0x3d6   : > { %v3826_v38 = vpop.f32.mrf.mxu1 }
 0x3d7   : > { %v4181_v7 = vmax.f32 %v4180_v62, %v3826_v38  ;;  %v7099_v62 = vadd.f32 %v7010_v30, %v3174_v60  ;;  %v3273_v60 = vmul.f32 0.5, %v7087_v28 }
 0x3d8   : > { %v3828_v45 = vpop.f32.mrf.mxu1 }
 0x3d9   : > { %v4226_v24 = vmax.f32 %v4225_v34, %v3828_v45  ;;  %v3269_v34 = vmul.f32 0.5, %v7062_v8 }
 0x3da   : > { %v3832_v32 = vpop.f32.mrf.mxu1  ;;  %4071 = vmatmul.mubr.bf16.gmra.mxu1 %v3632_v25  ;;  %v5566_v44 = vpop.eup %5565 }
 0x3db   : > { %v4182_v33 = vmax.f32 %v4181_v7, %v3832_v32  ;;  %4080 = vmatprep.mubr.bf16.mxu1 %v5633_v26  ;;  %v3589_v2 = vmul.f32 %v3509_v49, %v3269_v34  ;;  %v3355_v7 = vmul.f32 0.70710677, %v7099_v62  ;;  %v3187_v25 = vpop.f32.mrf.mxu0 }
 0x3dc   : > { %v3834_v53 = vpop.f32.mrf.mxu1  ;;  %v5568_v0 = vpop.eup %5567 }
 0x3dd   : > { %v4227_v48 = vmax.f32 %v4226_v24, %v3834_v53  ;;  %v3354_v24 = vmul.f32 0.70710677, %v7106_v56  ;;  %v3635_v32 = vpack.c.bf16 %v3589_v2, %v3588_v21  ;;  %5573 = verf.f32 %v3355_v7  ;;  %v5023_v17 = vpop.f32.mrf.mxu0 }
 0x3de   : > { %v3836_v31 = vpop.f32.mrf.mxu1  ;;  %v3270_v53 = vmul.f32 0.5, %v7081_v58  ;;  %v3274_v2 = vmul.f32 0.5, %v7106_v56 }
 0x3df   : > { %v4183_v12 = vmax.f32 %v4182_v33, %v3836_v31  ;;  %v3511_v33 = vadd.f32 1.0, %v5566_v44  ;;  %5575 = verf.f32 %v3354_v24  ;;  %v3275_v44 = vmul.f32 0.5, %v7099_v62 }
 0x3e0   : > { %v3838_v10 = vpop.f32.mrf.mxu1 }
 0x3e1   : > { %v4228_v61 = vmax.f32 %v4227_v48, %v3838_v10  ;;  %v3510_v48 = vadd.f32 1.0, %v5568_v0  ;;  %v5570_v58 = vpop.eup %5569  ;;  %v3190_v10 = vpop.f32.mrf.mxu0 }
 0x3e2   : > { %v3842_v35 = vpop.f32.mrf.mxu1  ;;  %4081 = vmatmul.mubr.bf16.gmra.mxu1 %v3633_v36  ;;  %v3357_v36 = vmul.f32 0.70710677, %v7112_v11  ;;  %v5572_v1 = vpop.eup %5571  ;;  %v3513_v16 = vadd.f32 1.0, %v5570_v58 }
 0x3e3   : > { %v4184_v40 = vmax.f32 %v4183_v12, %v3842_v35  ;;  %4090 = vmatprep.mubr.bf16.mxu1 %v5633_v26  ;;  %v3591_v12 = vmul.f32 %v3511_v33, %v3271_v50  ;;  %v3590_v37 = vmul.f32 %v3510_v48, %v3270_v53  ;;  %v3512_v29 = vadd.f32 1.0, %v5572_v1 }
 0x3e4   : > { %v3844_v63 = vpop.f32.mrf.mxu1  ;;  %5577 = verf.f32 %v3357_v36  ;;  %v3276_v48 = vmul.f32 0.5, %v7118_v43 }
 0x3e5   : > { %v4229_v23 = vmax.f32 %v4228_v61, %v3844_v63  ;;  %v3636_v35 = vpack.c.bf16 %v3591_v12, %v3590_v37  ;;  %5579 = verf.f32 %v3356_v57  ;;  %v3592_v5 = vmul.f32 %v3512_v29, %v3272_v54 }
 0x3e6   : > { %v3846_v20 = vpop.f32.mrf.mxu1 }
 0x3e7   : > { %v4185_v42 = vmax.f32 %v4184_v40, %v3846_v20  ;;  %v7124_v40 = vadd.f32 %v7010_v30, %v3190_v10  ;;  %v3593_v20 = vmul.f32 %v3513_v16, %v3273_v60 }
 0x3e8   : > { %v3848_v9 = vpop.f32.mrf.mxu1 }
 0x3e9   : > { %v4230_v6 = vmax.f32 %v4229_v23, %v3848_v9  ;;  %v7129_v23 = vadd.f32 %v7010_v30, %v3187_v25  ;;  %v3359_v15 = vmul.f32 0.70710677, %v7124_v40  ;;  %v3637_v3 = vpack.c.bf16 %v3593_v20, %v3592_v5 }
 0x3ea   : > { %v3852_v4 = vpop.f32.mrf.mxu1  ;;  %4091 = vmatmul.mubr.bf16.gmra.mxu1 %v3634_v14  ;;  %v5574_v49 = vpop.eup %5573  ;;  %v3196_v25 = vadd.f32 %v7010_v30, %v7102_v51 }
 0x3eb   : > { %v4186_v38 = vmax.f32 %v4185_v42, %v3852_v4  ;;  %4100 = vmatprep.mubr.bf16.mxu1 %v5633_v26  ;;  %v3358_v9 = vmul.f32 0.70710677, %v7129_v23  ;;  %v3515_v34 = vadd.f32 1.0, %v5574_v49  ;;  %v7135_v4 = vadd.f32 %v7010_v30, %v5023_v17 }
 0x3ec   : > { %v3854_v59 = vpop.f32.mrf.mxu1  ;;  %v5576_v28 = vpop.eup %5575  ;;  %5581 = verf.f32 %v3359_v15  ;;  %v3360_v33 = vmul.f32 0.70710677, %v3196_v25 }
 0x3ed   : > { %v4231_v45 = vmax.f32 %v4230_v6, %v3854_v59  ;;  %v3514_v59 = vadd.f32 1.0, %v5576_v28  ;;  %5583 = verf.f32 %v3358_v9  ;;  %v3595_v24 = vmul.f32 %v3515_v34, %v3275_v44 }
 0x3ee   : > { %v3856_v8 = vpop.f32.mrf.mxu1 }
 0x3ef   : > { %v4187_v18 = vmax.f32 %v4186_v38, %v3856_v8  ;;  %v3361_v8 = vmul.f32 0.70710677, %v7135_v4  ;;  %v3594_v56 = vmul.f32 %v3514_v59, %v3274_v2 }
 0x3f0   : > { %v3858_v46 = vpop.f32.mrf.mxu1 }
 0x3f1   : > { %v4232_v22 = vmax.f32 %v4231_v45, %v3858_v46  ;;  %5585 = verf.f32 %v3361_v8 }
 0x3f2   : > { %v3862_v31 = vpop.f32.mrf.mxu1  ;;  %4101 = vmatmul.mubr.bf16.gmra.mxu1 %v3635_v32  ;;  %5587 = verf.f32 %v3360_v33 }
 0x3f3   : > { %v4188_v27 = vmax.f32 %v4187_v18, %v3862_v31  ;;  %4110 = vmatprep.mubr.bf16.mxu1 %v5633_v26  ;;  %v5578_v18 = vpop.eup %5577  ;;  %v3277_v31 = vmul.f32 0.5, %v7112_v11  ;;  %v3278_v11 = vmul.f32 0.5, %v7129_v23 }
 0x3f4   : > { %v3864_v39 = vpop.f32.mrf.mxu1  ;;  %v5580_v53 = vpop.eup %5579  ;;  %v3517_v17 = vadd.f32 1.0, %v5578_v18 }
 0x3f5   : > { %v4233_v52 = vmax.f32 %v4232_v22, %v3864_v39  ;;  %v3638_v22 = vpack.c.bf16 %v3595_v24, %v3594_v56  ;;  %v3516_v50 = vadd.f32 1.0, %v5580_v53 }
 0x3f6   : > { %v3866_v61 = vpop.f32.mrf.mxu1  ;;  %v3597_v36 = vmul.f32 %v3517_v17, %v3277_v31 }
 0x3f7   : > { %v4189_v41 = vmax.f32 %v4188_v27, %v3866_v61 }
 0x3f8   : > { %v3868_v19 = vpop.f32.mrf.mxu1 }
 0x3f9   : > { %v4234_v63 = vmax.f32 %v4233_v52, %v3868_v19  ;;  %v5582_v58 = vpop.eup %5581  ;;  %v3596_v52 = vmul.f32 %v3516_v50, %v3276_v48  ;;  %v3279_v19 = vmul.f32 0.5, %v7124_v40  ;;  %v3281_v40 = vmul.f32 0.5, %v7135_v4 }
 0x3fa   : > { %v3872_v13 = vpop.f32.mrf.mxu1  ;;  %4111 = vmatmul.mubr.bf16.gmra.mxu1 %v3636_v35  ;;  %v5584_v57 = vpop.eup %5583 }
 0x3fb   : > { %v4190_v47 = vmax.f32 %v4189_v41, %v3872_v13  ;;  %4120 = vmatprep.mubr.bf16.mxu1 %v5633_v26  ;;  %v3639_v1 = vpack.c.bf16 %v3597_v36, %v3596_v52  ;;  %v3519_v41 = vadd.f32 1.0, %v5582_v58  ;;  %v3518_v35 = vadd.f32 1.0, %v5584_v57 }
 0x3fc   : > { %v3874_v42 = vpop.f32.mrf.mxu1 }
 0x3fd   : > { %v4235_v14 = vmax.f32 %v4234_v63, %v3874_v42  ;;  %v3599_v29 = vmul.f32 %v3519_v41, %v3279_v19  ;;  %v3598_v20 = vmul.f32 %v3518_v35, %v3278_v11 }
 0x3fe   : > { %v3876_v55 = vpop.f32.mrf.mxu1  ;;  %v5586_v13 = vpop.eup %5585 }
 0x3ff   : > { %v4191_v6 = vmax.f32 %v4190_v47, %v3876_v55  ;;  %v5588_v42 = vpop.eup %5587  ;;  %v3640_v5 = vpack.c.bf16 %v3599_v29, %v3598_v20  ;;  %v3280_v55 = vmul.f32 0.5, %v3196_v25 }
 0x400   : > { %v3878_v38 = vpop.f32.mrf.mxu1  ;;  %v3520_v28 = vadd.f32 1.0, %v5588_v42 }
 0x401   : > { %v4236_v7 = vmax.f32 %v4235_v14, %v3878_v38  ;;  %v3521_v14 = vadd.f32 1.0, %v5586_v13 }
 0x402   : > { %v3882_v45 = vpop.f32.mrf.mxu1  ;;  %4121 = vmatmul.mubr.bf16.gmra.mxu1 %v3637_v3 }
 0x403   : > { %v4192_v21 = vmax.f32 %v4191_v6, %v3882_v45  ;;  %4130 = vmatprep.mubr.bf16.mxu1 %v5633_v26  ;;  %v3601_v34 = vmul.f32 %v3521_v14, %v3281_v40 }
 0x404   : > { %v3884_v0 = vpop.f32.mrf.mxu1 }
 0x405   : > { %v4237_v32 = vmax.f32 %v4236_v7, %v3884_v0  ;;  %v3600_v7 = vmul.f32 %v3520_v28, %v3280_v55 }
 0x406   : > { %v3886_v46 = vpop.f32.mrf.mxu1 }
 0x407   : > { %v4193_v62 = vmax.f32 %v4192_v21, %v3886_v46  ;;  %v3641_v45 = vpack.c.bf16 %v3601_v34, %v3600_v7 }
 0x408   : > { %v3888_v30 = vpop.f32.mrf.mxu1 }
 0x409   : > { %v4238_v51 = vmax.f32 %v4237_v32, %v3888_v30 }
 0x40a   : > { %v3892_v27 = vpop.f32.mrf.mxu1  ;;  %4131 = vmatmul.mubr.bf16.gmra.mxu1 %v3638_v22 }
 0x40b   : > { %v4194_v12 = vmax.f32 %v4193_v62, %v3892_v27  ;;  %4140 = vmatprep.mubr.bf16.mxu1 %v5633_v26 }
 0x40c   : > { %v3894_v39 = vpop.f32.mrf.mxu1 }
 0x40d   : > { %v4239_v10 = vmax.f32 %v4238_v51, %v3894_v39 }
 0x40e   : > { %v3896_v37 = vpop.f32.mrf.mxu1 }
 0x40f   : > { %v4195_v61 = vmax.f32 %v4194_v12, %v3896_v37 }
 0x410   : > { %v3898_v43 = vpop.f32.mrf.mxu1 }
 0x411   : > { %v4240_v16 = vmax.f32 %v4239_v10, %v3898_v43 }
 0x412   : > { %v3902_v54 = vpop.f32.mrf.mxu1  ;;  %4141 = vmatmul.mubr.bf16.gmra.mxu1 %v3639_v1 }
 0x413   : > { %v4196_v63 = vmax.f32 %v4195_v61, %v3902_v54  ;;  %4150 = vmatprep.mubr.bf16.mxu1 %v5633_v26 }
 0x414   : > { %v3904_v60 = vpop.f32.mrf.mxu1 }
 0x415   : > { %v4241_v47 = vmax.f32 %v4240_v16, %v3904_v60 }
 0x416   : > { %v3906_v15 = vpop.f32.mrf.mxu1 }
 0x417   : > { %v4197_v49 = vmax.f32 %v4196_v63, %v3906_v15 }
 0x418   : > { %v3908_v9 = vpop.f32.mrf.mxu1 }
 0x419   : > { %v4242_v23 = vmax.f32 %v4241_v47, %v3908_v9 }
 0x41a   : > { %v3912_v6 = vpop.f32.mrf.mxu1  ;;  %4151 = vmatmul.mubr.bf16.gmra.mxu1 %v3640_v5 }
 0x41b   : > { %v4198_v3 = vmax.f32 %v4197_v49, %v3912_v6  ;;  %4160 = vmatprep.mubr.bf16.mxu1 %v5633_v26 }
 0x41c   : > { %v3914_v38 = vpop.f32.mrf.mxu1 }
 0x41d   : > { %v4243_v2 = vmax.f32 %v4242_v23, %v3914_v38 }
 0x41e   : > { %v3916_v59 = vpop.f32.mrf.mxu1 }
 0x41f   : > { %v4199_v44 = vmax.f32 %v4198_v3, %v3916_v59 }
 0x420   : > { %v3918_v21 = vpop.f32.mrf.mxu1 }
 0x421   : > { %v4244_v24 = vmax.f32 %v4243_v2, %v3918_v21 }
 0x422   : > { %v3922_v8 = vpop.f32.mrf.mxu1  ;;  %4161 = vmatmul.mubr.bf16.gmra.mxu1 %v3641_v45 }
 0x423   : > { %v4200_v25 = vmax.f32 %v4199_v44, %v3922_v8 }
 0x424   : > { %v3924_v0 = vpop.f32.mrf.mxu1 }
 0x425   : > { %v4245_v18 = vmax.f32 %v4244_v24, %v3924_v0 }
 0x426   : > { %v3926_v4 = vpop.f32.mrf.mxu1 }
 0x427   : > { %v4201_v32 = vmax.f32 %v4200_v25, %v3926_v4 }
 0x428   : > { %v3928_v56 = vpop.f32.mrf.mxu1 }
 0x429   : > { %v4246_v33 = vmax.f32 %v4245_v18, %v3928_v56 }
 0x42a   : > { %v3932_v46 = vpop.f32.mrf.mxu1 }
 0x42b   : > { %v4202_v26 = vmax.f32 %v4201_v32, %v3932_v46 }
 0x42c   : > { %v3934_v53 = vpop.f32.mrf.mxu1 }
 0x42d   : > { %v4247_v62 = vmax.f32 %v4246_v33, %v3934_v53 }
 0x42e   : > { %v3936_v17 = vpop.f32.mrf.mxu1 }
 0x42f   : > { %v4203_v22 = vmax.f32 %v4202_v26, %v3936_v17 }
 0x430   : > { %v3938_v30 = vpop.f32.mrf.mxu1 }
 0x431   : > { %v4248_v51 = vmax.f32 %v4247_v62, %v3938_v30 }
 0x432   : > { %v3942_v48 = vpop.f32.mrf.mxu1 }
 0x433   : > { %v4204_v50 = vmax.f32 %v4203_v22, %v3942_v48 }
 0x434   : > { %v3944_v31 = vpop.f32.mrf.mxu1 }
 0x435   : > { %v4249_v27 = vmax.f32 %v4248_v51, %v3944_v31 }
 0x436   : > { %v3946_v12 = vpop.f32.mrf.mxu1 }
 0x437   : > { %v4205_v36 = vmax.f32 %v4204_v50, %v3946_v12 }
 0x438   : > { %v3948_v39 = vpop.f32.mrf.mxu1 }
 0x439   : > { %v4250_v58 = vmax.f32 %v4249_v27, %v3948_v39 }
 0x43a   : > { %v3952_v10 = vpop.f32.mrf.mxu1 }
 0x43b   : > { %v4206_v52 = vmax.f32 %v4205_v36, %v3952_v10 }
 0x43c   : > { %v3954_v37 = vpop.f32.mrf.mxu1 }
 0x43d   : > { %v4251_v57 = vmax.f32 %v4250_v58, %v3954_v37 }
 0x43e   : > { %v3956_v61 = vpop.f32.mrf.mxu1 }
 0x43f   : > { %v4207_v1 = vmax.f32 %v4206_v52, %v3956_v61 }
 0x440   : > { %v3958_v41 = vpop.f32.mrf.mxu1 }
 0x441   : > { %v4252_v43 = vmax.f32 %v4251_v57, %v3958_v41 }
 0x442   : > { %v3962_v16 = vpop.f32.mrf.mxu1 }
 0x443   : > { %v4208_v11 = vmax.f32 %v4207_v1, %v3962_v16 }
 0x444   : > { %v3964_v35 = vpop.f32.mrf.mxu1 }
 0x445   : > { %v4253_v19 = vmax.f32 %v4252_v43, %v3964_v35 }
 0x446   : > { %v3966_v54 = vpop.f32.mrf.mxu1 }
 0x447   : > { %v4209_v63 = vmax.f32 %v4208_v11, %v3966_v54 }
 0x448   : > { %v3968_v29 = vpop.f32.mrf.mxu1 }
 0x449   : > { %v4210_v60 = vrot.slane %v4209_v63, 4  ;;  %v4254_v13 = vmax.f32 %v4253_v19, %v3968_v29 }
 0x44a   : > { %v3972_v47 = vpop.f32.mrf.mxu1 }
 0x44b   : > { %v4211_v20 = vmax.f32 %v4209_v63, %v4210_v60  ;;  %v4255_v15 = vrot.slane %v4254_v13, 4 }
 0x44c   : > { %v3974_v42 = vpop.f32.mrf.mxu1 }
 0x44d   : > { %v4212_v49 = vrot.slane %v4211_v20, 2  ;;  %v4256_v14 = vmax.f32 %v4254_v13, %v4255_v15 }
 0x44e   : > { %v3976_v5 = vpop.f32.mrf.mxu1 }
 0x44f   : > { %v4213_v9 = vmax.f32 %v4211_v20, %v4212_v49  ;;  %v4257_v23 = vrot.slane %v4256_v14, 2  ;;  %v4261_v55 = vmax.f32 %v3972_v47, %v3976_v5 }
 0x450   : > { %v3978_v28 = vpop.f32.mrf.mxu1 }
 0x451   : > { %v4214_v40 = vrot.slane %v4213_v9, 1  ;;  %v4258_v6 = vmax.f32 %v4256_v14, %v4257_v23  ;;  %v4306_v3 = vmax.f32 %v3974_v42, %v3978_v28 }
 0x452   : > { %v3982_v34 = vpop.f32.mrf.mxu1 }
 0x453   : > { %v4259_v38 = vrot.slane %v4258_v6, 1  ;;  %v4262_v2 = vmax.f32 %v4261_v55, %v3982_v34  ;;  %v7151_v59 = vmax.f32 %v4213_v9, %v4214_v40 }
 0x454   : > { %v3984_v7 = vpop.f32.mrf.mxu1 }
 0x455   : > { %v7153_v44 = vmax.f32 %v4258_v6, %v4259_v38  ;;  %v4307_v45 = vmax.f32 %v4306_v3, %v3984_v7 }
 0x456   : > { %v3986_v21 = vpop.f32.mrf.mxu1 }
 0x457   : > { %v4355_v24 = vcombine.low %v7151_v59, %v7153_v44  ;;  %v4263_v8 = vmax.f32 %v4262_v2, %v3986_v21 }
 0x458   : > { %v3988_v25 = vpop.f32.mrf.mxu1 }
 0x459   : > { %v4308_v0 = vmax.f32 %v4307_v45, %v3988_v25 }
 0x45a   : > { %v3992_v18 = vpop.f32.mrf.mxu1 }
 0x45b   : > { %v4264_v4 = vmax.f32 %v4263_v8, %v3992_v18 }
 0x45c   : > { %v3994_v32 = vpop.f32.mrf.mxu1 }
 0x45d   : > { %v4309_v56 = vmax.f32 %v4308_v0, %v3994_v32 }
 0x45e   : > { %v3996_v33 = vpop.f32.mrf.mxu1 }
 0x45f   : > { %v4265_v46 = vmax.f32 %v4264_v4, %v3996_v33 }
 0x460   : > { %v3998_v26 = vpop.f32.mrf.mxu1 }
 0x461   : > { %v4310_v53 = vmax.f32 %v4309_v56, %v3998_v26 }
 0x462   : > { %v4002_v62 = vpop.f32.mrf.mxu1 }
 0x463   : > { %v4266_v17 = vmax.f32 %v4265_v46, %v4002_v62 }
 0x464   : > { %v4004_v22 = vpop.f32.mrf.mxu1 }
 0x465   : > { %v4311_v30 = vmax.f32 %v4310_v53, %v4004_v22 }
 0x466   : > { %v4006_v51 = vpop.f32.mrf.mxu1 }
 0x467   : > { %v4267_v48 = vmax.f32 %v4266_v17, %v4006_v51 }
 0x468   : > { %v4008_v50 = vpop.f32.mrf.mxu1 }
 0x469   : > { %v4312_v31 = vmax.f32 %v4311_v30, %v4008_v50 }
 0x46a   : > { %v4012_v27 = vpop.f32.mrf.mxu1 }
 0x46b   : > { %v4268_v12 = vmax.f32 %v4267_v48, %v4012_v27 }
 0x46c   : > { %v4014_v36 = vpop.f32.mrf.mxu1 }
 0x46d   : > { %v4313_v6 = vmax.f32 %v4312_v31, %v4014_v36 }
 0x46e   : > { %v4016_v39 = vpop.f32.mrf.mxu1 }
 0x46f   : > { %v4269_v3 = vmax.f32 %v4268_v12, %v4016_v39 }
 0x470   : > { %v4018_v58 = vpop.f32.mrf.mxu1 }
 0x471   : > { %v4314_v38 = vmax.f32 %v4313_v6, %v4018_v58 }
 0x472   : > { %v4022_v10 = vpop.f32.mrf.mxu1 }
 0x473   : > { %v4270_v2 = vmax.f32 %v4269_v3, %v4022_v10 }
 0x474   : > { %v4024_v52 = vpop.f32.mrf.mxu1 }
 0x475   : > { %v4315_v45 = vmax.f32 %v4314_v38, %v4024_v52 }
 0x476   : > { %v4026_v37 = vpop.f32.mrf.mxu1 }
 0x477   : > { %v4271_v21 = vmax.f32 %v4270_v2, %v4026_v37 }
 0x478   : > { %v4028_v57 = vpop.f32.mrf.mxu1 }
 0x479   : > { %v4316_v25 = vmax.f32 %v4315_v45, %v4028_v57 }
 0x47a   : > { %v4032_v61 = vpop.f32.mrf.mxu1 }
 0x47b   : > { %v4272_v0 = vmax.f32 %v4271_v21, %v4032_v61 }
 0x47c   : > { %v4034_v1 = vpop.f32.mrf.mxu1 }
 0x47d   : > { %v4317_v4 = vmax.f32 %v4316_v25, %v4034_v1 }
 0x47e   : > { %v4036_v41 = vpop.f32.mrf.mxu1 }
 0x47f   : > { %v4273_v32 = vmax.f32 %v4272_v0, %v4036_v41 }
 0x480   : > { %v4038_v43 = vpop.f32.mrf.mxu1 }
 0x481   : > { %v4318_v33 = vmax.f32 %v4317_v4, %v4038_v43 }
 0x482   : > { %v4042_v16 = vpop.f32.mrf.mxu1 }
 0x483   : > { %v4274_v46 = vmax.f32 %v4273_v32, %v4042_v16 }
 0x484   : > { %v4044_v11 = vpop.f32.mrf.mxu1 }
 0x485   : > { %v4319_v53 = vmax.f32 %v4318_v33, %v4044_v11 }
 0x486   : > { %v4046_v35 = vpop.f32.mrf.mxu1 }
 0x487   : > { %v4275_v62 = vmax.f32 %v4274_v46, %v4046_v35 }
 0x488   : > { %v4048_v19 = vpop.f32.mrf.mxu1 }
 0x489   : > { %v4320_v22 = vmax.f32 %v4319_v53, %v4048_v19 }
 0x48a   : > { %v4052_v54 = vpop.f32.mrf.mxu1 }
 0x48b   : > { %v4276_v30 = vmax.f32 %v4275_v62, %v4052_v54 }
 0x48c   : > { %v4054_v63 = vpop.f32.mrf.mxu1 }
 0x48d   : > { %v4321_v48 = vmax.f32 %v4320_v22, %v4054_v63 }
 0x48e   : > { %v4056_v29 = vpop.f32.mrf.mxu1 }
 0x48f   : > { %v4277_v50 = vmax.f32 %v4276_v30, %v4056_v29 }
 0x490   : > { %v4058_v60 = vpop.f32.mrf.mxu1 }
 0x491   : > { %v4322_v27 = vmax.f32 %v4321_v48, %v4058_v60 }
 0x492   : > { %v4062_v13 = vpop.f32.mrf.mxu1 }
 0x493   : > { %v4278_v12 = vmax.f32 %v4277_v50, %v4062_v13 }
 0x494   : > { %v4064_v47 = vpop.f32.mrf.mxu1 }
 0x495   : > { %v4323_v39 = vmax.f32 %v4322_v27, %v4064_v47 }
 0x496   : > { %v4066_v20 = vpop.f32.mrf.mxu1 }
 0x497   : > { %v4279_v58 = vmax.f32 %v4278_v12, %v4066_v20 }
 0x498   : > { %v4068_v15 = vpop.f32.mrf.mxu1 }
 0x499   : > { %v4324_v52 = vmax.f32 %v4323_v39, %v4068_v15 }
 0x49a   : > { %v4072_v42 = vpop.f32.mrf.mxu1 }
 0x49b   : > { %v4280_v37 = vmax.f32 %v4279_v58, %v4072_v42 }
 0x49c   : > { %v4074_v49 = vpop.f32.mrf.mxu1 }
 0x49d   : > { %v4325_v61 = vmax.f32 %v4324_v52, %v4074_v49 }
 0x49e   : > { %v4076_v14 = vpop.f32.mrf.mxu1 }
 0x49f   : > { %v4281_v1 = vmax.f32 %v4280_v37, %v4076_v14 }
 0x4a0   : > { %v4078_v5 = vpop.f32.mrf.mxu1 }
 0x4a1   : > { %v4326_v43 = vmax.f32 %v4325_v61, %v4078_v5 }
 0x4a2   : > { %v4082_v9 = vpop.f32.mrf.mxu1 }
 0x4a3   : > { %v4282_v16 = vmax.f32 %v4281_v1, %v4082_v9 }
 0x4a4   : > { %v4084_v23 = vpop.f32.mrf.mxu1 }
 0x4a5   : > { %v4327_v35 = vmax.f32 %v4326_v43, %v4084_v23 }
 0x4a6   : > { %v4086_v55 = vpop.f32.mrf.mxu1 }
 0x4a7   : > { %v4283_v19 = vmax.f32 %v4282_v16, %v4086_v55  ;;  %v4359_v16 = vlaneseq }
 0x4a8   : > { %v4088_v28 = vpop.f32.mrf.mxu1 }
 0x4a9   : > { %v4328_v63 = vmax.f32 %v4327_v35, %v4088_v28 }
 0x4aa   : > { %v4092_v40 = vpop.f32.mrf.mxu1 }
 0x4ab   : > { %v4284_v29 = vmax.f32 %v4283_v19, %v4092_v40 }
 0x4ac   : > { %v4094_v34 = vpop.f32.mrf.mxu1 }
 0x4ad   : > { %v4329_v13 = vmax.f32 %v4328_v63, %v4094_v34 }
 0x4ae   : > { %v4096_v7 = vpop.f32.mrf.mxu1 }
 0x4af   : > { %v4285_v6 = vmax.f32 %v4284_v29, %v4096_v7  ;;  %v4360_v29 = vshrl.u32 %v4359_v16, 7 }
 0x4b0   : > { %v4098_v8 = vpop.f32.mrf.mxu1 }
 0x4b1   : > { %v4330_v20 = vmax.f32 %v4329_v13, %v4098_v8 }
 0x4b2   : > { %v4102_v18 = vpop.f32.mrf.mxu1 }
 0x4b3   : > { %v4286_v3 = vmax.f32 %v4285_v6, %v4102_v18 }
 0x4b4   : > { %v4104_v56 = vpop.f32.mrf.mxu1 }
 0x4b5   : > { %v4331_v42 = vmax.f32 %v4330_v20, %v4104_v56 }
 0x4b6   : > { %v4106_v26 = vpop.f32.mrf.mxu1 }
 0x4b7   : > { %v4287_v38 = vmax.f32 %v4286_v3, %v4106_v26 }
 0x4b8   : > { %v4108_v17 = vpop.f32.mrf.mxu1 }
 0x4b9   : > { %v4332_v14 = vmax.f32 %v4331_v42, %v4108_v17 }
 0x4ba   : > { %v4112_v51 = vpop.f32.mrf.mxu1 }
 0x4bb   : > { %v4288_v2 = vmax.f32 %v4287_v38, %v4112_v51 }
 0x4bc   : > { %v4114_v31 = vpop.f32.mrf.mxu1 }
 0x4bd   : > { %v4333_v9 = vmax.f32 %v4332_v14, %v4114_v31 }
 0x4be   : > { %v4116_v36 = vpop.f32.mrf.mxu1 }
 0x4bf   : > { %v4289_v45 = vmax.f32 %v4288_v2, %v4116_v36 }
 0x4c0   : > { %v4118_v10 = vpop.f32.mrf.mxu1 }
 0x4c1   : > { %v4334_v55 = vmax.f32 %v4333_v9, %v4118_v10 }
 0x4c2   : > { %v4122_v57 = vpop.f32.mrf.mxu1 }
 0x4c3   : > { %v4290_v21 = vmax.f32 %v4289_v45, %v4122_v57 }
 0x4c4   : > { %v4124_v41 = vpop.f32.mrf.mxu1 }
 0x4c5   : > { %v4335_v40 = vmax.f32 %v4334_v55, %v4124_v41  ;;  %v5634_v41 = vmov 1983009808  }
 0x4c6   : > { %v4126_v11 = vpop.f32.mrf.mxu1  ;;  %v4357_v43 = vunpack.c.l.s4 %v5634_v41 }
 0x4c7   : > { %v4291_v25 = vmax.f32 %v4290_v21, %v4126_v11 }
 0x4c8   : > { %v4128_v54 = vpop.f32.mrf.mxu1  ;;  %v4358_v63 = vunpack.c.0.s8 %v4357_v43 }
 0x4c9   : > { %v4336_v7 = vmax.f32 %v4335_v40, %v4128_v54 }
 0x4ca   : > { %v4132_v60 = vpop.f32.mrf.mxu1 }
 0x4cb   : > { %v4292_v0 = vmax.f32 %v4291_v25, %v4132_v60 }
 0x4cc   : > { %v4134_v47 = vpop.f32.mrf.mxu1 }
 0x4cd   : > { %v4337_v18 = vmax.f32 %v4336_v7, %v4134_v47  ;;  %v4361_v47 = vsub.s32 %v4358_v63, %v4360_v29 }
 0x4ce   : > { %v4136_v15 = vpop.f32.mrf.mxu1 }
 0x4cf   : > { %v4293_v4 = vmax.f32 %v4292_v0, %v4136_v15  ;;  %v4362_v15 = vrot.slane %v4355_v24, %v4361_v47 }
 0x4d0   : > { %v4138_v49 = vpop.f32.mrf.mxu1 }
 0x4d1   : > { %v4338_v56 = vmax.f32 %v4337_v18, %v4138_v49 }
 0x4d2   : > { %v4142_v5 = vpop.f32.mrf.mxu1 }
 0x4d3   : > { %v4294_v33 = vmax.f32 %v4293_v4, %v4142_v5 }
 0x4d4   : > { %v4144_v23 = vpop.f32.mrf.mxu1 }
 0x4d5   : > { %v4339_v26 = vmax.f32 %v4338_v56, %v4144_v23 }
 0x4d6   : > { %v4146_v28 = vpop.f32.mrf.mxu1 }
 0x4d7   : > { %v4295_v53 = vmax.f32 %v4294_v33, %v4146_v28 }
 0x4d8   : > { %v4148_v34 = vpop.f32.mrf.mxu1 }
 0x4d9   : > { %v4340_v17 = vmax.f32 %v4339_v26, %v4148_v34 }
 0x4da   : > { %v4152_v8 = vpop.f32.mrf.mxu1 }
 0x4db   : > { %v4296_v22 = vmax.f32 %v4295_v53, %v4152_v8 }
 0x4dc   : > { %v4154_v32 = vpop.f32.mrf.mxu1 }
 0x4dd   : > { %v4341_v51 = vmax.f32 %v4340_v17, %v4154_v32 }
 0x4de   : > { %v4156_v46 = vpop.f32.mrf.mxu1 }
 0x4df   : > { %v4297_v48 = vmax.f32 %v4296_v22, %v4156_v46 }
 0x4e0   : > { %v4158_v62 = vpop.f32.mrf.mxu1 }
 0x4e1   : > { %v4342_v31 = vmax.f32 %v4341_v51, %v4158_v62 }
 0x4e2   : > { %v4162_v30 = vpop.f32.mrf.mxu1 }
 0x4e3   : > { %v4298_v27 = vmax.f32 %v4297_v48, %v4162_v30 }
 0x4e4   : > { %v4164_v50 = vpop.f32.mrf.mxu1 }
 0x4e5   : > { %v4343_v36 = vmax.f32 %v4342_v31, %v4164_v50 }
 0x4e6   : > { %v4166_v12 = vpop.f32.mrf.mxu1 }
 0x4e7   : > { %v4299_v39 = vmax.f32 %v4298_v27, %v4166_v12 }
 0x4e8   : > { %v4168_v58 = vpop.f32.mrf.mxu1 }
 0x4e9   : > { %v4300_v10 = vrot.slane %v4299_v39, 4  ;;  %v4344_v52 = vmax.f32 %v4343_v36, %v4168_v58 }
 0x4eb   : > { %v4301_v37 = vmax.f32 %v4299_v39, %v4300_v10  ;;  %v4345_v57 = vrot.slane %v4344_v52, 4 }
 0x4ed   : > { %v4302_v61 = vrot.slane %v4301_v37, 2  ;;  %v4346_v1 = vmax.f32 %v4344_v52, %v4345_v57 }
 0x4ef   : > { %v4303_v11 = vmax.f32 %v4301_v37, %v4302_v61  ;;  %v4347_v35 = vrot.slane %v4346_v1, 2 }
 0x4f1   : > { %v4304_v19 = vrot.slane %v4303_v11, 1  ;;  %v4348_v54 = vmax.f32 %v4346_v1, %v4347_v35 }
 0x4f3   : > { %v4349_v60 = vrot.slane %v4348_v54, 1  ;;  %v4305_v13 = vmax.f32 %v4303_v11, %v4304_v19 }
 0x4f5   : > { %v4350_v6 = vmax.f32 %v4348_v54, %v4349_v60 }
 0x4f7   : > { %v4363_v20 = vcombine.low %v4305_v13, %v4350_v6 }
 0x4f9   : > { %v4370_v3 = vrot.slane %v4363_v20, %v4361_v47 }
 0x4fb   : > { %v4375_v42 = vrot.slane %v4370_v3, 7 }
 0x4fd   : > { %v4377_v38 = vsel %vm4376_vm4, %v4375_v42, %v4362_v15 }
 0x4fe   : > { %v4379_v49 = vsel %vm4378_vm5, %v4375_v42, %v4377_v38 }
 0x4ff   : > { %v4381_v14 = vsel %vm4380_vm6, %v4375_v42, %v4379_v49 }
 0x500   : > { %v4383_v2 = vsel %vm4382_vm7, %v4375_v42, %v4381_v14 }
 0x501   : > { %4385 = vst [vmem:[%s686_s25] sm:$0xf] %v4383_v2 }
 0x502 PF: > { %s18_s9 = sadd.s32 1, %s5630_s9   ;;  %s7189_s27 = smov %s5618_s28 }
 0x503   : > { %p15_p10 = scmp.ge.s32.totalorder %s18_s9, 4   ;;  %s7190_s28 = smov %s5715_s13 }
 0x504   : > { %s7191_s29 = smov %s5626_s30  ;;  %s7192_s30 = smov %s7194_s10 }
 0x505   :  { %17 = sbr.rel (!%p15_p10) target bundleno = 3 (0x3), region = 125 }

</bundles_post_ra>
